<compile_context>
chip_gen: v5e
topology: v5e:2x2
jax: 0.10.0
libtpu: 0.0.40
codegen_flags: <defaults>
</compile_context>

<pallas_src>
import functools

import numpy as np
import jax
import jax.numpy as jnp
from jax import lax
from jax.experimental import pallas as pl
from jax.experimental.pallas import tpu as pltpu


def _round_up(x, m):
    return (x + m - 1) // m * m


def _chip_defaults():
    """(max output pixels per strip, max Cout tile) per TPU generation."""
    kind = ""
    try:
        kind = jax.devices()[0].device_kind.lower()
    except Exception:
        pass
    if "v5" in kind or "v4" in kind or "v3" in kind:
        # 128-wide MXU, 16 MiB default scoped VMEM -> smaller tiles.
        return 256, 128
    # v6e / v7x: 2x256^2 MXU.
    return 512, 256


def _pick_tiles(h, w, cout_p, max_rows, tco_max):
    """Choose (row-strip height th, Cout tile tco)."""
    if tco_max >= 256 and cout_p % 256 == 0:
        tco = 256                       # full MXU output width on v6e/v7x
    else:
        tco = 128
    target = max(1, min(h, max_rows // max(w, 1)))
    th = 1
    for cand in range(target, 0, -1):   # largest divisor of h <= target
        if h % cand == 0:
            th = cand
            break
    if th * 2 < target:                 # divisors too small (e.g. prime h):
        th = target                     # use a non-divisor th and pad H.
    # TODO(synk): add a W (column) grid axis with halo handling for very wide
    # images (currently only H is tiled, so W > max_rows inflates the strip).
    return th, tco


def _repvgg_kernel(x_hbm, w_ref, b_ref, o_ref, xbuf, sem, *, th, wp8, w_valid):
    """One grid step = (sample n, H-strip s, Cout tile co).

    x_hbm : (N, (H_pad+3)*wp8, Cin_p) bf16, flattened padded NHWC, in HBM.
    w_ref : (9, Cin_p, tco)  bf16  BN-folded 3x3 weights (taps on axis 0).
    b_ref : (1, tco)         f32   combined bias.
    o_ref : (th, W, tco)           output strip tile (bf16 by default).
    xbuf  : (2, (th+3)*wp8, Cin_p) bf16 VMEM double buffer for input strips.
    sem   : (2,) DMA semaphores.
    """
    n = pl.program_id(0)
    s = pl.program_id(1)
    co = pl.program_id(2)
    n_s = pl.num_programs(1)

    rows_dma = (th + 3) * wp8          # strip + halo + 1 over-read row (flat)
    m_rows = th * wp8                  # matmul M (includes wp8-w_valid junk cols)
    slot = s % 2

    def strip_copy(si, dst_slot):
        return pltpu.make_async_copy(
            x_hbm.at[n, pl.ds(si * (th * wp8), rows_dma), :],
            xbuf.at[dst_slot],
            sem.at[dst_slot])

    # All DMA bookkeeping happens on the first Cout tile of a strip; the
    # remaining co iterations reuse the VMEM-resident strip (co is "arbitrary"
    # so this is megacore-safe).
    @pl.when(co == 0)
    def _():
        @pl.when(s == 0)
        def _():                         # first strip of this sample: prime.
            strip_copy(0, 0).start()
        strip_copy(s, slot).wait()       # current strip must be in VMEM.

        @pl.when(s + 1 < n_s)
        def _():                         # prefetch next strip of SAME sample.
            strip_copy(s + 1, 1 - slot).start()

    tco = o_ref.shape[-1]
    acc = jnp.zeros((m_rows, tco), jnp.float32)
    # 9 MXU matmuls (K = Cin_p each).  Each tap is a contiguous, static-offset
    # flat-row window of the strip buffer -> no im2col copies.
    for k in range(9):
        kh, kw = divmod(k, 3)
        a = xbuf[slot, pl.ds(kh * wp8 + kw, m_rows), :]
        acc = acc + jnp.dot(a, w_ref[k], preferred_element_type=jnp.float32)

    y = acc + b_ref[...]                                     # f32 epilogue
    # SiLU via EUP: approx reciprocal ~2^-12 rel err (inference-grade).
    y = y * pl.reciprocal(1.0 + jnp.exp(-y), approx=True)
    # wp8 % 8 == 0 so this reshape only relabels the sublane dim; the [:w_valid]
    # slice drops the junk columns that the flat formulation computes.
    y = y.reshape(th, wp8, tco)[:, :w_valid, :]
    o_ref[...] = y.astype(o_ref.dtype)


def repvgg_block_nhwc(x_nhwc, w3_hwio, bias, *, out_dtype=jnp.bfloat16):
    """Fused RepVGG block on NHWC input.

    w3_hwio: (3, 3, Cin, Cout) BN-folded 3x3 weights with the 1x1 branch
             already merged into the center tap.
    bias   : (Cout,) combined bias.

    NOTE: channels are zero-padded to multiples of 128 lanes; for Cin/Cout far
    below 128 most MXU/HBM work is padding.
    TODO(synk): pack taps / spatial positions into lanes (or route to another
    kernel) for very small channel counts.
    """
    N, H, W, Cin = x_nhwc.shape
    Cout = w3_hwio.shape[-1]
    cin_p = _round_up(Cin, 128)
    cout_p = _round_up(Cout, 128)

    max_rows, tco_max = _chip_defaults()
    th, tco = _pick_tiles(H, W, cout_p, max_rows, tco_max)
    n_s = (H + th - 1) // th
    h_pad = n_s * th
    n_co = cout_p // tco
    wp8 = _round_up(W + 2, 8)           # padded row width, sublane aligned

    # Padding: 1 halo row on top; 1 halo + (h_pad-H) + 1 over-read row at the
    # bottom; 1 halo column left; right padded so each row is wp8 wide.
    # Weights cast to bf16 after BN folding (see correctness note: keep f32 if
    # BN variances are tiny and bit accuracy vs. the PyTorch module matters).
    x_p = jnp.pad(x_nhwc.astype(jnp.bfloat16),
                  ((0, 0), (1, h_pad - H + 2), (1, wp8 - (W + 1)),
                   (0, cin_p - Cin)))
    x_flat = x_p.reshape(N, (h_pad + 3) * wp8, cin_p)

    w_p = jnp.pad(w3_hwio,
                  ((0, 0), (0, 0), (0, cin_p - Cin), (0, cout_p - Cout)))
    w_k = w_p.reshape(9, cin_p, cout_p).astype(jnp.bfloat16)
    b_p = jnp.pad(bias, (0, cout_p - Cout)).reshape(1, cout_p).astype(jnp.float32)

    rows_dma = (th + 3) * wp8
    m_rows = th * wp8
    out_isz = np.dtype(out_dtype).itemsize
    est = (2 * rows_dma * cin_p * 2          # input strip double buffer (bf16)
           + 2 * 9 * cin_p * tco * 2         # weight blocks (pipelined x2)
           + 2 * th * W * tco * out_isz      # output blocks (pipelined x2)
           + 2 * m_rows * tco * 4            # f32 accumulator + epilogue temp
           + 2 * m_rows * cin_p * 2)         # tap operand temporaries
    vmem_limit = int(min(max(2 * est, 32 * 2 ** 20), 64 * 2 ** 20))

    out = pl.pallas_call(
        functools.partial(_repvgg_kernel, th=th, wp8=wp8, w_valid=W),
        out_shape=jax.ShapeDtypeStruct((N, h_pad, W, cout_p), out_dtype),
        grid_spec=pltpu.PrefetchScalarGridSpec(
            num_scalar_prefetch=0,
            grid=(N, n_s, n_co),
            in_specs=[
                pl.BlockSpec(memory_space=pl.ANY),                   # x in HBM
                pl.BlockSpec((9, cin_p, tco), lambda n, s, co: (0, 0, co)),
                pl.BlockSpec((1, tco), lambda n, s, co: (0, co)),
            ],
            out_specs=pl.BlockSpec((None, th, W, tco),
                                   lambda n, s, co: (n, s, 0, co)),
            scratch_shapes=[
                pltpu.VMEM((2, rows_dma, cin_p), jnp.bfloat16),
                pltpu.SemaphoreType.DMA((2,)),
            ]),
        compiler_params=pltpu.CompilerParams(
            # N "parallel" gives v7x megacore work; strip/Cout axes carry the
            # manual-DMA reuse state so they stay "arbitrary".
            dimension_semantics=("parallel", "arbitrary", "arbitrary"),
            vmem_limit_bytes=vmem_limit),
    )(x_flat, w_k, b_p)

    if h_pad != H:
        out = out[:, :H]
    if cout_p != Cout:
        # Only needed when Cout is not a multiple of 128; for real encoder
        # layers (Cout % 128 == 0) no extra HBM pass happens.
        out = out[..., :Cout]
    return out


def _fold_bn(w_oihw, gamma, beta, mean, var, eps=1e-5):
    """Fold BatchNorm (inference) into conv weight/bias. Returns (OIHW w, bias)."""
    std = jnp.sqrt(var + eps)
    scale = gamma / std
    return w_oihw * scale[:, None, None, None], beta - mean * scale


def repvgg_block(x_nchw, params, *, out_dtype=jnp.bfloat16):
    """Full RepVggBlock forward (inference). x_nchw: (N, Cin, H, W) -> NCHW."""
    w3f, b3 = _fold_bn(params["w3_oihw"], params["g3"], params["b3"],
                       params["m3"], params["v3"])
    w1f, b1 = _fold_bn(params["w1_oihw"], params["g1"], params["b1"],
                       params["m1"], params["v1"])
    # OIHW -> HWIO; fold the 1x1 branch into the 3x3 center tap (exact).
    w3_hwio = jnp.transpose(w3f, (2, 3, 1, 0))           # (3,3,Cin,Cout)
    w1_io = jnp.transpose(w1f, (2, 3, 1, 0))[0, 0]       # (Cin,Cout)
    w3_hwio = w3_hwio.at[1, 1].add(w1_io)
    bias = b3 + b1

    # TODO(synk): a real NHWC pipeline should call repvgg_block_nhwc directly
    # and skip these two full-tensor HBM transposes (kept only for parity with
    # the PyTorch NCHW module interface).
    x_nhwc = jnp.transpose(x_nchw, (0, 2, 3, 1))
    y_nhwc = repvgg_block_nhwc(x_nhwc, w3_hwio, bias, out_dtype=out_dtype)
    return jnp.transpose(y_nhwc, (0, 3, 1, 2))


def repvgg_block_ref(x_nchw, params):
    """Pure-JAX f32 reference (two branches, un-fused) for validation."""
    w3f, b3 = _fold_bn(params["w3_oihw"], params["g3"], params["b3"],
                       params["m3"], params["v3"])
    w1f, b1 = _fold_bn(params["w1_oihw"], params["g1"], params["b1"],
                       params["m1"], params["v1"])
    dn = lax.conv_dimension_numbers(x_nchw.shape, w3f.shape,
                                    ("NCHW", "OIHW", "NCHW"))
    y3 = lax.conv_general_dilated(x_nchw, w3f, (1, 1), ((1, 1), (1, 1)),
                                  dimension_numbers=dn)
    y1 = lax.conv_general_dilated(x_nchw, w1f, (1, 1), ((0, 0), (0, 0)),
                                  dimension_numbers=dn)
    y = y3 + b3[None, :, None, None] + y1 + b1[None, :, None, None]
    return y * jax.nn.sigmoid(y)


def make_params(ch_in, ch_out, key):
    """Deterministic synthetic parameters matching RepVggBlock.__init__ shapes."""
    ks = jax.random.split(key, 10)
    p = {}
    # conv1: 3x3, no bias ; norm1: BatchNorm2d(ch_out)
    p["w3_oihw"] = jax.random.normal(ks[0], (ch_out, ch_in, 3, 3), jnp.float32) * 0.1
    p["g3"] = 1.0 + 0.1 * jax.random.normal(ks[1], (ch_out,), jnp.float32)
    p["b3"] = 0.1 * jax.random.normal(ks[2], (ch_out,), jnp.float32)
    p["m3"] = 0.1 * jax.random.normal(ks[3], (ch_out,), jnp.float32)
    p["v3"] = jax.nn.softplus(jax.random.normal(ks[4], (ch_out,), jnp.float32)) + 0.5
    # conv2: 1x1, no bias ; norm2: BatchNorm2d(ch_out)
    p["w1_oihw"] = jax.random.normal(ks[5], (ch_out, ch_in, 1, 1), jnp.float32) * 0.1
    p["g1"] = 1.0 + 0.1 * jax.random.normal(ks[6], (ch_out,), jnp.float32)
    p["b1"] = 0.1 * jax.random.normal(ks[7], (ch_out,), jnp.float32)
    p["m1"] = 0.1 * jax.random.normal(ks[8], (ch_out,), jnp.float32)
    p["v1"] = jax.nn.softplus(jax.random.normal(ks[9], (ch_out,), jnp.float32)) + 0.5
    return p


def _check(out, ref, name):
    out_f = out.astype(jnp.float32)
    ok = jnp.allclose(out_f, ref, atol=3e-2, rtol=3e-2)
    assert bool(ok), f"{name}: max err {jnp.max(jnp.abs(out_f - ref))}"


if __name__ == "__main__":
    key = jax.random.PRNGKey(0)
    k_x1, k_p1, k_x2, k_p2 = jax.random.split(key, 4)

    # Case 1: small module-parity shape (N=2, C=4, 16x16).
    N, C_in, C_out, H, W = 2, 4, 4, 16, 16
    x = jax.random.normal(k_x1, (N, C_in, H, W), jnp.float32)
    params = make_params(C_in, C_out, k_p1)
    out = jax.block_until_ready(repvgg_block(x, params))
    ref = repvgg_block_ref(x, params)
    assert out.shape == (N, C_out, H, W)
    _check(out, ref, "case1")

    # Case 2: exercises multi-strip H tiling with prefetch (n_s > 1),
    # non-divisor H (H padding path) and multiple Cout tiles (n_co > 1).
    N2, C_in2, C_out2, H2, W2 = 1, 8, 384, 23, 30
    x2 = jax.random.normal(k_x2, (N2, C_in2, H2, W2), jnp.float32)
    params2 = make_params(C_in2, C_out2, k_p2)
    out2 = jax.block_until_ready(repvgg_block(x2, params2))
    ref2 = repvgg_block_ref(x2, params2)
    assert out2.shape == (N2, C_out2, H2, W2)
    _check(out2, ref2, "case2")

    print("KERNEL_OK")
</pallas_src>

<mosaic_0001>
module attributes {stable_mosaic.version = 11 : i64} {
  func.func @_repvgg_kernel(%arg0: i32, %arg1: i32, %arg2: i32, %arg3: memref<2x456x128xbf16, #tpu.memory_space<any>>, %arg4: memref<9x128x128xbf16, #tpu.memory_space<vmem>>, %arg5: memref<1x128xf32, #tpu.memory_space<vmem>>, %arg6: memref<1x16x16x128xbf16, #tpu.memory_space<vmem>>, %arg7: memref<2x456x128xbf16, #tpu.memory_space<vmem>>, %arg8: memref<2x!tpu.dma_semaphore, #tpu.memory_space<semaphore_mem>>) attributes {dimension_semantics = [#tpu.dimension_semantics<parallel>, #tpu.dimension_semantics<arbitrary>, #tpu.dimension_semantics<arbitrary>], iteration_bounds = array<i64: 2, 1, 1>, scalar_prefetch = 0 : i64, scratch_operands = 2 : i64, tpu.core_type = #tpu.core_type<tc>, window_params = [{}, {transform_indices = @transform_1, window_bounds = array<i64: 9, 128, 128>}, {transform_indices = @transform_2, window_bounds = array<i64: 1, 128>}, {transform_indices = @transform_3, window_bounds = array<i64: 1, 16, 16, 128>}]} {
    %c2_i32 = arith.constant 2 : i32
    %c0_i32 = arith.constant 0 : i32
    %0 = arith.cmpi eq, %c2_i32, %c0_i32 : i32
    %c1_i32 = arith.constant 1 : i32
    %1 = arith.select %0, %c1_i32, %c2_i32 : i32
    %2 = arith.remsi %arg1, %1 : i32
    %c0_i32_0 = arith.constant 0 : i32
    %3 = arith.cmpi ne, %2, %c0_i32_0 : i32
    %c0_i32_1 = arith.constant 0 : i32
    %4 = arith.cmpi slt, %2, %c0_i32_1 : i32
    %c0_i32_2 = arith.constant 0 : i32
    %5 = arith.cmpi slt, %1, %c0_i32_2 : i32
    %6 = arith.xori %4, %5 : i1
    %7 = arith.andi %6, %3 : i1
    %8 = arith.addi %2, %1 : i32
    %9 = arith.select %7, %8, %2 : i32
    %c0_i32_3 = arith.constant 0 : i32
    %10 = arith.cmpi eq, %arg2, %c0_i32_3 : i32
    %11 = arith.extui %10 : i1 to i32
    %c0_i32_4 = arith.constant 0 : i32
    %12 = arith.cmpi ne, %11, %c0_i32_4 : i32
    scf.if %12 {
      %c0_i32_52 = arith.constant 0 : i32
      %93 = arith.cmpi eq, %arg1, %c0_i32_52 : i32
      %94 = arith.extui %93 : i1 to i32
      %c0_i32_53 = arith.constant 0 : i32
      %95 = arith.cmpi ne, %94, %c0_i32_53 : i32
      scf.if %95 {
        %c0_i32_60 = arith.constant 0 : i32
        %c0_i32_61 = arith.constant 0 : i32
        %c0_i32_62 = arith.constant 0 : i32
        %c0_i32_63 = arith.constant 0 : i32
        %107 = tpu.memref_slice %arg3[%arg0, %c0_i32_62, %c0_i32_63] : memref<2x456x128xbf16, #tpu.memory_space<any>> -> memref<1x456x128xbf16, #tpu.memory_space<any>>
        %108 = tpu.memref_squeeze %107 : memref<1x456x128xbf16, #tpu.memory_space<any>> -> memref<456x128xbf16, #tpu.memory_space<any>>
        %c0_i32_64 = arith.constant 0 : i32
        %c0_i32_65 = arith.constant 0 : i32
        %109 = tpu.memref_slice %arg7[%c0_i32_60, %c0_i32_64, %c0_i32_65] : memref<2x456x128xbf16, #tpu.memory_space<vmem>> -> memref<1x456x128xbf16, #tpu.memory_space<vmem>>
        %110 = tpu.memref_squeeze %109 : memref<1x456x128xbf16, #tpu.memory_space<vmem>> -> memref<456x128xbf16, #tpu.memory_space<vmem>>
        %111 = tpu.memref_slice %arg8[%c0_i32_61] : memref<2x!tpu.dma_semaphore, #tpu.memory_space<semaphore_mem>> -> memref<1x!tpu.dma_semaphore, #tpu.memory_space<semaphore_mem>>
        %112 = tpu.memref_squeeze %111 : memref<1x!tpu.dma_semaphore, #tpu.memory_space<semaphore_mem>> -> memref<!tpu.dma_semaphore, #tpu.memory_space<semaphore_mem>>
        tpu.enqueue_dma source(%108 : memref<456x128xbf16, #tpu.memory_space<any>>) target(%110 : memref<456x128xbf16, #tpu.memory_space<vmem>>) target_semaphore(%112 : memref<!tpu.dma_semaphore, #tpu.memory_space<semaphore_mem>>)
      } else {
      }
      %c384_i32 = arith.constant 384 : i32
      %96 = arith.muli %arg1, %c384_i32 : i32
      %c0_i32_54 = arith.constant 0 : i32
      %97 = tpu.memref_slice %arg3[%arg0, %96, %c0_i32_54] : memref<2x456x128xbf16, #tpu.memory_space<any>> -> memref<1x456x128xbf16, #tpu.memory_space<any>>
      %98 = tpu.memref_squeeze %97 : memref<1x456x128xbf16, #tpu.memory_space<any>> -> memref<456x128xbf16, #tpu.memory_space<any>>
      %c0_i32_55 = arith.constant 0 : i32
      %c0_i32_56 = arith.constant 0 : i32
      %99 = tpu.memref_slice %arg7[%9, %c0_i32_55, %c0_i32_56] : memref<2x456x128xbf16, #tpu.memory_space<vmem>> -> memref<1x456x128xbf16, #tpu.memory_space<vmem>>
      %100 = tpu.memref_squeeze %99 : memref<1x456x128xbf16, #tpu.memory_space<vmem>> -> memref<456x128xbf16, #tpu.memory_space<vmem>>
      %101 = tpu.memref_slice %arg8[%9] : memref<2x!tpu.dma_semaphore, #tpu.memory_space<semaphore_mem>> -> memref<1x!tpu.dma_semaphore, #tpu.memory_space<semaphore_mem>>
      %102 = tpu.memref_squeeze %101 : memref<1x!tpu.dma_semaphore, #tpu.memory_space<semaphore_mem>> -> memref<!tpu.dma_semaphore, #tpu.memory_space<semaphore_mem>>
      tpu.wait_dma2 semaphore(%102 : memref<!tpu.dma_semaphore, #tpu.memory_space<semaphore_mem>>) src(%98 : memref<456x128xbf16, #tpu.memory_space<any>>) dst(%100 : memref<456x128xbf16, #tpu.memory_space<vmem>>)
      %c1_i32_57 = arith.constant 1 : i32
      %103 = arith.addi %arg1, %c1_i32_57 : i32
      %c1_i32_58 = arith.constant 1 : i32
      %104 = arith.cmpi slt, %103, %c1_i32_58 : i32
      %105 = arith.extui %104 : i1 to i32
      %c0_i32_59 = arith.constant 0 : i32
      %106 = arith.cmpi ne, %105, %c0_i32_59 : i32
      scf.if %106 {
        %c1_i32_60 = arith.constant 1 : i32
        %107 = arith.addi %arg1, %c1_i32_60 : i32
        %c1_i32_61 = arith.constant 1 : i32
        %108 = arith.subi %c1_i32_61, %9 : i32
        %c384_i32_62 = arith.constant 384 : i32
        %109 = arith.muli %107, %c384_i32_62 : i32
        %c0_i32_63 = arith.constant 0 : i32
        %110 = tpu.memref_slice %arg3[%arg0, %109, %c0_i32_63] : memref<2x456x128xbf16, #tpu.memory_space<any>> -> memref<1x456x128xbf16, #tpu.memory_space<any>>
        %111 = tpu.memref_squeeze %110 : memref<1x456x128xbf16, #tpu.memory_space<any>> -> memref<456x128xbf16, #tpu.memory_space<any>>
        %c0_i32_64 = arith.constant 0 : i32
        %c0_i32_65 = arith.constant 0 : i32
        %112 = tpu.memref_slice %arg7[%108, %c0_i32_64, %c0_i32_65] : memref<2x456x128xbf16, #tpu.memory_space<vmem>> -> memref<1x456x128xbf16, #tpu.memory_space<vmem>>
        %113 = tpu.memref_squeeze %112 : memref<1x456x128xbf16, #tpu.memory_space<vmem>> -> memref<456x128xbf16, #tpu.memory_space<vmem>>
        %114 = tpu.memref_slice %arg8[%108] : memref<2x!tpu.dma_semaphore, #tpu.memory_space<semaphore_mem>> -> memref<1x!tpu.dma_semaphore, #tpu.memory_space<semaphore_mem>>
        %115 = tpu.memref_squeeze %114 : memref<1x!tpu.dma_semaphore, #tpu.memory_space<semaphore_mem>> -> memref<!tpu.dma_semaphore, #tpu.memory_space<semaphore_mem>>
        tpu.enqueue_dma source(%111 : memref<456x128xbf16, #tpu.memory_space<any>>) target(%113 : memref<456x128xbf16, #tpu.memory_space<vmem>>) target_semaphore(%115 : memref<!tpu.dma_semaphore, #tpu.memory_space<semaphore_mem>>)
      } else {
      }
    } else {
    }
    %cst = arith.constant 0.000000e+00 : f32
    %13 = vector.broadcast %cst : f32 to vector<384x128xf32>
    %14 = arith.index_cast %9 : i32 to index
    %c0 = arith.constant 0 : index
    %c0_5 = arith.constant 0 : index
    %15 = vector.load %arg7[%14, %c0, %c0_5] : memref<2x456x128xbf16, #tpu.memory_space<vmem>>, vector<1x384x128xbf16>
    %16 = vector.shape_cast %15 : vector<1x384x128xbf16> to vector<384x128xbf16>
    %c0_6 = arith.constant 0 : index
    %c0_7 = arith.constant 0 : index
    %c0_8 = arith.constant 0 : index
    %17 = vector.load %arg4[%c0_6, %c0_7, %c0_8] : memref<9x128x128xbf16, #tpu.memory_space<vmem>>, vector<1x128x128xbf16>
    %18 = vector.shape_cast %17 : vector<1x128x128xbf16> to vector<128x128xbf16>
    %cst_9 = arith.constant dense<0.000000e+00> : vector<384x128xf32>
    %19 = tpu.matmul %16, %18, %cst_9 {dimension_numbers = #tpu.dot_dimension_numbers<[1], [0], [0], [1], [0, 0, 1, 1], [], []>} : vector<384x128xbf16>, vector<128x128xbf16>, vector<384x128xf32> -> vector<384x128xf32>
    %20 = arith.addf %13, %19 : vector<384x128xf32>
    %21 = arith.index_cast %9 : i32 to index
    %c1 = arith.constant 1 : index
    %c0_10 = arith.constant 0 : index
    %22 = vector.load %arg7[%21, %c1, %c0_10] : memref<2x456x128xbf16, #tpu.memory_space<vmem>>, vector<1x384x128xbf16>
    %23 = vector.shape_cast %22 : vector<1x384x128xbf16> to vector<384x128xbf16>
    %c1_11 = arith.constant 1 : index
    %c0_12 = arith.constant 0 : index
    %c0_13 = arith.constant 0 : index
    %24 = vector.load %arg4[%c1_11, %c0_12, %c0_13] : memref<9x128x128xbf16, #tpu.memory_space<vmem>>, vector<1x128x128xbf16>
    %25 = vector.shape_cast %24 : vector<1x128x128xbf16> to vector<128x128xbf16>
    %cst_14 = arith.constant dense<0.000000e+00> : vector<384x128xf32>
    %26 = tpu.matmul %23, %25, %cst_14 {dimension_numbers = #tpu.dot_dimension_numbers<[1], [0], [0], [1], [0, 0, 1, 1], [], []>} : vector<384x128xbf16>, vector<128x128xbf16>, vector<384x128xf32> -> vector<384x128xf32>
    %27 = arith.addf %20, %26 : vector<384x128xf32>
    %28 = arith.index_cast %9 : i32 to index
    %c2 = arith.constant 2 : index
    %c0_15 = arith.constant 0 : index
    %29 = vector.load %arg7[%28, %c2, %c0_15] : memref<2x456x128xbf16, #tpu.memory_space<vmem>>, vector<1x384x128xbf16>
    %30 = vector.shape_cast %29 : vector<1x384x128xbf16> to vector<384x128xbf16>
    %c2_16 = arith.constant 2 : index
    %c0_17 = arith.constant 0 : index
    %c0_18 = arith.constant 0 : index
    %31 = vector.load %arg4[%c2_16, %c0_17, %c0_18] : memref<9x128x128xbf16, #tpu.memory_space<vmem>>, vector<1x128x128xbf16>
    %32 = vector.shape_cast %31 : vector<1x128x128xbf16> to vector<128x128xbf16>
    %cst_19 = arith.constant dense<0.000000e+00> : vector<384x128xf32>
    %33 = tpu.matmul %30, %32, %cst_19 {dimension_numbers = #tpu.dot_dimension_numbers<[1], [0], [0], [1], [0, 0, 1, 1], [], []>} : vector<384x128xbf16>, vector<128x128xbf16>, vector<384x128xf32> -> vector<384x128xf32>
    %34 = arith.addf %27, %33 : vector<384x128xf32>
    %35 = arith.index_cast %9 : i32 to index
    %c24 = arith.constant 24 : index
    %c0_20 = arith.constant 0 : index
    %36 = vector.load %arg7[%35, %c24, %c0_20] : memref<2x456x128xbf16, #tpu.memory_space<vmem>>, vector<1x384x128xbf16>
    %37 = vector.shape_cast %36 : vector<1x384x128xbf16> to vector<384x128xbf16>
    %c3 = arith.constant 3 : index
    %c0_21 = arith.constant 0 : index
    %c0_22 = arith.constant 0 : index
    %38 = vector.load %arg4[%c3, %c0_21, %c0_22] : memref<9x128x128xbf16, #tpu.memory_space<vmem>>, vector<1x128x128xbf16>
    %39 = vector.shape_cast %38 : vector<1x128x128xbf16> to vector<128x128xbf16>
    %cst_23 = arith.constant dense<0.000000e+00> : vector<384x128xf32>
    %40 = tpu.matmul %37, %39, %cst_23 {dimension_numbers = #tpu.dot_dimension_numbers<[1], [0], [0], [1], [0, 0, 1, 1], [], []>} : vector<384x128xbf16>, vector<128x128xbf16>, vector<384x128xf32> -> vector<384x128xf32>
    %41 = arith.addf %34, %40 : vector<384x128xf32>
    %42 = arith.index_cast %9 : i32 to index
    %c25 = arith.constant 25 : index
    %c0_24 = arith.constant 0 : index
    %43 = vector.load %arg7[%42, %c25, %c0_24] : memref<2x456x128xbf16, #tpu.memory_space<vmem>>, vector<1x384x128xbf16>
    %44 = vector.shape_cast %43 : vector<1x384x128xbf16> to vector<384x128xbf16>
    %c4 = arith.constant 4 : index
    %c0_25 = arith.constant 0 : index
    %c0_26 = arith.constant 0 : index
    %45 = vector.load %arg4[%c4, %c0_25, %c0_26] : memref<9x128x128xbf16, #tpu.memory_space<vmem>>, vector<1x128x128xbf16>
    %46 = vector.shape_cast %45 : vector<1x128x128xbf16> to vector<128x128xbf16>
    %cst_27 = arith.constant dense<0.000000e+00> : vector<384x128xf32>
    %47 = tpu.matmul %44, %46, %cst_27 {dimension_numbers = #tpu.dot_dimension_numbers<[1], [0], [0], [1], [0, 0, 1, 1], [], []>} : vector<384x128xbf16>, vector<128x128xbf16>, vector<384x128xf32> -> vector<384x128xf32>
    %48 = arith.addf %41, %47 : vector<384x128xf32>
    %49 = arith.index_cast %9 : i32 to index
    %c26 = arith.constant 26 : index
    %c0_28 = arith.constant 0 : index
    %50 = vector.load %arg7[%49, %c26, %c0_28] : memref<2x456x128xbf16, #tpu.memory_space<vmem>>, vector<1x384x128xbf16>
    %51 = vector.shape_cast %50 : vector<1x384x128xbf16> to vector<384x128xbf16>
    %c5 = arith.constant 5 : index
    %c0_29 = arith.constant 0 : index
    %c0_30 = arith.constant 0 : index
    %52 = vector.load %arg4[%c5, %c0_29, %c0_30] : memref<9x128x128xbf16, #tpu.memory_space<vmem>>, vector<1x128x128xbf16>
    %53 = vector.shape_cast %52 : vector<1x128x128xbf16> to vector<128x128xbf16>
    %cst_31 = arith.constant dense<0.000000e+00> : vector<384x128xf32>
    %54 = tpu.matmul %51, %53, %cst_31 {dimension_numbers = #tpu.dot_dimension_numbers<[1], [0], [0], [1], [0, 0, 1, 1], [], []>} : vector<384x128xbf16>, vector<128x128xbf16>, vector<384x128xf32> -> vector<384x128xf32>
    %55 = arith.addf %48, %54 : vector<384x128xf32>
    %56 = arith.index_cast %9 : i32 to index
    %c48 = arith.constant 48 : index
    %c0_32 = arith.constant 0 : index
    %57 = vector.load %arg7[%56, %c48, %c0_32] : memref<2x456x128xbf16, #tpu.memory_space<vmem>>, vector<1x384x128xbf16>
    %58 = vector.shape_cast %57 : vector<1x384x128xbf16> to vector<384x128xbf16>
    %c6 = arith.constant 6 : index
    %c0_33 = arith.constant 0 : index
    %c0_34 = arith.constant 0 : index
    %59 = vector.load %arg4[%c6, %c0_33, %c0_34] : memref<9x128x128xbf16, #tpu.memory_space<vmem>>, vector<1x128x128xbf16>
    %60 = vector.shape_cast %59 : vector<1x128x128xbf16> to vector<128x128xbf16>
    %cst_35 = arith.constant dense<0.000000e+00> : vector<384x128xf32>
    %61 = tpu.matmul %58, %60, %cst_35 {dimension_numbers = #tpu.dot_dimension_numbers<[1], [0], [0], [1], [0, 0, 1, 1], [], []>} : vector<384x128xbf16>, vector<128x128xbf16>, vector<384x128xf32> -> vector<384x128xf32>
    %62 = arith.addf %55, %61 : vector<384x128xf32>
    %63 = arith.index_cast %9 : i32 to index
    %c49 = arith.constant 49 : index
    %c0_36 = arith.constant 0 : index
    %64 = vector.load %arg7[%63, %c49, %c0_36] : memref<2x456x128xbf16, #tpu.memory_space<vmem>>, vector<1x384x128xbf16>
    %65 = vector.shape_cast %64 : vector<1x384x128xbf16> to vector<384x128xbf16>
    %c7 = arith.constant 7 : index
    %c0_37 = arith.constant 0 : index
    %c0_38 = arith.constant 0 : index
    %66 = vector.load %arg4[%c7, %c0_37, %c0_38] : memref<9x128x128xbf16, #tpu.memory_space<vmem>>, vector<1x128x128xbf16>
    %67 = vector.shape_cast %66 : vector<1x128x128xbf16> to vector<128x128xbf16>
    %cst_39 = arith.constant dense<0.000000e+00> : vector<384x128xf32>
    %68 = tpu.matmul %65, %67, %cst_39 {dimension_numbers = #tpu.dot_dimension_numbers<[1], [0], [0], [1], [0, 0, 1, 1], [], []>} : vector<384x128xbf16>, vector<128x128xbf16>, vector<384x128xf32> -> vector<384x128xf32>
    %69 = arith.addf %62, %68 : vector<384x128xf32>
    %70 = arith.index_cast %9 : i32 to index
    %c50 = arith.constant 50 : index
    %c0_40 = arith.constant 0 : index
    %71 = vector.load %arg7[%70, %c50, %c0_40] : memref<2x456x128xbf16, #tpu.memory_space<vmem>>, vector<1x384x128xbf16>
    %72 = vector.shape_cast %71 : vector<1x384x128xbf16> to vector<384x128xbf16>
    %c8 = arith.constant 8 : index
    %c0_41 = arith.constant 0 : index
    %c0_42 = arith.constant 0 : index
    %73 = vector.load %arg4[%c8, %c0_41, %c0_42] : memref<9x128x128xbf16, #tpu.memory_space<vmem>>, vector<1x128x128xbf16>
    %74 = vector.shape_cast %73 : vector<1x128x128xbf16> to vector<128x128xbf16>
    %cst_43 = arith.constant dense<0.000000e+00> : vector<384x128xf32>
    %75 = tpu.matmul %72, %74, %cst_43 {dimension_numbers = #tpu.dot_dimension_numbers<[1], [0], [0], [1], [0, 0, 1, 1], [], []>} : vector<384x128xbf16>, vector<128x128xbf16>, vector<384x128xf32> -> vector<384x128xf32>
    %76 = arith.addf %69, %75 : vector<384x128xf32>
    %c0_44 = arith.constant 0 : index
    %c0_45 = arith.constant 0 : index
    %77 = vector.load %arg5[%c0_44, %c0_45] : memref<1x128xf32, #tpu.memory_space<vmem>>, vector<1x128xf32>
    %78 = vector.broadcast %77 : vector<1x128xf32> to vector<384x128xf32>
    %79 = arith.addf %76, %78 : vector<384x128xf32>
    %cst_46 = arith.constant 0.000000e+00 : f32
    %80 = vector.broadcast %cst_46 : f32 to vector<384x128xf32>
    %81 = arith.subf %80, %79 : vector<384x128xf32>
    %82 = math.exp %81 : vector<384x128xf32>
    %cst_47 = arith.constant 1.000000e+00 : f32
    %83 = vector.broadcast %cst_47 : f32 to vector<384x128xf32>
    %84 = arith.addf %83, %82 : vector<384x128xf32>
    %85 = tpu.reciprocal %84 {approx = true} : vector<384x128xf32> -> vector<384x128xf32>
    %86 = arith.mulf %79, %85 : vector<384x128xf32>
    %87 = vector.shape_cast %86 : vector<384x128xf32> to vector<16x24x128xf32>
    %88 = vector.extract_strided_slice %87 {offsets = [0, 0, 0], sizes = [16, 16, 128], strides = [1, 1, 1]} : vector<16x24x128xf32> to vector<16x16x128xf32>
    %89 = arith.truncf %88 : vector<16x16x128xf32> to vector<16x16x128xbf16>
    %c0_48 = arith.constant 0 : index
    %c0_49 = arith.constant 0 : index
    %c0_50 = arith.constant 0 : index
    %c0_51 = arith.constant 0 : index
    %90 = vector.load %arg6[%c0_48, %c0_49, %c0_50, %c0_51] : memref<1x16x16x128xbf16, #tpu.memory_space<vmem>>, vector<1x16x16x128xbf16>
    %91 = vector.shape_cast %90 : vector<1x16x16x128xbf16> to vector<16x16x128xbf16>
    %92 = vector.shape_cast %89 : vector<16x16x128xbf16> to vector<1x16x16x128xbf16>
    tpu.vector_store %arg6[%c0_48, %c0_49, %c0_50, %c0_51], %92 {strides = array<i32>} : memref<1x16x16x128xbf16, #tpu.memory_space<vmem>>, vector<1x16x16x128xbf16>,
    return
  }
  func.func @transform_1(%arg0: i32, %arg1: i32, %arg2: i32) -> (i32, i32, i32) {
    %c0_i32 = arith.constant 0 : i32
    %c0_i32_0 = arith.constant 0 : i32
    %c0_i32_1 = arith.constant 0 : i32
    return %c0_i32, %c0_i32_0, %arg2 : i32, i32, i32
  }
  func.func @transform_2(%arg0: i32, %arg1: i32, %arg2: i32) -> (i32, i32) {
    %c0_i32 = arith.constant 0 : i32
    %c0_i32_0 = arith.constant 0 : i32
    return %c0_i32, %arg2 : i32, i32
  }
  func.func @transform_3(%arg0: i32, %arg1: i32, %arg2: i32) -> (i32, i32, i32, i32) {
    %c0_i32 = arith.constant 0 : i32
    %c0_i32_0 = arith.constant 0 : i32
    return %arg0, %arg1, %c0_i32, %arg2 : i32, i32, i32, i32
  }
}

</mosaic_0001>

<bundles_post_ra>
// kernel: tpu_custom_call.1
= control target key start
LH: loop header
LB: loop body
LE: loop exit
PB: predicated region body
PF: predicated region fallthrough
CT: control target
= control target key end

     0   :  { %8 = vsyncpa [#allocation5], 0  ;;  %s6575_s0 = inlined_call_operand.hbm [shape: bf16[2,456,128], index: 0, kind: input, shape index: {}]   ;;  %s6576_s1 = inlined_call_operand.hbm [shape: bf16[9,128,128], index: 1, kind: input, shape index: {}]   ;;  %s6577_s2 = inlined_call_operand.vmem [shape: f32[1,128], index: 2, kind: input, shape index: {}]   ;;  %s6578_s3 = inlined_call_operand.hbm [shape: bf16[2,16,16,128], index: 3, kind: output, shape index: {}]  }
   0x1   :  { %9 = vsyncpa [#allocation6], 0 }
   0x2   :  { %11 = vsyncpa [#allocation6 + $0x1], 0  ;;  %s5834_s12 = smov 0   ;;  %s5836_s13 = smov 0  }
   0x3   :  { %s5838_s14 = smov 0   ;;  %s5840_s15 = smov 0  }
   0x4   :  { %s5842_s16 = smov 0   ;;  %s5844_s17 = smov 0  }
   0x5 LB: > { %s4329_s18 = sadd.s32 4294967295, %s5806_s17   ;;  %s4330_s19 = sadd.s32 4294967294, %s5806_s17   ;;  %s5806_s17 = sphi %s5844_s17, %s17_s17   ;;  %s5802_s16 = sphi %s5842_s16, %s6585_s16   ;;  %s5798_s15 = sphi %s5840_s15, %s6584_s15   ;;  %s5794_s14 = sphi %s5838_s14, %s6583_s14   ;;  %s5790_s13 = sphi %s5836_s13, %s6582_s13   ;;  %s5786_s12 = sphi %s5834_s12, %s6581_s12  }
   0x6   : > { %s36_s20 = sadd.s32 1, %s5802_s16  ;;  %s99_s21 = sadd.s32 1, %s5794_s14 }
   0x7   : > { %p38_p0 = scmp.ge.s32.totalorder %s36_s20, 2  ;;  %p109_p1 = scmp.ne.s32.totalorder %s5794_s14, %s5790_s13 }
   0x8   : > { %p110_p2 = scmp.eq.s32.totalorder %s4329_s18, 1  ;;  %p115_p3 = scmp.ne.s32.totalorder %s5790_s13, %s5786_s12 }
   0x9   : > { %s6587_s20 = smov (%p38_p0, %s36_s20), 0  ;;  %p116_p5 = scmp.eq.s32.totalorder %s4330_s19, 1 }
   0xa   : > { %p5874_p4 = por %p110_p2, %p109_p1  ;;  %s92_s23 = ssub.s32 %s5802_s16, %s6587_s20 }
   0xb   : > { %p4331_p6 = scmp.ge.s32.totalorder %s5806_s17, 1  ;;  %p97_p7 = scmp.eq.s32.totalorder %s92_s23, 0 }
   0xc   : > { %p5881_p8 = por %p116_p5, %p115_p3  ;;  %p123_p9 = scmp.lt.s32.totalorder %s5806_s17, 3 }
   0xd   : > { %s5887_s25 = scalar_select %p97_p7, %s5794_s14, %s99_s21  }
   0xe   : > { %p124_p10 = pnand %p4331_p6, %p123_p9  ;;  %p5443_p11 = scmp.eq.s32.totalorder %s4329_s18, 0 }
   0xf   : > { %s136_s28 = sshll.u32 %s6576_s1, 4  ;;  %s5808_s29 = smov [#allocation4]   ;;  %s137_s28 = int_to_ptr.hbm [resolvable:$true] %s136_s28 }
  0x10   : > { %p5435_p12 = pneg %p124_p10  ;;  %s138_s30 = sshll.u32 %s5808_s29, 4  ;;  %s139_s30 = int_to_ptr.vmem [resolvable:$true] %s138_s30 }
  0x11   : > { %s5809_s4 = smov 64   ;;  %s5810_s5 = smov 4  }
  0x12   : > { %p5436_p13 = pnand %p5443_p11, %p5435_p12  ;;  %160 = sbr.rel (%p124_p10) target bundleno = 1088 (0x440), region = 28 }
  0x14   : > { %5438 = dma.hbm_to_vmem [thread:$0]  (!%p5436_p13), %s137_s28, 9216, %s139_s30, [#allocation5], %s5809_s4, %s5809_s4, %s5810_s5  }
  0x17   : > { %5775 = dma.done.wait (%p5443_p11), [#allocation5], 9216  }
  0x18   : > { %5777 = vsyncadd (%p5443_p11), [#allocation5], 4294958080  ;;  %s178_s6 = sand.u32 1, %s5790_s13   ;;  %s5102_s7 = smul.u32 228, %s5798_s15 }
  0x19   : > { %s4336_s8 = sshll.u32 %s178_s6, 7  ;;  %s5811_s19 = smov [#allocation2]  }
  0x1a   : > { %s207_s11 = scalar_lea.hbm %s6575_s0, %s5102_s7  ;;  %s217_s21 = sshll.u32 %s5811_s19, 4  ;;  %s218_s21 = int_to_ptr.vmem [resolvable:$true] %s217_s21 }
  0x1b   : > { %s215_s18 = sshll.u32 %s207_s11, 4  ;;  %s5702_s29 = scalar_lea.hbm %s6575_s0, 456  ;;  %s216_s18 = int_to_ptr.hbm [resolvable:$true] %s215_s18 }
  0x1c   : > { %s5698_s23 = sshra.s32 %s216_s18, 4  ;;  %s5699_s23 = int_to_ptr.hbm [resolvable:$true] %s5698_s23 }
  0x1d   : > { %s5700_s26 = scalar_lea.hbm %s5699_s23, 228  ;;  %p5703_p1 = scmp.lt.s32.totalorder %s5699_s23, %s6575_s0 }
  0x1e   : > { %p5701_p0 = scmp.ne.s32.totalorder %s5699_s23, %s5700_s26  ;;  %p5704_p2 = scmp.lt.s32.totalorder %s5702_s29, %s5700_s26 }
  0x20   : > { %p5705_p3 = por %p5704_p2, %p5703_p1 }
  0x22   : > { %p5706_p5 = pnand %p5705_p3, %p5701_p0 }
  0x24   : > { %5709 = shalt.err (!%p5706_p5)  }
  0x25   : > { %220 = dma.hbm_to_vmem [thread:$0]  %s216_s18, 3648, %s218_s21, [#allocation3] }
  0x26   : > { %s5905_s5 = scalar_lea.vmem [#allocation7], %s4336_s8 }
  0x27   : > { %5778 = dma.done.wait [#allocation3], 3648 }
  0x28   : > { %5779 = vsyncadd [#allocation3], 4294963648  ;;  %v5143_v0 = vld [vmem:[#allocation4 + $0x78] sm:$0xff]  ;;  %v5142_v1 = vld [vmem:[#allocation4 + $0x70] sm:$0xff]  ;;  %vm464_vm0 = vsmask.f32 7424 }
  0x29   : > { %5405 = vmatpush.bf16.msra.mxu1 %v5143_v0  ;;  %5406 = vmatpush.bf16.msra.mxu2 %v5143_v0  ;;  %v5141_v2 = vld [vmem:[#allocation4 + $0x68] sm:$0xff]  ;;  %v5140_v3 = vld [vmem:[#allocation4 + $0x60] sm:$0xff]  ;;  %v5139_v4 = vld [vmem:[#allocation4 + $0x58] sm:$0xff]  ;;  %vm1052_vm1 = vcmask 1046528   ;;  %s5294_s11 = sshll.u32 %s5798_s15, 7  ;;  %s4210_s23 = sshll.u32 %s5905_s5, 4  ;;  %s4211_s23 = int_to_ptr.vmem [resolvable:$true] %s4210_s23 }
  0x2a   : > { %5407 = vmatpush.bf16.msra.mxu3 %v5143_v0  ;;  %733 = vmatpush.bf16.msra.mxu0 %v5143_v0  ;;  %v5907_v5 = vld [vmem:[#allocation2 + $0x30] sm:$0xff]  ;;  %v5116_v6 = vld [vmem:[#allocation2 + $0x60] sm:$0xff]  ;;  %v5911_v9 = vld [vmem:[#allocation2 + $0x38] sm:$0xff]  ;;  %s4209_s21 = scalar_lea.hbm %s6578_s3, %s5294_s11  ;;  %s4194_s27 = scalar_lea.sflag [#allocation6], %s178_s6 }
  0x2b   : > { %v5122_v7 = vld [vmem:[#allocation2 + $0x90] sm:$0xff]  ;;  %v5909_v8 = vld [vmem:[#allocation2] sm:$0xff]   ;;  %v5913_v10 = vld [vmem:[#allocation2 + $0x68] sm:$0xff]  ;;  %v513_v12 = vshll.u32 %v5907_v5, 16  ;;  %v561_v13 = vshll.u32 %v5116_v6, 16  ;;  %v517_v18 = vshrl.u32 %v5907_v5, 16 }
  0x2c   : > { %v5138_v11 = vld [vmem:[#allocation4 + $0x50] sm:$0xff]  ;;  %v609_v15 = vshll.u32 %v5122_v7, 16  ;;  %v5918_v16 = vld [vmem:[#allocation2 + $0x8] sm:$0xff]  ;;  %v468_v17 = vshll.u32 %v5909_v8, 16  ;;  %v521_v19 = vshll.u32 %v5911_v9, 16  ;;  %v565_v20 = vshrl.u32 %v5116_v6, 16 }
  0x2d   : > { %5408 = vmatpush.bf16.msra.mxu1 %v5142_v1  ;;  %5409 = vmatpush.bf16.msra.mxu2 %v5142_v1  ;;  %v5916_v14 = vld [vmem:[#allocation2 + $0x98] sm:$0xff]  ;;  %v569_v21 = vshll.u32 %v5913_v10, 16  ;;  %v5137_v22 = vld [vmem:[#allocation4 + $0x48] sm:$0xff]  ;;  %v5924_v23 = vrot.slane %v513_v12, 1  ;;  %v5926_v24 = vrot.slane %v561_v13, 1  ;;  %v613_v25 = vshrl.u32 %v5122_v7, 16 }
  0x2e   : > { %5410 = vmatpush.bf16.msra.mxu3 %v5142_v1  ;;  %734 = vmatpush.bf16.msra.mxu0 %v5142_v1  ;;  %v617_v26 = vshll.u32 %v5916_v14, 16  ;;  %v5929_v27 = vrot.slane %v609_v15, 1  ;;  %v466_v28 = vshrl.u32 %v5909_v8, 16  ;;  %v470_v29 = vrot.slane %v468_v17, 1  ;;  %v5136_v31 = vld [vmem:[#allocation4 + $0x40] sm:$0xff]  ;;  %v5151_v40 = vld [vmem:[#allocation4 + $0xb8] sm:$0xff] }
  0x2f   : > { %v473_v30 = vshll.u32 %v5918_v16, 16  ;;  %v519_v32 = vor.u32 %v517_v18, %v5924_v23  ;;  %v523_v33 = vrot.slane %v521_v19, 1  ;;  %v567_v34 = vor.u32 %v565_v20, %v5926_v24  ;;  %v5183_v41 = vld [vmem:[#allocation4 + $0xf8] sm:$0xff]  ;;  %v5150_v48 = vld [vmem:[#allocation4 + $0xb0] sm:$0xff]  ;;  %v5942_v51 = vld [vmem:[#allocation2 + $0x70] sm:$0xff]  ;;  %s4212_s26 = sshll.u32 %s4209_s21, 4  ;;  %s4213_s26 = int_to_ptr.hbm [resolvable:$true] %s4212_s26 }
  0x30   : > { %v571_v35 = vrot.slane %v569_v21, 1  ;;  %v615_v36 = vor.u32 %v613_v25, %v5929_v27  ;;  %v619_v37 = vrot.slane %v617_v26, 1  ;;  %v471_v38 = vor.u32 %v470_v29, %v466_v28  ;;  %v5135_v46 = vld [vmem:[#allocation4 + $0x38] sm:$0xff]  ;;  %v5182_v49 = vld [vmem:[#allocation4 + $0xf0] sm:$0xff]  ;;  %v5946_v54 = vld [vmem:[#allocation2 + $0x10] sm:$0xff]  ;;  %s5736_s28 = sshra.s32 %s4213_s26, 4  ;;  %s5737_s28 = int_to_ptr.hbm [resolvable:$true] %s5736_s28 }
  0x31   : > { %5411 = vmatpush.bf16.msra.mxu1 %v5141_v2  ;;  %5412 = vmatpush.bf16.msra.mxu2 %v5141_v2  ;;  %v475_v39 = vrot.slane %v473_v30, 1  ;;  %v524_v42 = vsel %vm464_vm0, %v519_v32, %v523_v33  ;;  %v5214_v47 = vld [vmem:[#allocation4 + $0x138] sm:$0xff]  ;;  %v5134_v53 = vld [vmem:[#allocation4 + $0x30] sm:$0xff]  ;;  %v5149_v56 = vld [vmem:[#allocation4 + $0xa8] sm:$0xff]  ;;  %v525_v58 = vshrl.u32 %v5911_v9, 16  ;;  %v573_v60 = vshrl.u32 %v5913_v10, 16  ;;  %p5743_p10 = scmp.lt.s32.totalorder %s5737_s28, %s6578_s3 }
  0x32   : > { %5413 = vmatpush.bf16.msra.mxu3 %v5141_v2  ;;  %735 = vmatpush.bf16.msra.mxu0 %v5141_v2  ;;  %v572_v43 = vsel %vm464_vm0, %v567_v34, %v571_v35  ;;  %v620_v44 = vsel %vm464_vm0, %v615_v36, %v619_v37  ;;  %v5940_v50 = vld [vmem:[#allocation2 + $0x40] sm:$0xff]  ;;  %v5213_v55 = vld [vmem:[#allocation4 + $0x130] sm:$0xff]  ;;  %v5181_v57 = vld [vmem:[#allocation4 + $0xe8] sm:$0xff]  ;;  %v577_v61 = vshll.u32 %v5942_v51, 16  ;;  %v621_v62 = vshrl.u32 %v5916_v14, 16  ;;  %s5738_s15 = scalar_lea.hbm %s5737_s28, 128 }
  0x33   : > { %v476_v45 = vsel %vm464_vm0, %v471_v38, %v475_v39  ;;  %v5944_v52 = vld [vmem:[#allocation2 + $0xa0] sm:$0xff]  ;;  %v529_v59 = vshll.u32 %v5940_v50, 16  ;;  %v477_v0 = vshrl.u32 %v5918_v16, 16  ;;  %v481_v1 = vshll.u32 %v5946_v54, 16  ;;  %v5133_v2 = vld [vmem:[#allocation4 + $0x28] sm:$0xff]  ;;  %v5180_v6 = vld [vmem:[#allocation4 + $0xe0] sm:$0xff]  ;;  %p5739_p6 = scmp.ne.s32.totalorder %s5737_s28, %s5738_s15 }
  0x34   : > { %v625_v63 = vshll.u32 %v5944_v52, 16  ;;  %v527_v7 = vor.u32 %v525_v58, %v523_v33  ;;  %v579_v12 = vrot.slane %v577_v61, 1  ;;  %v623_v13 = vor.u32 %v621_v62, %v619_v37  ;;  %v5132_v18 = vld [vmem:[#allocation4 + $0x20] sm:$0xff]  ;;  %v5962_v28 = vld [vmem:[#allocation2 + $0x78] sm:$0xff]  ;;  %v5147_v29 = vld [vmem:[#allocation4 + $0x98] sm:$0xff]  ;;  %s5742_s4 = scalar_lea.hbm %s6578_s3, 256 }
  0x35   : > { %5414 = vmatpush.bf16.msra.mxu1 %v5140_v3  ;;  %5415 = vmatpush.bf16.msra.mxu2 %v5140_v3  ;;  %v531_v10 = vrot.slane %v529_v59, 1  ;;  %v479_v15 = vor.u32 %v477_v0, %v475_v39  ;;  %v483_v17 = vrot.slane %v481_v1, 1  ;;  %v5211_v19 = vld [vmem:[#allocation4 + $0x120] sm:$0xff]  ;;  %v5179_v30 = vld [vmem:[#allocation4 + $0xd8] sm:$0xff]  ;;  %v5964_v33 = vld [vmem:[#allocation2 + $0x18] sm:$0xff]  ;;  %v533_v37 = vshrl.u32 %v5940_v50, 16  ;;  %p5740_p7 = pnand %p5739_p6, %p5874_p4  ;;  %p5744_p11 = scmp.lt.s32.totalorder %s5742_s4, %s5738_s15 }
  0x36   : > { %5416 = vmatpush.bf16.msra.mxu3 %v5140_v3  ;;  %736 = vmatpush.bf16.msra.mxu0 %v5140_v3  ;;  %v5212_v3 = vld [vmem:[#allocation4 + $0x128] sm:$0xff]  ;;  %v627_v14 = vrot.slane %v625_v63, 1  ;;  %v5960_v26 = vld [vmem:[#allocation2 + $0x48] sm:$0xff]  ;;  %v5210_v34 = vld [vmem:[#allocation4 + $0x118] sm:$0xff]  ;;  %v581_v39 = vshrl.u32 %v5942_v51, 16 }
  0x37   : > { %v532_v20 = vsel %vm464_vm0, %v527_v7, %v531_v10  ;;  %v484_v25 = vsel %vm464_vm0, %v479_v15, %v483_v17  ;;  %v5125_v32 = vld [vmem:[#allocation2 + $0xa8] sm:$0xff]  ;;  %v5178_v36 = vld [vmem:[#allocation4 + $0xd0] sm:$0xff]  ;;  %v537_v38 = vshll.u32 %v5960_v26, 16  ;;  %v5977_v59 = vld [vmem:[#allocation2 + $0x50] sm:$0xff]  ;;  %v589_v7 = vshrl.u32 %v5962_v28, 16  ;;  %p5741_p9 = pneg %p5740_p7  ;;  %p5745_p12 = por %p5744_p11, %p5743_p10 }
  0x38   : > { %v5130_v61 = vld [vmem:[#allocation4 + $0x10] sm:$0xff]  ;;  %v5145_v63 = vld [vmem:[#allocation4 + $0x88] sm:$0xff]  ;;  %v5981_v1 = vld [vmem:[#allocation2 + $0x20] sm:$0xff] }
  0x39   : > { %5417 = vmatpush.bf16.msra.mxu1 %v5139_v4  ;;  %5418 = vmatpush.bf16.msra.mxu2 %v5139_v4  ;;  %v5209_v62 = vld [vmem:[#allocation4 + $0x110] sm:$0xff]  ;;  %v5126_v0 = vld [vmem:[#allocation2 + $0xb0] sm:$0xff]  ;;  %p5746_p13 = pnand %p5745_p12, %p5741_p9 }
  0x3a   : > { %5419 = vmatpush.bf16.msra.mxu3 %v5139_v4  ;;  %737 = vmatpush.bf16.msra.mxu0 %v5139_v4  ;;  %v5148_v4 = vld [vmem:[#allocation4 + $0xa0] sm:$0xff] }
  0x3d   : > { %5420 = vmatpush.bf16.msra.mxu1 %v5138_v11  ;;  %5421 = vmatpush.bf16.msra.mxu2 %v5138_v11 }
  0x3e   : > { %5422 = vmatpush.bf16.msra.mxu3 %v5138_v11  ;;  %738 = vmatpush.bf16.msra.mxu0 %v5138_v11  ;;  %v575_v11 = vor.u32 %v573_v60, %v571_v35  ;;  %v5146_v35 = vld [vmem:[#allocation4 + $0x90] sm:$0xff]  ;;  %v5979_v60 = vld [vmem:[#allocation2 + $0x80] sm:$0xff] }
  0x40   : > { %v580_v21 = vsel %vm464_vm0, %v575_v11, %v579_v12  ;;  %v637_v11 = vshrl.u32 %v5125_v32, 16 }
  0x41   : > { %5423 = vmatpush.bf16.msra.mxu1 %v5137_v22  ;;  %5424 = vmatpush.bf16.msra.mxu2 %v5137_v22 }
  0x42   : > { %5425 = vmatpush.bf16.msra.mxu3 %v5137_v22  ;;  %739 = vmatpush.bf16.msra.mxu0 %v5137_v22  ;;  %v628_v22 = vsel %vm464_vm0, %v623_v13, %v627_v14  ;;  %v493_v13 = vshrl.u32 %v5964_v33, 16 }
  0x45   : > { %5426 = vmatpush.bf16.msra.mxu1 %v5136_v31  ;;  %5427 = vmatpush.bf16.msra.mxu2 %v5136_v31 }
  0x46   : > { %5428 = vmatpush.bf16.msra.mxu3 %v5136_v31  ;;  %740 = vmatpush.bf16.msra.mxu0 %v5136_v31  ;;  %v5131_v31 = vld [vmem:[#allocation4 + $0x18] sm:$0xff] }
  0x48   : > { %767 = vmatmul.bf16.vlgmr.msra.gmra.mxu1 %v524_v42  ;;  %793 = vmatmul.bf16.vlgmr.msra.gmra.mxu2 %v572_v43  ;;  %v633_v42 = vshll.u32 %v5125_v32, 16  ;;  %v485_v43 = vshrl.u32 %v5946_v54, 16 }
  0x49   : > { %1174 = vmatpush.bf16.msrb.mxu2 %v5151_v40  ;;  %819 = vmatmul.bf16.vlgmr.msra.gmra.mxu3 %v620_v44  ;;  %v585_v40 = vshll.u32 %v5962_v28, 16  ;;  %v489_v44 = vshll.u32 %v5964_v33, 16 }
  0x4a   : > { %1576 = vmatpush.bf16.msrb.mxu3 %v5183_v41  ;;  %741 = vmatmul.bf16.vlgmr.msra.gmra.mxu0 %v476_v45  ;;  %v629_v41 = vshrl.u32 %v5944_v52, 16  ;;  %v535_v45 = vor.u32 %v533_v37, %v531_v10  ;;  %v593_v10 = vshll.u32 %v5979_v60, 16  ;;  %v5144_v37 = vld [vmem:[#allocation4 + $0x80] sm:$0xff] }
  0x4b   : > { %918 = vmatpush.bf16.msrb.mxu1 %v5135_v46  ;;  %2178 = vmatpush.bf16.msrb.mxu0 %v5214_v47  ;;  %v539_v46 = vrot.slane %v537_v38, 1  ;;  %v583_v47 = vor.u32 %v581_v39, %v579_v12  ;;  %v641_v12 = vshll.u32 %v5126_v0, 16  ;;  %v5176_v38 = vld [vmem:[#allocation4 + $0xc0] sm:$0xff]  ;;  %v5127_v39 = vld [vmem:[#allocation2 + $0xb8] sm:$0xff] }
  0x4d   : > { %1175 = vmatpush.bf16.msrb.mxu2 %v5150_v48  ;;  %v587_v48 = vrot.slane %v585_v40, 1  ;;  %v540_v51 = vsel %vm464_vm0, %v535_v45, %v539_v46  ;;  %v5997_v40 = vld [vmem:[#allocation2 + $0x28] sm:$0xff]  ;;  %v597_v45 = vshrl.u32 %v5979_v60, 16 }
  0x4e   : > { %1577 = vmatpush.bf16.msrb.mxu3 %v5182_v49  ;;  %v631_v49 = vor.u32 %v629_v41, %v627_v14  ;;  %v497_v14 = vshll.u32 %v5981_v1, 16  ;;  %v5128_v41 = vld [vmem:[#allocation4] sm:$0xff] }
  0x4f   : > { %919 = vmatpush.bf16.msrb.mxu1 %v5134_v53  ;;  %2179 = vmatpush.bf16.msrb.mxu0 %v5213_v55  ;;  %v635_v53 = vrot.slane %v633_v42, 1  ;;  %v487_v55 = vor.u32 %v485_v43, %v483_v17  ;;  %v5207_v42 = vld [vmem:[#allocation4 + $0x100] sm:$0xff]  ;;  %v549_v43 = vshrl.u32 %v5977_v59, 16 }
  0x51   : > { %1176 = vmatpush.bf16.msrb.mxu2 %v5149_v56  ;;  %v491_v56 = vrot.slane %v489_v44, 1  ;;  %v636_v52 = vsel %vm464_vm0, %v631_v49, %v635_v53  ;;  %v501_v49 = vshrl.u32 %v5981_v1, 16 }
  0x52   : > { %1578 = vmatpush.bf16.msrb.mxu3 %v5181_v57  ;;  %v588_v57 = vsel %vm464_vm0, %v583_v47, %v587_v48  ;;  %v645_v47 = vshrl.u32 %v5126_v0, 16 }
  0x53   : > { %920 = vmatpush.bf16.msrb.mxu1 %v5133_v2  ;;  %2180 = vmatpush.bf16.msrb.mxu0 %v5212_v3  ;;  %v492_v58 = vsel %vm464_vm0, %v487_v55, %v491_v56  ;;  %v5177_v2 = vld [vmem:[#allocation4 + $0xc8] sm:$0xff] }
  0x54   : > { %v5129_v3 = vld [vmem:[#allocation4 + $0x8] sm:$0xff] }
  0x55   : > { %1177 = vmatpush.bf16.msrb.mxu2 %v5148_v4  ;;  %v541_v4 = vshrl.u32 %v5960_v26, 16 }
  0x56   : > { %1579 = vmatpush.bf16.msrb.mxu3 %v5180_v6  ;;  %v545_v6 = vshll.u32 %v5977_v59, 16 }
  0x57   : > { %921 = vmatpush.bf16.msrb.mxu1 %v5132_v18  ;;  %2181 = vmatpush.bf16.msrb.mxu0 %v5211_v19  ;;  %v543_v15 = vor.u32 %v541_v4, %v539_v46  ;;  %v591_v18 = vor.u32 %v589_v7, %v587_v48  ;;  %v595_v19 = vrot.slane %v593_v10, 1  ;;  %v649_v48 = vshll.u32 %v5127_v39, 16  ;;  %v5254_v7 = vld [vmem:[#allocation4 + $0x1b8] sm:$0xff] }
  0x58   : > { %772 = vmatmul.bf16.gmra.mxu1 %v532_v20  ;;  %798 = vmatmul.bf16.gmra.mxu2 %v580_v21  ;;  %v547_v17 = vrot.slane %v545_v6, 1  ;;  %v639_v20 = vor.u32 %v637_v11, %v635_v53  ;;  %v643_v21 = vrot.slane %v641_v12, 1  ;;  %v505_v53 = vshll.u32 %v5997_v40, 16  ;;  %v5285_v10 = vld [vmem:[#allocation4 + $0x1f8] sm:$0xff] }
  0x59   : > { %824 = vmatmul.bf16.gmra.mxu3 %v628_v22  ;;  %1178 = vmatpush.bf16.msrb.mxu2 %v5147_v29  ;;  %v495_v22 = vor.u32 %v493_v13, %v491_v56  ;;  %v5222_v11 = vld [vmem:[#allocation4 + $0x178] sm:$0xff] }
  0x5a   : > { %746 = vmatmul.bf16.gmra.mxu0 %v484_v25  ;;  %1580 = vmatpush.bf16.msrb.mxu3 %v5179_v30  ;;  %v499_v25 = vrot.slane %v497_v14, 1  ;;  %v548_v29 = vsel %vm464_vm0, %v543_v15, %v547_v17  ;;  %v596_v30 = vsel %vm464_vm0, %v591_v18, %v595_v19  ;;  %v551_v55 = vor.u32 %v549_v43, %v547_v17  ;;  %v5293_v13 = vld [vmem:[#allocation4 + $0x238] sm:$0xff] }
  0x5b   : > { %922 = vmatpush.bf16.msrb.mxu1 %v5131_v31  ;;  %2182 = vmatpush.bf16.msrb.mxu0 %v5210_v34  ;;  %v644_v31 = vsel %vm464_vm0, %v639_v20, %v643_v21  ;;  %v5993_v34 = vld [vmem:[#allocation2 + $0x58] sm:$0xff]  ;;  %v653_v17 = vshrl.u32 %v5127_v39, 16  ;;  %v1721_v20 = vld [vmem:[#allocation2 + $0xc] sm:$0xff]   ;;  %v5383_v39 = vld [vmem:[#allocation2] sm:$0xf0] }
  0x5c   : > { %v500_v32 = vsel %vm464_vm0, %v495_v22, %v499_v25  ;;  %v553_v44 = vshll.u32 %v5993_v34, 16  ;;  %v557_v14 = vshrl.u32 %v5993_v34, 16  ;;  %v1913_v43 = vshll.u32 %v1721_v20, 16 }
  0x5d   : > { %1179 = vmatpush.bf16.msrb.mxu2 %v5146_v35  ;;  %v5995_v35 = vld [vmem:[#allocation2 + $0x88] sm:$0xff] }
  0x5e   : > { %1581 = vmatpush.bf16.msrb.mxu3 %v5178_v36  ;;  %v5208_v36 = vld [vmem:[#allocation4 + $0x108] sm:$0xff]  ;;  %v601_v46 = vshll.u32 %v5995_v35, 16  ;;  %v555_v56 = vrot.slane %v553_v44, 1  ;;  %v605_v15 = vshrl.u32 %v5995_v35, 16 }
  0x5f   : > { %923 = vmatpush.bf16.msrb.mxu1 %v5130_v61  ;;  %2183 = vmatpush.bf16.msrb.mxu0 %v5209_v62  ;;  %v503_v61 = vor.u32 %v501_v49, %v499_v25  ;;  %v507_v62 = vrot.slane %v505_v53, 1  ;;  %v5152_v53 = vld [vmem:[#allocation2 + $0xc] sm:$0xff] }
  0x60   : > { %v559_v22 = vor.u32 %v557_v14, %v555_v56 }
  0x61   : > { %1180 = vmatpush.bf16.msrb.mxu2 %v5145_v63  ;;  %v323_v63 = vld [vmem:[#allocation2 + $0xc0] sm:$0x1]  ;;  %v508_v4 = vsel %vm464_vm0, %v503_v61, %v507_v62 }
  0x62   : > { %1582 = vmatpush.bf16.msrb.mxu3 %v5177_v2  ;;  %v556_v2 = vsel %vm464_vm0, %v551_v55, %v555_v56  ;;  %v438_v6 = vunpack.c.l.b16 %v323_v63  ;;  %v5185_v56 = vld [vmem:[#allocation2 + $0x1c] sm:$0xff]  ;;  %v5153_v63 = vld [vmem:[#allocation2 + $0x14] sm:$0xff] }
  0x63   : > { %924 = vmatpush.bf16.msrb.mxu1 %v5129_v3  ;;  %2184 = vmatpush.bf16.msrb.mxu0 %v5208_v36 }
  0x64   : > { %v6009_v12 = vpack.c.b16 %v438_v6, %v438_v6  ;;  %v1930_v6 = vshrl.u32 %v5185_v56, 16 }
  0x65   : > { %1181 = vmatpush.bf16.msrb.mxu2 %v5144_v37 }
  0x66   : > { %1583 = vmatpush.bf16.msrb.mxu3 %v5176_v38  ;;  %v657_v18 = vshll.u32 %v6009_v12, 16 }
  0x67   : > { %925 = vmatpush.bf16.msrb.mxu1 %v5128_v41  ;;  %2185 = vmatpush.bf16.msrb.mxu0 %v5207_v42  ;;  %v5384_v41 = vld [vmem:[#allocation2] sm:$0xe]  ;;  %v5184_v42 = vld [vmem:[#allocation2 + $0x14] sm:$0xff] }
  0x68   : > { %776 = vmatmul.bf16.gmra.mxu1 %v540_v51  ;;  %802 = vmatmul.bf16.gmra.mxu2 %v588_v57  ;;  %v599_v51 = vor.u32 %v597_v45, %v595_v19  ;;  %v603_v57 = vrot.slane %v601_v46, 1  ;;  %v509_v19 = vshrl.u32 %v5997_v40, 16  ;;  %v5385_v44 = vor.u32 %v5384_v41, %v5383_v39 }
  0x69   : > { %828 = vmatmul.bf16.gmra.mxu3 %v636_v52  ;;  %v647_v52 = vor.u32 %v645_v47, %v643_v21  ;;  %2867 = vmatpush.bf16.msra.mxu2 %v5254_v7  ;;  %v6015_v21 = vld [vmem:[#allocation2 + $0xc] sm:$0xf0]  ;;  %v1911_v45 = vshrl.u32 %v1721_v20, 16  ;;  %v1915_v46 = vrot.slane %v1913_v43, 1  ;;  %v5155_v43 = vld [vmem:[#allocation2 + $0x24] sm:$0xff] }
  0x6a   : > { %750 = vmatmul.bf16.gmra.mxu0 %v492_v58  ;;  %v651_v58 = vrot.slane %v649_v48, 1  ;;  %v604_v3 = vsel %vm464_vm0, %v599_v51, %v603_v57  ;;  %3469 = vmatpush.bf16.msra.mxu3 %v5285_v10  ;;  %v607_v25 = vor.u32 %v605_v15, %v603_v57  ;;  %v1053_v47 = vrot.slane %v5385_v44, 1  ;;  %v5292_v10 = vld [vmem:[#allocation4 + $0x230] sm:$0xff]  ;;  %v5187_v20 = vld [vmem:[#allocation2 + $0x2c] sm:$0xff] }
  0x6b   : > { %2465 = vmatpush.bf16.msra.mxu1 %v5222_v11  ;;  %3756 = vmatpush.bf16.msra.mxu0 %v5293_v13  ;;  %v1916_v48 = vor.u32 %v1915_v46, %v1911_v45  ;;  %v1922_v51 = vshrl.u32 %v5184_v42, 16  ;;  %v1926_v57 = vshll.u32 %v5185_v56, 16  ;;  %v1058_v11 = vrot.slane %v5964_v33, 1  ;;  %v5188_v46 = vld [vmem:[#allocation2 + $0x34] sm:$0xff] }
  0x6c   : > { %v652_v0 = vsel %vm464_vm0, %v647_v52, %v651_v58  ;;  %v612_v36 = vsel %vm464_vm0, %v607_v25, %v5929_v27  ;;  %v1054_v27 = vrot.slane %v5918_v16, 1  ;;  %v1056_v52 = vrot.slane %v5946_v54, 1 }
  0x6d   : > { %v1928_v61 = vrot.slane %v1926_v57, 1 }
  0x6f   : > { %3757 = vmatpush.bf16.msra.mxu0 %v5292_v10  ;;  %v1932_v13 = vor.u32 %v1930_v6, %v1928_v61  ;;  %v1954_v10 = vshrl.u32 %v5188_v46, 16 }
  0x78   : > { %780 = vmatmul.bf16.gmra.mxu1 %v548_v29  ;;  %806 = vmatmul.bf16.gmra.mxu2 %v596_v30  ;;  %v655_v29 = vor.u32 %v653_v17, %v651_v58  ;;  %v659_v30 = vrot.slane %v657_v18, 1  ;;  %v5154_v17 = vld [vmem:[#allocation2 + $0x1c] sm:$0xff] }
  0x79   : > { %832 = vmatmul.bf16.gmra.mxu3 %v644_v31  ;;  %v511_v31 = vor.u32 %v509_v19, %v507_v62  ;;  %v1057_v62 = vsel %vm1052_vm1, %v1054_v27, %v1056_v52 }
  0x7a   : > { %754 = vmatmul.bf16.gmra.mxu0 %v500_v32  ;;  %v564_v32 = vsel %vm464_vm0, %v559_v22, %v5926_v24  ;;  %v660_v37 = vsel %vm464_vm0, %v655_v29, %v659_v30  ;;  %v1918_v24 = vshll.u32 %v5184_v42, 16 }
  0x7b   : > { %v516_v38 = vsel %vm464_vm0, %v511_v31, %v5924_v23  ;;  %v1055_v23 = vsel %vm1052_vm1, %v1053_v47, %v1054_v27 }
  0x7c   : > { %v1920_v49 = vrot.slane %v1918_v24, 1 }
  0x7e   : > { %v1921_v55 = vsel %vm464_vm0, %v1916_v48, %v1920_v49  ;;  %v1924_v58 = vor.u32 %v1922_v51, %v1920_v49  ;;  %v1946_v49 = vshrl.u32 %v5187_v20, 16 }
  0x88   : > { %785 = vmatmul.bf16.gmra.mxu1 %v556_v2  ;;  %811 = vmatmul.bf16.gmra.mxu2 %v604_v3  ;;  %v1929_v2 = vsel %vm464_vm0, %v1924_v58, %v1928_v61  ;;  %v5284_v3 = vld [vmem:[#allocation4 + $0x1f0] sm:$0xff]  ;;  %v5156_v58 = vld [vmem:[#allocation2 + $0x2c] sm:$0xff] }
  0x89   : > { %837 = vmatmul.bf16.gmra.mxu3 %v652_v0  ;;  %v5186_v0 = vld [vmem:[#allocation2 + $0x24] sm:$0xff] }
  0x8a   : > { %759 = vmatmul.bf16.gmra.mxu0 %v508_v4  ;;  %3470 = vmatpush.bf16.msra.mxu3 %v5284_v3  ;;  %v5221_v4 = vld [vmem:[#allocation4 + $0x170] sm:$0xff]  ;;  %v1934_v7 = vshll.u32 %v5186_v0, 16  ;;  %v1938_v31 = vshrl.u32 %v5186_v0, 16 }
  0x8b   : > { %2466 = vmatpush.bf16.msra.mxu1 %v5221_v4  ;;  %v5220_v4 = vld [vmem:[#allocation4 + $0x168] sm:$0xff] }
  0x8c   : > { %v1936_v14 = vrot.slane %v1934_v7, 1 }
  0x8e   : > { %v1937_v19 = vsel %vm464_vm0, %v1932_v13, %v1936_v14  ;;  %v5291_v13 = vld [vmem:[#allocation4 + $0x228] sm:$0xff] }
  0x8f   : > { %2467 = vmatpush.bf16.msra.mxu1 %v5220_v4  ;;  %3758 = vmatpush.bf16.msra.mxu0 %v5291_v13 }
  0x98   : > { %789 = vmatmul.bf16.gmra.mxu1 %v564_v32  ;;  %815 = vmatmul.bf16.gmra.mxu2 %v612_v36  ;;  %v1942_v32 = vshll.u32 %v5187_v20, 16  ;;  %v1060_v36 = vrot.slane %v5981_v1, 1 }
  0x99   : > { %841 = vmatmul.bf16.gmra.mxu3 %v660_v37  ;;  %v1940_v37 = vor.u32 %v1938_v31, %v1936_v14 }
  0x9a   : > { %763 = vmatmul.bf16.gmra.mxu0 %v516_v38  ;;  %v1944_v38 = vrot.slane %v1942_v32, 1  ;;  %v1061_v42 = vsel %vm1052_vm1, %v1058_v11, %v1060_v36  ;;  %v5157_v32 = vld [vmem:[#allocation2 + $0x34] sm:$0xff] }
  0x9c   : > { %v1945_v45 = vsel %vm464_vm0, %v1940_v37, %v1944_v38 }
  0xa8   : > { %926 = vmatmul.bf16.vlgmr.msrb.gmra.mxu1 %v5909_v8  ;;  %1182 = vmatmul.bf16.vlgmr.msrb.gmra.mxu2 %v1055_v23  ;;  %v5253_v8 = vld [vmem:[#allocation4 + $0x1b0] sm:$0xff]  ;;  %v1950_v23 = vshll.u32 %v5188_v46, 16 }
  0xa9   : > { %1584 = vmatmul.bf16.vlgmr.msrb.gmra.mxu3 %v5152_v53  ;;  %2868 = vmatpush.bf16.msra.mxu2 %v5253_v8  ;;  %v1062_v53 = vrot.slane %v5997_v40, 1  ;;  %v5189_v8 = vld [vmem:[#allocation2 + $0x3c] sm:$0xff] }
  0xaa   : > { %2186 = vmatmul.bf16.vlgmr.msrb.gmra.mxu0 %v1921_v55  ;;  %v1948_v55 = vor.u32 %v1946_v49, %v1944_v38  ;;  %v1952_v56 = vrot.slane %v1950_v23, 1  ;;  %v5190_v38 = vld [vmem:[#allocation2 + $0x44] sm:$0xff] }
  0xab   : > { %v1966_v46 = vshll.u32 %v5190_v38, 16 }
  0xac   : > { %v1956_v14 = vor.u32 %v1954_v10, %v1952_v56  ;;  %v1068_v10 = vrot.slane %v5940_v50, 1 }
  0xad   : > { %v1968_v49 = vrot.slane %v1966_v46, 1 }
  0xb8   : > { %931 = vmatmul.bf16.gmra.mxu1 %v5918_v16  ;;  %1187 = vmatmul.bf16.gmra.mxu2 %v1057_v62  ;;  %v1059_v16 = vsel %vm1052_vm1, %v1056_v52, %v1058_v11  ;;  %v1063_v52 = vsel %vm1052_vm1, %v1060_v36, %v1062_v53  ;;  %v1953_v62 = vsel %vm464_vm0, %v1948_v55, %v1952_v56  ;;  %v1958_v11 = vshll.u32 %v5189_v8, 16  ;;  %v5158_v56 = vld [vmem:[#allocation2 + $0x3c] sm:$0xff] }
  0xb9   : > { %1589 = vmatmul.bf16.gmra.mxu3 %v5153_v63  ;;  %v5252_v63 = vld [vmem:[#allocation4 + $0x1a8] sm:$0xff] }
  0xba   : > { %2191 = vmatmul.bf16.gmra.mxu0 %v1929_v2  ;;  %v5283_v2 = vld [vmem:[#allocation4 + $0x1e8] sm:$0xff]  ;;  %2869 = vmatpush.bf16.msra.mxu2 %v5252_v63 }
  0xbb   : > { %3471 = vmatpush.bf16.msra.mxu3 %v5283_v2 }
  0xc5   : > { %v6033_v15 = vpop.f32.mrf.mxu1 }
  0xc7   : > { %v6036_v18 = vpop.f32.mrf.mxu0 }
  0xc8   : > { %935 = vmatmul.bf16.gmra.mxu1 %v5946_v54  ;;  %1191 = vmatmul.bf16.gmra.mxu2 %v1059_v16  ;;  %v1960_v16 = vrot.slane %v1958_v11, 1 }
  0xc9   : > { %1593 = vmatmul.bf16.gmra.mxu3 %v5154_v17 }
  0xca   : > { %2195 = vmatmul.bf16.gmra.mxu0 %v1937_v19  ;;  %v1961_v37 = vsel %vm464_vm0, %v1956_v14, %v1960_v16 }
  0xcb   : > { %v6040_v22 = vpop.f32.mrf.mxu2 }
  0xcc   : > { %v6042_v25 = vpop.f32.mrf.mxu3 }
  0xcd   : > { %v6044_v29 = vpop.f32.mrf.mxu1 }
  0xcf   : > { %v6046_v30 = vpop.f32.mrf.mxu0 }
  0xd3   : > { %v6049_v39 = vpop.f32.mrf.mxu2 }
  0xd4   : > { %v6051_v54 = vpop.f32.mrf.mxu3 }
  0xd5   : > { %v773_v41 = vpop.f32.mrf.mxu1 }
  0xd7   : > { %v747_v44 = vpop.f32.mrf.mxu0 }
  0xd8   : > { %939 = vmatmul.bf16.gmra.mxu1 %v5964_v33  ;;  %1195 = vmatmul.bf16.gmra.mxu2 %v1061_v42 }
  0xd9   : > { %1597 = vmatmul.bf16.gmra.mxu3 %v5155_v43 }
  0xda   : > { %2199 = vmatmul.bf16.gmra.mxu0 %v1945_v45  ;;  %v1962_v45 = vshrl.u32 %v5189_v8, 16 }
  0xdb   : > { %v799_v24 = vpop.f32.mrf.mxu2 }
  0xdc   : > { %v825_v47 = vpop.f32.mrf.mxu3  ;;  %v1066_v24 = vrot.slane %v5911_v9, 1 }
  0xdd   : > { %v6056_v27 = vpop.f32.mrf.mxu1  ;;  %v1964_v47 = vor.u32 %v1962_v45, %v1960_v16 }
  0xde   : > { %v1069_v16 = vsel %vm1052_vm1, %v1066_v24, %v1068_v10 }
  0xdf   : > { %v6058_v48 = vpop.f32.mrf.mxu0 }
  0xe3   : > { %v6061_v51 = vpop.f32.mrf.mxu2 }
  0xe4   : > { %v6063_v57 = vpop.f32.mrf.mxu3 }
  0xe5   : > { %v6065_v33 = vpop.f32.mrf.mxu1 }
  0xe7   : > { %v6068_v61 = vpop.f32.mrf.mxu0 }
  0xe8   : > { %944 = vmatmul.bf16.gmra.mxu1 %v5981_v1  ;;  %1200 = vmatmul.bf16.gmra.mxu2 %v1063_v52  ;;  %v1064_v1 = vrot.slane %v5907_v5, 1 }
  0xe9   : > { %1602 = vmatmul.bf16.gmra.mxu3 %v5156_v58  ;;  %v1969_v58 = vsel %vm464_vm0, %v1964_v47, %v1968_v49 }
  0xea   : > { %2204 = vmatmul.bf16.gmra.mxu0 %v1953_v62  ;;  %v1065_v31 = vsel %vm1052_vm1, %v1062_v53, %v1064_v1  ;;  %v1067_v55 = vsel %vm1052_vm1, %v1064_v1, %v1066_v24  ;;  %v5191_v62 = vld [vmem:[#allocation2 + $0x4c] sm:$0xff] }
  0xeb   : > { %v6072_v3 = vpop.f32.mrf.mxu2  ;;  %v5219_v24 = vld [vmem:[#allocation4 + $0x160] sm:$0xff] }
  0xec   : > { %v6074_v0 = vpop.f32.mrf.mxu3  ;;  %2468 = vmatpush.bf16.msra.mxu1 %v5219_v24 }
  0xed   : > { %v779_v6 = vpop.f32.mrf.mxu1 }
  0xee   : > { %v1970_v6 = vshrl.u32 %v5190_v38, 16  ;;  %v5192_v38 = vld [vmem:[#allocation2 + $0x54] sm:$0xff] }
  0xef   : > { %v753_v7 = vpop.f32.mrf.mxu0 }
  0xf0   : > { %v1974_v7 = vshll.u32 %v5191_v62, 16  ;;  %v1972_v11 = vor.u32 %v1970_v6, %v1968_v49 }
  0xf2   : > { %v1976_v13 = vrot.slane %v1974_v7, 1 }
  0xf3   : > { %v805_v17 = vpop.f32.mrf.mxu2 }
  0xf4   : > { %v831_v19 = vpop.f32.mrf.mxu3  ;;  %v5159_v17 = vld [vmem:[#allocation2 + $0x44] sm:$0xff] }
  0xf5   : > { %v6077_v20 = vpop.f32.mrf.mxu1 }
  0xf7   : > { %v6080_v36 = vpop.f32.mrf.mxu0 }
  0xf8   : > { %948 = vmatmul.bf16.gmra.mxu1 %v5997_v40  ;;  %1204 = vmatmul.bf16.gmra.mxu2 %v1065_v31  ;;  %v1977_v31 = vsel %vm464_vm0, %v1972_v11, %v1976_v13  ;;  %v5160_v11 = vld [vmem:[#allocation2 + $0x4c] sm:$0xff] }
  0xf9   : > { %1606 = vmatmul.bf16.gmra.mxu3 %v5157_v32  ;;  %v5251_v32 = vld [vmem:[#allocation4 + $0x1a0] sm:$0xff] }
  0xfa   : > { %2208 = vmatmul.bf16.gmra.mxu0 %v1961_v37  ;;  %v5282_v37 = vld [vmem:[#allocation4 + $0x1e0] sm:$0xff]  ;;  %2870 = vmatpush.bf16.msra.mxu2 %v5251_v32 }
  0xfb   : > { %v6084_v41 = vpop.f32.mrf.mxu2  ;;  %3472 = vmatpush.bf16.msra.mxu3 %v5282_v37 }
  0xfc   : > { %v6086_v42 = vpop.f32.mrf.mxu3 }
  0xfd   : > { %v6088_v43 = vpop.f32.mrf.mxu1 }
  0xff   : > { %v6090_v44 = vpop.f32.mrf.mxu0 }
 0x103   : > { %v6093_v23 = vpop.f32.mrf.mxu2 }
 0x104   : > { %v6095_v40 = vpop.f32.mrf.mxu3 }
 0x105   : > { %v786_v53 = vpop.f32.mrf.mxu1 }
 0x106   : > { %v1978_v53 = vshrl.u32 %v5191_v62, 16 }
 0x107   : > { %v760_v52 = vpop.f32.mrf.mxu0 }
 0x108   : > { %952 = vmatmul.bf16.gmra.mxu1 %v5907_v5  ;;  %1208 = vmatmul.bf16.gmra.mxu2 %v1067_v55  ;;  %v1982_v55 = vshll.u32 %v5192_v38, 16  ;;  %v1980_v52 = vor.u32 %v1978_v53, %v1976_v13  ;;  %v1986_v53 = vshrl.u32 %v5192_v38, 16 }
 0x109   : > { %1610 = vmatmul.bf16.gmra.mxu3 %v5158_v56  ;;  %v5290_v56 = vld [vmem:[#allocation4 + $0x220] sm:$0xff] }
 0x10a   : > { %2212 = vmatmul.bf16.gmra.mxu0 %v1969_v58  ;;  %v1984_v58 = vrot.slane %v1982_v55, 1 }
 0x10b   : > { %v812_v63 = vpop.f32.mrf.mxu2  ;;  %3759 = vmatpush.bf16.msra.mxu0 %v5290_v56  ;;  %v1072_v56 = vrot.slane %v5977_v59, 1 }
 0x10c   : > { %v838_v2 = vpop.f32.mrf.mxu3 }
 0x10d   : > { %v6100_v8 = vpop.f32.mrf.mxu1 }
 0x10f   : > { %v6102_v4 = vpop.f32.mrf.mxu0 }
 0x113   : > { %v6105_v1 = vpop.f32.mrf.mxu2 }
 0x114   : > { %v6107_v14 = vpop.f32.mrf.mxu3 }
 0x115   : > { %v6109_v5 = vpop.f32.mrf.mxu1 }
 0x117   : > { %v6112_v19 = vpop.f32.mrf.mxu0 }
 0x118   : > { %957 = vmatmul.bf16.gmra.mxu1 %v5911_v9  ;;  %1213 = vmatmul.bf16.gmra.mxu2 %v1069_v16  ;;  %v1070_v9 = vrot.slane %v5960_v26, 1 }
 0x119   : > { %1615 = vmatmul.bf16.gmra.mxu3 %v5159_v17  ;;  %v1985_v17 = vsel %vm464_vm0, %v1980_v52, %v1984_v58  ;;  %v1988_v52 = vor.u32 %v1986_v53, %v1984_v58 }
 0x11a   : > { %2217 = vmatmul.bf16.gmra.mxu0 %v1977_v31  ;;  %v1071_v7 = vsel %vm1052_vm1, %v1068_v10, %v1070_v9  ;;  %v5193_v31 = vld [vmem:[#allocation2 + $0x5c] sm:$0xff] }
 0x11b   : > { %v6116_v45 = vpop.f32.mrf.mxu2  ;;  %v1990_v10 = vshll.u32 %v5193_v31, 16 }
 0x11c   : > { %v6118_v46 = vpop.f32.mrf.mxu3 }
 0x11d   : > { %v792_v47 = vpop.f32.mrf.mxu1 }
 0x11f   : > { %v766_v49 = vpop.f32.mrf.mxu0 }
 0x123   : > { %v818_v63 = vpop.f32.mrf.mxu2 }
 0x124   : > { %v844_v2 = vpop.f32.mrf.mxu3  ;;  %v1992_v63 = vrot.slane %v1990_v10, 1 }
 0x125   : > { %v927_v6 = vpop.f32.mrf.mxu1 }
 0x126   : > { %v928_v62 = vadd.f32 %v927_v6, %v6036_v18  ;;  %v1993_v38 = vsel %vm464_vm0, %v1988_v52, %v1992_v63 }
 0x127   : > { %v2187_v16 = vpop.f32.mrf.mxu0 }
 0x128   : > { %961 = vmatmul.bf16.gmra.mxu1 %v5940_v50  ;;  %1217 = vmatmul.bf16.gmra.mxu2 %v1071_v7 }
 0x129   : > { %1619 = vmatmul.bf16.gmra.mxu3 %v5160_v11  ;;  %v1073_v11 = vsel %vm1052_vm1, %v1070_v9, %v1072_v56  ;;  %v1074_v9 = vrot.slane %v5993_v34, 1 }
 0x12a   : > { %2221 = vmatmul.bf16.gmra.mxu0 %v1985_v17  ;;  %v5161_v17 = vld [vmem:[#allocation2 + $0x54] sm:$0xff] }
 0x12b   : > { %v1183_v32 = vpop.f32.mrf.mxu2 }
 0x12c   : > { %v1287_v13 = vadd.f32 %v1183_v32, %v928_v62  ;;  %v1585_v37 = vpop.f32.mrf.mxu3 }
 0x12d   : > { %v929_v24 = vpop.f32.mrf.mxu1 }
 0x12e   : > { %v1689_v47 = vadd.f32 %v1585_v37, %v1287_v13  ;;  %v930_v50 = vadd.f32 %v929_v24, %v6046_v30  ;;  %v5194_v30 = vld [vmem:[#allocation2 + $0x64] sm:$0xff] }
 0x12f   : > { %v2189_v49 = vpop.f32.mrf.mxu0  ;;  %v1998_v53 = vshll.u32 %v5194_v30, 16 }
 0x130   : > { %v6125_v55 = vadd.f32 %v2187_v16, %v1689_v47  ;;  %v1994_v47 = vshrl.u32 %v5193_v31, 16 }
 0x131   : > { %v2000_v52 = vrot.slane %v1998_v53, 1 }
 0x133   : > { %v1185_v2 = vpop.f32.mrf.mxu2 }
 0x134   : > { %v1288_v7 = vadd.f32 %v1185_v2, %v930_v50  ;;  %v1587_v18 = vpop.f32.mrf.mxu3  ;;  %v1996_v50 = vor.u32 %v1994_v47, %v1992_v63  ;;  %v5281_v63 = vld [vmem:[#allocation4 + $0x1d8] sm:$0xff] }
 0x135   : > { %v932_v6 = vpop.f32.mrf.mxu1  ;;  %3473 = vmatpush.bf16.msra.mxu3 %v5281_v63 }
 0x136   : > { %v1690_v62 = vadd.f32 %v1587_v18, %v1288_v7  ;;  %v1075_v18 = vsel %vm1052_vm1, %v1072_v56, %v1074_v9  ;;  %v5162_v6 = vld [vmem:[#allocation2 + $0x5c] sm:$0xff] }
 0x137   : > { %v2192_v32 = vpop.f32.mrf.mxu0 }
 0x138   : > { %965 = vmatmul.bf16.gmra.mxu1 %v5960_v26  ;;  %1221 = vmatmul.bf16.gmra.mxu2 %v1073_v11  ;;  %v6132_v16 = vadd.f32 %v2189_v49, %v1690_v62  ;;  %v2001_v62 = vsel %vm464_vm0, %v1996_v50, %v2000_v52 }
 0x139   : > { %1623 = vmatmul.bf16.gmra.mxu3 %v5161_v17 }
 0x13a   : > { %2225 = vmatmul.bf16.gmra.mxu0 %v1993_v38  ;;  %v5195_v38 = vld [vmem:[#allocation2 + $0x6c] sm:$0xff] }
 0x13b   : > { %v1188_v58 = vpop.f32.mrf.mxu2  ;;  %v2006_v50 = vshll.u32 %v5195_v38, 16 }
 0x13c   : > { %v1590_v13 = vpop.f32.mrf.mxu3 }
 0x13d   : > { %v933_v37 = vpop.f32.mrf.mxu1 }
 0x13e   : > { %v934_v10 = vadd.f32 %v933_v37, %v6058_v48  ;;  %v5250_v48 = vld [vmem:[#allocation4 + $0x198] sm:$0xff] }
 0x13f   : > { %v2193_v24 = vpop.f32.mrf.mxu0  ;;  %2871 = vmatpush.bf16.msra.mxu2 %v5250_v48  ;;  %v5218_v37 = vld [vmem:[#allocation4 + $0x158] sm:$0xff] }
 0x140   : > { %2469 = vmatpush.bf16.msra.mxu1 %v5218_v37  ;;  %v5163_v48 = vld [vmem:[#allocation2 + $0x64] sm:$0xff] }
 0x143   : > { %v1189_v2 = vpop.f32.mrf.mxu2 }
 0x144   : > { %v1289_v26 = vadd.f32 %v1189_v2, %v934_v10  ;;  %v1591_v7 = vpop.f32.mrf.mxu3 }
 0x145   : > { %v936_v49 = vpop.f32.mrf.mxu1 }
 0x146   : > { %v1691_v11 = vadd.f32 %v1591_v7, %v1289_v26  ;;  %v937_v32 = vadd.f32 %v936_v49, %v6068_v61  ;;  %v5629_v26 = vld [vmem:[#allocation2 + $0x60] sm:$0xff]  ;;  %v2008_v49 = vrot.slane %v2006_v50, 1 }
 0x147   : > { %v2196_v17 = vpop.f32.mrf.mxu0  ;;  %v1076_v7 = vrot.slane %v5629_v26, 1 }
 0x148   : > { %970 = vmatmul.bf16.gmra.mxu1 %v5977_v59  ;;  %1226 = vmatmul.bf16.gmra.mxu2 %v1075_v18  ;;  %v6139_v31 = vadd.f32 %v2193_v24, %v1691_v11  ;;  %v2002_v59 = vshrl.u32 %v5194_v30, 16  ;;  %v5289_v24 = vld [vmem:[#allocation4 + $0x218] sm:$0xff] }
 0x149   : > { %1628 = vmatmul.bf16.gmra.mxu3 %v5162_v6  ;;  %3760 = vmatpush.bf16.msra.mxu0 %v5289_v24 }
 0x14a   : > { %2230 = vmatmul.bf16.gmra.mxu0 %v2001_v62  ;;  %v2004_v61 = vor.u32 %v2002_v59, %v2000_v52  ;;  %v1077_v62 = vsel %vm1052_vm1, %v1074_v9, %v1076_v7  ;;  %v5630_v59 = vld [vmem:[#allocation2 + $0x68] sm:$0xff] }
 0x14b   : > { %v1192_v58 = vpop.f32.mrf.mxu2  ;;  %v1078_v50 = vrot.slane %v5630_v59, 1 }
 0x14c   : > { %v1290_v56 = vadd.f32 %v1192_v58, %v937_v32  ;;  %v1594_v13 = vpop.f32.mrf.mxu3  ;;  %v2009_v32 = vsel %vm464_vm0, %v2004_v61, %v2008_v49 }
 0x14d   : > { %v938_v47 = vpop.f32.mrf.mxu1 }
 0x14e   : > { %v1692_v53 = vadd.f32 %v1594_v13, %v1290_v56 }
 0x14f   : > { %v2198_v10 = vpop.f32.mrf.mxu0 }
 0x150   : > { %v6142_v2 = vadd.f32 %v2196_v17, %v1692_v53  ;;  %v5196_v17 = vld [vmem:[#allocation2 + $0x74] sm:$0xff]  ;;  %v2010_v53 = vshrl.u32 %v5195_v38, 16 }
 0x151   : > { %v2014_v9 = vshll.u32 %v5196_v17, 16 }
 0x152   : > { %v2012_v24 = vor.u32 %v2010_v53, %v2008_v49  ;;  %v5631_v53 = vld [vmem:[#allocation2 + $0x70] sm:$0xff] }
 0x153   : > { %v1194_v18 = vpop.f32.mrf.mxu2  ;;  %v2016_v61 = vrot.slane %v2014_v9, 1 }
 0x154   : > { %v1596_v6 = vpop.f32.mrf.mxu3 }
 0x155   : > { %v940_v11 = vpop.f32.mrf.mxu1  ;;  %v2017_v38 = vsel %vm464_vm0, %v2012_v24, %v2016_v61 }
 0x156   : > { %v941_v30 = vadd.f32 %v940_v11, %v6080_v36 }
 0x157   : > { %v2200_v63 = vpop.f32.mrf.mxu0 }
 0x158   : > { %974 = vmatmul.bf16.gmra.mxu1 %v5993_v34  ;;  %1230 = vmatmul.bf16.gmra.mxu2 %v1077_v62  ;;  %v1079_v62 = vsel %vm1052_vm1, %v1076_v7, %v1078_v50  ;;  %v1080_v7 = vrot.slane %v5631_v53, 1 }
 0x159   : > { %1632 = vmatmul.bf16.gmra.mxu3 %v5163_v48  ;;  %v5164_v48 = vld [vmem:[#allocation2 + $0x6c] sm:$0xff] }
 0x15a   : > { %2234 = vmatmul.bf16.gmra.mxu0 %v2009_v32 }
 0x15b   : > { %v1196_v58 = vpop.f32.mrf.mxu2 }
 0x15c   : > { %v1291_v52 = vadd.f32 %v1196_v58, %v941_v30  ;;  %v1598_v56 = vpop.f32.mrf.mxu3 }
 0x15d   : > { %v942_v13 = vpop.f32.mrf.mxu1 }
 0x15e   : > { %v1693_v37 = vadd.f32 %v1598_v56, %v1291_v52  ;;  %v943_v34 = vadd.f32 %v942_v13, %v6090_v44  ;;  %v5197_v44 = vld [vmem:[#allocation2 + $0x7c] sm:$0xff]  ;;  %v2018_v13 = vshrl.u32 %v5196_v17, 16 }
 0x15f   : > { %v2202_v47 = vpop.f32.mrf.mxu0 }
 0x160   : > { %v6148_v10 = vadd.f32 %v2200_v63, %v1693_v37  ;;  %v2022_v37 = vshll.u32 %v5197_v44, 16 }
 0x163   : > { %v1198_v18 = vpop.f32.mrf.mxu2 }
 0x164   : > { %v1292_v6 = vadd.f32 %v1198_v18, %v943_v34  ;;  %v1600_v36 = vpop.f32.mrf.mxu3  ;;  %v2020_v34 = vor.u32 %v2018_v13, %v2016_v61  ;;  %v2024_v18 = vrot.slane %v2022_v37, 1  ;;  %v5280_v61 = vld [vmem:[#allocation4 + $0x1d0] sm:$0xff] }
 0x165   : > { %v945_v11 = vpop.f32.mrf.mxu1  ;;  %3474 = vmatpush.bf16.msra.mxu3 %v5280_v61 }
 0x166   : > { %v1694_v32 = vadd.f32 %v1600_v36, %v1292_v6  ;;  %v1081_v36 = vsel %vm1052_vm1, %v1078_v50, %v1080_v7  ;;  %v5165_v11 = vld [vmem:[#allocation2 + $0x74] sm:$0xff] }
 0x167   : > { %v2205_v30 = vpop.f32.mrf.mxu0 }
 0x168   : > { %978 = vmatmul.bf16.gmra.mxu1 %v5629_v26  ;;  %1234 = vmatmul.bf16.gmra.mxu2 %v1079_v62  ;;  %v6153_v63 = vadd.f32 %v2202_v47, %v1694_v32  ;;  %v2025_v32 = vsel %vm464_vm0, %v2020_v34, %v2024_v18 }
 0x169   : > { %1636 = vmatmul.bf16.gmra.mxu3 %v5164_v48 }
 0x16a   : > { %2238 = vmatmul.bf16.gmra.mxu0 %v2017_v38  ;;  %v5198_v38 = vld [vmem:[#allocation2 + $0x84] sm:$0xff] }
 0x16b   : > { %v1201_v49 = vpop.f32.mrf.mxu2  ;;  %v2030_v34 = vshll.u32 %v5198_v38, 16 }
 0x16c   : > { %v1603_v58 = vpop.f32.mrf.mxu3 }
 0x16d   : > { %v946_v52 = vpop.f32.mrf.mxu1 }
 0x16e   : > { %v947_v9 = vadd.f32 %v946_v52, %v6102_v4  ;;  %v5249_v4 = vld [vmem:[#allocation4 + $0x190] sm:$0xff] }
 0x16f   : > { %v2206_v56 = vpop.f32.mrf.mxu0  ;;  %2872 = vmatpush.bf16.msra.mxu2 %v5249_v4  ;;  %v5217_v52 = vld [vmem:[#allocation4 + $0x150] sm:$0xff] }
 0x170   : > { %2470 = vmatpush.bf16.msra.mxu1 %v5217_v52  ;;  %v2034_v52 = vshrl.u32 %v5198_v38, 16 }
 0x173   : > { %v1202_v24 = vpop.f32.mrf.mxu2 }
 0x174   : > { %v1293_v26 = vadd.f32 %v1202_v24, %v947_v9  ;;  %v1604_v6 = vpop.f32.mrf.mxu3 }
 0x175   : > { %v949_v47 = vpop.f32.mrf.mxu1 }
 0x176   : > { %v1695_v62 = vadd.f32 %v1604_v6, %v1293_v26  ;;  %v950_v30 = vadd.f32 %v949_v47, %v6112_v19  ;;  %v1082_v26 = vrot.slane %v5962_v28, 1  ;;  %v2032_v6 = vrot.slane %v2030_v34, 1 }
 0x177   : > { %v2209_v48 = vpop.f32.mrf.mxu0 }
 0x178   : > { %983 = vmatmul.bf16.gmra.mxu1 %v5630_v59  ;;  %1239 = vmatmul.bf16.gmra.mxu2 %v1081_v36  ;;  %v6158_v17 = vadd.f32 %v2206_v56, %v1695_v62  ;;  %v2026_v59 = vshrl.u32 %v5197_v44, 16  ;;  %v5288_v56 = vld [vmem:[#allocation4 + $0x210] sm:$0xff]  ;;  %v1083_v62 = vsel %vm1052_vm1, %v1080_v7, %v1082_v26 }
 0x179   : > { %1641 = vmatmul.bf16.gmra.mxu3 %v5165_v11  ;;  %3761 = vmatpush.bf16.msra.mxu0 %v5288_v56 }
 0x17a   : > { %2243 = vmatmul.bf16.gmra.mxu0 %v2025_v32  ;;  %v2028_v19 = vor.u32 %v2026_v59, %v2024_v18  ;;  %v5166_v32 = vld [vmem:[#allocation2 + $0x7c] sm:$0xff] }
 0x17b   : > { %v1205_v49 = vpop.f32.mrf.mxu2 }
 0x17c   : > { %v1294_v50 = vadd.f32 %v1205_v49, %v950_v30  ;;  %v1607_v58 = vpop.f32.mrf.mxu3  ;;  %v2033_v61 = vsel %vm464_vm0, %v2028_v19, %v2032_v6 }
 0x17d   : > { %v951_v13 = vpop.f32.mrf.mxu1 }
 0x17e   : > { %v1696_v37 = vadd.f32 %v1607_v58, %v1294_v50 }
 0x17f   : > { %v2211_v9 = vpop.f32.mrf.mxu0 }
 0x180   : > { %v6161_v24 = vadd.f32 %v2209_v48, %v1696_v37  ;;  %v5199_v48 = vld [vmem:[#allocation2 + $0x8c] sm:$0xff]  ;;  %v1084_v37 = vrot.slane %v5979_v60, 1  ;;  %v2036_v9 = vor.u32 %v2034_v52, %v2032_v6  ;;  %v5200_v60 = vld [vmem:[#allocation2 + $0x94] sm:$0xff] }
 0x181   : > { %v2038_v13 = vshll.u32 %v5199_v48, 16 }
 0x183   : > { %v1207_v47 = vpop.f32.mrf.mxu2  ;;  %v2040_v59 = vrot.slane %v2038_v13, 1 }
 0x184   : > { %v1609_v36 = vpop.f32.mrf.mxu3  ;;  %v1085_v47 = vsel %vm1052_vm1, %v1082_v26, %v1084_v37  ;;  %v1086_v26 = vrot.slane %v5995_v35, 1  ;;  %v5248_v35 = vld [vmem:[#allocation4 + $0x188] sm:$0xff] }
 0x185   : > { %v953_v11 = vpop.f32.mrf.mxu1  ;;  %v5167_v36 = vld [vmem:[#allocation2 + $0x84] sm:$0xff]  ;;  %v2041_v38 = vsel %vm464_vm0, %v2036_v9, %v2040_v59  ;;  %2873 = vmatpush.bf16.msra.mxu2 %v5248_v35 }
 0x186   : > { %v954_v44 = vadd.f32 %v953_v11, %v6033_v15  ;;  %v1087_v9 = vsel %vm1052_vm1, %v1084_v37, %v1086_v26 }
 0x187   : > { %v2213_v4 = vpop.f32.mrf.mxu0 }
 0x188   : > { %987 = vmatmul.bf16.gmra.mxu1 %v5631_v53  ;;  %1243 = vmatmul.bf16.gmra.mxu2 %v1083_v62 }
 0x189   : > { %1645 = vmatmul.bf16.gmra.mxu3 %v5166_v32  ;;  %v5632_v32 = vld [vmem:[#allocation2 + $0x78] sm:$0xff] }
 0x18a   : > { %2247 = vmatmul.bf16.gmra.mxu0 %v2033_v61 }
 0x18b   : > { %v1209_v30 = vpop.f32.mrf.mxu2 }
 0x18c   : > { %v1295_v28 = vadd.f32 %v1209_v30, %v954_v44  ;;  %v1611_v18 = vpop.f32.mrf.mxu3  ;;  %v2042_v30 = vshrl.u32 %v5199_v48, 16 }
 0x18d   : > { %v955_v49 = vpop.f32.mrf.mxu1 }
 0x18e   : > { %v1697_v50 = vadd.f32 %v1611_v18, %v1295_v28  ;;  %v956_v53 = vadd.f32 %v955_v49, %v6044_v29  ;;  %v2046_v28 = vshll.u32 %v5200_v60, 16  ;;  %v2044_v49 = vor.u32 %v2042_v30, %v2040_v59 }
 0x18f   : > { %v2215_v58 = vpop.f32.mrf.mxu0 }
 0x190   : > { %v6167_v7 = vadd.f32 %v2213_v4, %v1697_v50  ;;  %v2048_v50 = vrot.slane %v2046_v28, 1 }
 0x193   : > { %v1211_v34 = vpop.f32.mrf.mxu2 }
 0x194   : > { %v1296_v56 = vadd.f32 %v1211_v34, %v956_v53  ;;  %v1613_v15 = vpop.f32.mrf.mxu3  ;;  %v5168_v34 = vld [vmem:[#allocation2 + $0x8c] sm:$0xff] }
 0x195   : > { %v958_v19 = vpop.f32.mrf.mxu1 }
 0x196   : > { %v1698_v11 = vadd.f32 %v1613_v15, %v1296_v56  ;;  %v2049_v19 = vsel %vm464_vm0, %v2044_v49, %v2048_v50 }
 0x197   : > { %v2218_v62 = vpop.f32.mrf.mxu0 }
 0x198   : > { %991 = vmatmul.bf16.gmra.mxu1 %v5632_v32  ;;  %1247 = vmatmul.bf16.gmra.mxu2 %v1085_v47  ;;  %v6173_v4 = vadd.f32 %v2215_v58, %v1698_v11  ;;  %v5633_v47 = vld [vmem:[#allocation2 + $0x80] sm:$0xff] }
 0x199   : > { %1649 = vmatmul.bf16.gmra.mxu3 %v5167_v36  ;;  %v5201_v36 = vld [vmem:[#allocation2 + $0x9c] sm:$0xff] }
 0x19a   : > { %2251 = vmatmul.bf16.gmra.mxu0 %v2041_v38  ;;  %v5216_v38 = vld [vmem:[#allocation4 + $0x148] sm:$0xff]  ;;  %v2054_v30 = vshll.u32 %v5201_v36, 16 }
 0x19b   : > { %v1214_v29 = vpop.f32.mrf.mxu2  ;;  %2471 = vmatpush.bf16.msra.mxu1 %v5216_v38 }
 0x19c   : > { %v1616_v6 = vpop.f32.mrf.mxu3 }
 0x19d   : > { %v959_v61 = vpop.f32.mrf.mxu1 }
 0x19e   : > { %v960_v18 = vadd.f32 %v959_v61, %v6056_v27  ;;  %v5279_v27 = vld [vmem:[#allocation4 + $0x1c8] sm:$0xff]  ;;  %v2050_v61 = vshrl.u32 %v5200_v60, 16  ;;  %v5635_v60 = vld [vmem:[#allocation2 + $0x88] sm:$0xff] }
 0x19f   : > { %v2219_v44 = vpop.f32.mrf.mxu0  ;;  %3475 = vmatpush.bf16.msra.mxu3 %v5279_v27 }
 0x1a3   : > { %v1215_v52 = vpop.f32.mrf.mxu2 }
 0x1a4   : > { %v1297_v13 = vadd.f32 %v1215_v52, %v960_v18  ;;  %v1617_v53 = vpop.f32.mrf.mxu3  ;;  %v5634_v18 = vld [vmem:[#allocation2 + $0x90] sm:$0xff]  ;;  %v2056_v52 = vrot.slane %v2054_v30, 1 }
 0x1a5   : > { %v962_v58 = vpop.f32.mrf.mxu1  ;;  %v1088_v49 = vrot.slane %v5634_v18, 1 }
 0x1a6   : > { %v1699_v56 = vadd.f32 %v1617_v53, %v1297_v13  ;;  %v963_v59 = vadd.f32 %v962_v58, %v6065_v33  ;;  %v2052_v33 = vor.u32 %v2050_v61, %v2048_v50 }
 0x1a7   : > { %v2222_v15 = vpop.f32.mrf.mxu0 }
 0x1a8   : > { %996 = vmatmul.bf16.gmra.mxu1 %v5633_v47  ;;  %1252 = vmatmul.bf16.gmra.mxu2 %v1087_v9  ;;  %v6179_v48 = vadd.f32 %v2219_v44, %v1699_v56  ;;  %v5287_v44 = vld [vmem:[#allocation4 + $0x208] sm:$0xff]  ;;  %v1089_v9 = vsel %vm1052_vm1, %v1086_v26, %v1088_v49  ;;  %v5202_v47 = vld [vmem:[#allocation2 + $0xa4] sm:$0xff] }
 0x1a9   : > { %1654 = vmatmul.bf16.gmra.mxu3 %v5168_v34  ;;  %3762 = vmatpush.bf16.msra.mxu0 %v5287_v44  ;;  %v5169_v34 = vld [vmem:[#allocation2 + $0x94] sm:$0xff]  ;;  %v2062_v26 = vshll.u32 %v5202_v47, 16 }
 0x1aa   : > { %2256 = vmatmul.bf16.gmra.mxu0 %v2049_v19  ;;  %v2057_v19 = vsel %vm464_vm0, %v2052_v33, %v2056_v52 }
 0x1ab   : > { %v1218_v11 = vpop.f32.mrf.mxu2  ;;  %v2064_v30 = vrot.slane %v2062_v26, 1 }
 0x1ac   : > { %v1298_v37 = vadd.f32 %v1218_v11, %v963_v59  ;;  %v1620_v62 = vpop.f32.mrf.mxu3 }
 0x1ad   : > { %v964_v32 = vpop.f32.mrf.mxu1 }
 0x1ae   : > { %v1700_v29 = vadd.f32 %v1620_v62, %v1298_v37  ;;  %v2058_v62 = vshrl.u32 %v5201_v36, 16  ;;  %v5636_v32 = vld [vmem:[#allocation2 + $0x98] sm:$0xff] }
 0x1af   : > { %v2224_v6 = vpop.f32.mrf.mxu0 }
 0x1b0   : > { %v6182_v28 = vadd.f32 %v2222_v15, %v1700_v29  ;;  %v1090_v29 = vrot.slane %v5636_v32, 1  ;;  %v2060_v61 = vor.u32 %v2058_v62, %v2056_v52 }
 0x1b2   : > { %v2065_v36 = vsel %vm464_vm0, %v2060_v61, %v2064_v30 }
 0x1b3   : > { %v1220_v13 = vpop.f32.mrf.mxu2 }
 0x1b4   : > { %v1622_v53 = vpop.f32.mrf.mxu3 }
 0x1b5   : > { %v966_v58 = vpop.f32.mrf.mxu1  ;;  %v1091_v53 = vsel %vm1052_vm1, %v1088_v49, %v1090_v29 }
 0x1b6   : > { %v967_v15 = vadd.f32 %v966_v58, %v6077_v20  ;;  %v5170_v58 = vld [vmem:[#allocation2 + $0x9c] sm:$0xff] }
 0x1b7   : > { %v2226_v56 = vpop.f32.mrf.mxu0 }
 0x1b8   : > { %1000 = vmatmul.bf16.gmra.mxu1 %v5635_v60  ;;  %1256 = vmatmul.bf16.gmra.mxu2 %v1089_v9 }
 0x1b9   : > { %1658 = vmatmul.bf16.gmra.mxu3 %v5169_v34 }
 0x1ba   : > { %2260 = vmatmul.bf16.gmra.mxu0 %v2057_v19 }
 0x1bb   : > { %v1222_v35 = vpop.f32.mrf.mxu2 }
 0x1bc   : > { %v1299_v50 = vadd.f32 %v1222_v35, %v967_v15  ;;  %v1624_v27 = vpop.f32.mrf.mxu3  ;;  %v2066_v35 = vshrl.u32 %v5202_v47, 16 }
 0x1bd   : > { %v968_v59 = vpop.f32.mrf.mxu1 }
 0x1be   : > { %v1701_v11 = vadd.f32 %v1624_v27, %v1299_v50  ;;  %v969_v6 = vadd.f32 %v968_v59, %v6088_v43  ;;  %v5203_v43 = vld [vmem:[#allocation2 + $0xac] sm:$0xff]  ;;  %v5637_v27 = vld [vmem:[#allocation2 + $0xa0] sm:$0xff] }
 0x1bf   : > { %v2228_v37 = vpop.f32.mrf.mxu0  ;;  %v2070_v50 = vshll.u32 %v5203_v43, 16  ;;  %v1092_v49 = vrot.slane %v5637_v27, 1 }
 0x1c0   : > { %v6187_v38 = vadd.f32 %v2226_v56, %v1701_v11  ;;  %v2068_v11 = vor.u32 %v2066_v35, %v2064_v30  ;;  %v5278_v30 = vld [vmem:[#allocation4 + $0x1c0] sm:$0xff] }
 0x1c1   : > { %v2072_v62 = vrot.slane %v2070_v50, 1  ;;  %v1093_v61 = vsel %vm1052_vm1, %v1090_v29, %v1092_v49  ;;  %3476 = vmatpush.bf16.msra.mxu3 %v5278_v30 }
 0x1c3   : > { %v1224_v44 = vpop.f32.mrf.mxu2 }
 0x1c4   : > { %v1300_v33 = vadd.f32 %v1224_v44, %v969_v6  ;;  %v1626_v20 = vpop.f32.mrf.mxu3  ;;  %v5171_v44 = vld [vmem:[#allocation2 + $0xa4] sm:$0xff] }
 0x1c5   : > { %v971_v13 = vpop.f32.mrf.mxu1 }
 0x1c6   : > { %v1702_v9 = vadd.f32 %v1626_v20, %v1300_v33  ;;  %v2073_v13 = vsel %vm464_vm0, %v2068_v11, %v2072_v62 }
 0x1c7   : > { %v2231_v34 = vpop.f32.mrf.mxu0 }
 0x1c8   : > { %1004 = vmatmul.bf16.gmra.mxu1 %v5634_v18  ;;  %1260 = vmatmul.bf16.gmra.mxu2 %v1091_v53  ;;  %v6192_v56 = vadd.f32 %v2228_v37, %v1702_v9 }
 0x1c9   : > { %1662 = vmatmul.bf16.gmra.mxu3 %v5170_v58  ;;  %v5204_v58 = vld [vmem:[#allocation2 + $0xb4] sm:$0xff] }
 0x1ca   : > { %2264 = vmatmul.bf16.gmra.mxu0 %v2065_v36  ;;  %v5215_v36 = vld [vmem:[#allocation4 + $0x140] sm:$0xff]  ;;  %v2078_v35 = vshll.u32 %v5204_v58, 16 }
 0x1cb   : > { %v1227_v52 = vpop.f32.mrf.mxu2  ;;  %2472 = vmatpush.bf16.msra.mxu1 %v5215_v36 }
 0x1cc   : > { %v1629_v19 = vpop.f32.mrf.mxu3 }
 0x1cd   : > { %v972_v60 = vpop.f32.mrf.mxu1 }
 0x1ce   : > { %v973_v59 = vadd.f32 %v972_v60, %v6100_v8  ;;  %v5247_v8 = vld [vmem:[#allocation4 + $0x180] sm:$0xff] }
 0x1cf   : > { %v2232_v15 = vpop.f32.mrf.mxu0  ;;  %2874 = vmatpush.bf16.msra.mxu2 %v5247_v8 }
 0x1d3   : > { %v1228_v26 = vpop.f32.mrf.mxu2 }
 0x1d4   : > { %v1301_v18 = vadd.f32 %v1228_v26, %v973_v59  ;;  %v1630_v6 = vpop.f32.mrf.mxu3  ;;  %v5638_v59 = vld [vmem:[#allocation2 + $0xa8] sm:$0xff]  ;;  %v2080_v26 = vrot.slane %v2078_v35, 1 }
 0x1d5   : > { %v975_v37 = vpop.f32.mrf.mxu1  ;;  %v1094_v11 = vrot.slane %v5638_v59, 1 }
 0x1d6   : > { %v1703_v33 = vadd.f32 %v1630_v6, %v1301_v18  ;;  %v976_v53 = vadd.f32 %v975_v37, %v6109_v5 }
 0x1d7   : > { %v2235_v20 = vpop.f32.mrf.mxu0 }
 0x1d8   : > { %1009 = vmatmul.bf16.gmra.mxu1 %v5636_v32  ;;  %1265 = vmatmul.bf16.gmra.mxu2 %v1093_v61  ;;  %v6197_v47 = vadd.f32 %v2232_v15, %v1703_v33  ;;  %v2074_v32 = vshrl.u32 %v5203_v43, 16  ;;  %v5286_v15 = vld [vmem:[#allocation4 + $0x200] sm:$0xff]  ;;  %v1095_v61 = vsel %vm1052_vm1, %v1092_v49, %v1094_v11 }
 0x1d9   : > { %1667 = vmatmul.bf16.gmra.mxu3 %v5171_v44  ;;  %3763 = vmatpush.bf16.msra.mxu0 %v5286_v15  ;;  %v5172_v44 = vld [vmem:[#allocation2 + $0xac] sm:$0xff] }
 0x1da   : > { %2269 = vmatmul.bf16.gmra.mxu0 %v2073_v13  ;;  %v2076_v5 = vor.u32 %v2074_v32, %v2072_v62 }
 0x1db   : > { %v1231_v9 = vpop.f32.mrf.mxu2 }
 0x1dc   : > { %v1302_v29 = vadd.f32 %v1231_v9, %v976_v53  ;;  %v1633_v34 = vpop.f32.mrf.mxu3  ;;  %v2081_v13 = vsel %vm464_vm0, %v2076_v5, %v2080_v26 }
 0x1dd   : > { %v977_v52 = vpop.f32.mrf.mxu1 }
 0x1de   : > { %v1704_v19 = vadd.f32 %v1633_v34, %v1302_v29  ;;  %v2082_v34 = vshrl.u32 %v5204_v58, 16  ;;  %v5639_v52 = vld [vmem:[#allocation2 + $0xb0] sm:$0xff] }
 0x1df   : > { %v2237_v60 = vpop.f32.mrf.mxu0 }
 0x1e0   : > { %v6200_v50 = vadd.f32 %v2235_v20, %v1704_v19  ;;  %v5205_v20 = vld [vmem:[#allocation2 + $0xbc] sm:$0xff]  ;;  %v1096_v19 = vrot.slane %v5639_v52, 1  ;;  %v2084_v60 = vor.u32 %v2082_v34, %v2080_v26 }
 0x1e1   : > { %v2086_v36 = vshll.u32 %v5205_v20, 16 }
 0x1e3   : > { %v1233_v18 = vpop.f32.mrf.mxu2  ;;  %v2088_v32 = vrot.slane %v2086_v36, 1 }
 0x1e4   : > { %v1635_v6 = vpop.f32.mrf.mxu3  ;;  %v1097_v18 = vsel %vm1052_vm1, %v1094_v11, %v1096_v19 }
 0x1e5   : > { %v979_v37 = vpop.f32.mrf.mxu1  ;;  %v5173_v6 = vld [vmem:[#allocation2 + $0xb4] sm:$0xff]  ;;  %v2089_v58 = vsel %vm464_vm0, %v2084_v60, %v2088_v32 }
 0x1e6   : > { %v980_v43 = vadd.f32 %v979_v37, %v6040_v22 }
 0x1e7   : > { %v2239_v33 = vpop.f32.mrf.mxu0 }
 0x1e8   : > { %1013 = vmatmul.bf16.gmra.mxu1 %v5637_v27  ;;  %1269 = vmatmul.bf16.gmra.mxu2 %v1095_v61 }
 0x1e9   : > { %1671 = vmatmul.bf16.gmra.mxu3 %v5172_v44 }
 0x1ea   : > { %2273 = vmatmul.bf16.gmra.mxu0 %v2081_v13 }
 0x1eb   : > { %v1235_v8 = vpop.f32.mrf.mxu2 }
 0x1ec   : > { %v1303_v30 = vadd.f32 %v1235_v8, %v980_v43  ;;  %v1637_v62 = vpop.f32.mrf.mxu3  ;;  %v2090_v8 = vshrl.u32 %v5205_v20, 16 }
 0x1ed   : > { %v981_v53 = vpop.f32.mrf.mxu1 }
 0x1ee   : > { %v1705_v9 = vadd.f32 %v1637_v62, %v1303_v30  ;;  %v982_v27 = vadd.f32 %v981_v53, %v6049_v39  ;;  %v5206_v39 = vld [vmem:[#allocation2 + $0xc4] sm:$0xff]  ;;  %v5640_v62 = vld [vmem:[#allocation2 + $0xb8] sm:$0xff] }
 0x1ef   : > { %v2241_v29 = vpop.f32.mrf.mxu0  ;;  %v2094_v30 = vshll.u32 %v5206_v39, 16  ;;  %v1098_v11 = vrot.slane %v5640_v62, 1 }
 0x1f0   : > { %v6205_v49 = vadd.f32 %v2239_v33, %v1705_v9  ;;  %v2092_v9 = vor.u32 %v2090_v8, %v2088_v32 }
 0x1f1   : > { %v2096_v34 = vrot.slane %v2094_v30, 1 }
 0x1f3   : > { %v1237_v35 = vpop.f32.mrf.mxu2 }
 0x1f4   : > { %v1304_v15 = vadd.f32 %v1237_v35, %v982_v27  ;;  %v1639_v22 = vpop.f32.mrf.mxu3  ;;  %v1099_v35 = vsel %vm1052_vm1, %v1096_v19, %v1098_v11 }
 0x1f5   : > { %v984_v5 = vpop.f32.mrf.mxu1 }
 0x1f6   : > { %v1706_v37 = vadd.f32 %v1639_v22, %v1304_v15  ;;  %v5174_v15 = vld [vmem:[#allocation2 + $0xbc] sm:$0xff] }
 0x1f7   : > { %v2244_v61 = vpop.f32.mrf.mxu0 }
 0x1f8   : > { %1017 = vmatmul.bf16.gmra.mxu1 %v5638_v59  ;;  %1273 = vmatmul.bf16.gmra.mxu2 %v1097_v18  ;;  %v6210_v44 = vadd.f32 %v2241_v29, %v1706_v37  ;;  %v1769_v59 = vld [vmem:[#allocation2 + $0xcc] sm:$0x1]  ;;  %v2097_v18 = vsel %vm464_vm0, %v2092_v9, %v2096_v34 }
 0x1f9   : > { %1675 = vmatmul.bf16.gmra.mxu3 %v5173_v6  ;;  %v1884_v20 = vunpack.c.l.b16 %v1769_v59 }
 0x1fa   : > { %2277 = vmatmul.bf16.gmra.mxu0 %v2089_v58 }
 0x1fb   : > { %v1240_v26 = vpop.f32.mrf.mxu2  ;;  %v6218_v32 = vpack.c.b16 %v1884_v20, %v1884_v20 }
 0x1fc   : > { %v1642_v33 = vpop.f32.mrf.mxu3 }
 0x1fd   : > { %v985_v13 = vpop.f32.mrf.mxu1  ;;  %v2102_v8 = vshll.u32 %v6218_v32, 16 }
 0x1fe   : > { %v986_v53 = vadd.f32 %v985_v13, %v6061_v51  ;;  %v2098_v13 = vshrl.u32 %v5206_v39, 16 }
 0x1ff   : > { %v2245_v43 = vpop.f32.mrf.mxu0 }
 0x203   : > { %v1241_v36 = vpop.f32.mrf.mxu2 }
 0x204   : > { %v1305_v27 = vadd.f32 %v1241_v36, %v986_v53  ;;  %v1643_v29 = vpop.f32.mrf.mxu3  ;;  %v2104_v53 = vrot.slane %v2102_v8, 1 }
 0x205   : > { %v988_v60 = vpop.f32.mrf.mxu1 }
 0x206   : > { %v1707_v22 = vadd.f32 %v1643_v29, %v1305_v27  ;;  %v989_v51 = vadd.f32 %v988_v60, %v6072_v3  ;;  %v5175_v27 = vld [vmem:[#allocation2 + $0xc4] sm:$0xff] }
 0x207   : > { %v2248_v5 = vpop.f32.mrf.mxu0 }
 0x208   : > { %1022 = vmatmul.bf16.gmra.mxu1 %v5639_v52  ;;  %1278 = vmatmul.bf16.gmra.mxu2 %v1099_v35  ;;  %v6215_v6 = vadd.f32 %v2245_v43, %v1707_v22  ;;  %v1100_v52 = vrot.slane %v6009_v12, 1  ;;  %v2100_v43 = vor.u32 %v2098_v13, %v2096_v34  ;;  %v5666_v35 = vld [vmem:[#allocation2 + $0xc] sm:$0xe]  ;;  %v5255_v34 = vld [vmem:[#allocation2 + $0x20] sm:$0xff] }
 0x209   : > { %1680 = vmatmul.bf16.gmra.mxu3 %v5174_v15  ;;  %v5386_v15 = vld [vmem:[#allocation2 + $0x18] sm:$0xff]  }
 0x20a   : > { %2282 = vmatmul.bf16.gmra.mxu0 %v2097_v18  ;;  %v1101_v59 = vsel %vm1052_vm1, %v1098_v11, %v1100_v52  ;;  %v2105_v60 = vsel %vm464_vm0, %v2100_v43, %v2104_v53  ;;  %v3204_v39 = vshll.u32 %v5386_v15, 16  ;;  %v5388_v18 = vld [vmem:[#allocation2 + $0x18] sm:$0xe] }
 0x20b   : > { %v1244_v37 = vpop.f32.mrf.mxu2  ;;  %v5641_v52 = vld [vmem:[#allocation2 + $0x14] sm:$0xff] }
 0x20c   : > { %v1306_v61 = vadd.f32 %v1244_v37, %v989_v51  ;;  %v1646_v58 = vpop.f32.mrf.mxu3  ;;  %v5667_v37 = vor.u32 %v5666_v35, %v6015_v21 }
 0x20d   : > { %v990_v19 = vpop.f32.mrf.mxu1 }
 0x20e   : > { %v1708_v26 = vadd.f32 %v1646_v58, %v1306_v61  ;;  %v3202_v61 = vshrl.u32 %v5386_v15, 16  ;;  %v3206_v58 = vrot.slane %v3204_v39, 1  ;;  %v2344_v8 = vrot.slane %v5667_v37, 1 }
 0x20f   : > { %v2250_v33 = vpop.f32.mrf.mxu0  ;;  %v3213_v37 = vshrl.u32 %v5255_v34, 16 }
 0x210   : > { %v6221_v30 = vadd.f32 %v2248_v5, %v1708_v26  ;;  %v5387_v5 = vld [vmem:[#allocation2 + $0x18] sm:$0xf0]  ;;  %v3207_v43 = vor.u32 %v3206_v58, %v3202_v61 }
 0x211   : > { %v5389_v33 = vor.u32 %v5388_v18, %v5387_v5  ;;  %v5642_v58 = vld [vmem:[#allocation2 + $0x1c] sm:$0xff] }
 0x213   : > { %v1246_v9 = vpop.f32.mrf.mxu2 }
 0x214   : > { %v1648_v36 = vpop.f32.mrf.mxu3 }
 0x215   : > { %v992_v3 = vpop.f32.mrf.mxu1  ;;  %v3635_v36 = vrot.slane %v5389_v33, 1 }
 0x216   : > { %v993_v12 = vadd.f32 %v992_v3, %v6084_v41  ;;  %v2345_v41 = vrot.slane %v5641_v52, 1  ;;  %v3636_v3 = vrot.slane %v5255_v34, 1 }
 0x217   : > { %v2252_v29 = vpop.f32.mrf.mxu0 }
 0x218   : > { %1026 = vmatmul.bf16.gmra.mxu1 %v5640_v62  ;;  %1282 = vmatmul.bf16.gmra.mxu2 %v1101_v59  ;;  %v3209_v62 = vshll.u32 %v5255_v34, 16  ;;  %v2346_v15 = vsel %vm1052_vm1, %v2344_v8, %v2345_v41 }
 0x219   : > { %1684 = vmatmul.bf16.gmra.mxu3 %v5175_v27 }
 0x21a   : > { %2286 = vmatmul.bf16.gmra.mxu0 %v2105_v60  ;;  %v3211_v9 = vrot.slane %v3209_v62, 1  ;;  %v5223_v60 = vld [vmem:[#allocation2 + $0x18] sm:$0xff] }
 0x21b   : > { %v1248_v22 = vpop.f32.mrf.mxu2 }
 0x21c   : > { %v1307_v20 = vadd.f32 %v1248_v22, %v993_v12  ;;  %v1650_v51 = vpop.f32.mrf.mxu3  ;;  %v3637_v22 = vsel %vm1052_vm1, %v3635_v36, %v3636_v3  ;;  %v3215_v33 = vor.u32 %v3213_v37, %v3211_v9  ;;  %v5224_v36 = vld [vmem:[#allocation2 + $0x20] sm:$0xff] }
 0x21d   : > { %v994_v11 = vpop.f32.mrf.mxu1 }
 0x21e   : > { %v1709_v19 = vadd.f32 %v1650_v51, %v1307_v20  ;;  %v995_v53 = vadd.f32 %v994_v11, %v6093_v23  ;;  %v5256_v23 = vld [vmem:[#allocation2 + $0x28] sm:$0xff] }
 0x21f   : > { %v2254_v26 = vpop.f32.mrf.mxu0  ;;  %v3217_v61 = vshll.u32 %v5256_v23, 16  ;;  %v3638_v52 = vrot.slane %v5256_v23, 1 }
 0x220   : > { %v6228_v13 = vadd.f32 %v2252_v29, %v1709_v19  ;;  %v3212_v29 = vsel %vm464_vm0, %v3207_v43, %v3211_v9  ;;  %v2347_v19 = vrot.slane %v5642_v58, 1  ;;  %v5257_v9 = vld [vmem:[#allocation2 + $0x30] sm:$0xff] }
 0x221   : > { %v3219_v8 = vrot.slane %v3217_v61, 1  ;;  %v3639_v34 = vsel %vm1052_vm1, %v3636_v3, %v3638_v52  ;;  %v5643_v3 = vld [vmem:[#allocation2 + $0x24] sm:$0xff] }
 0x222   : > { %v2349_v61 = vrot.slane %v5643_v3, 1 }
 0x223   : > { %v1250_v59 = vpop.f32.mrf.mxu2 }
 0x224   : > { %v1308_v27 = vadd.f32 %v1250_v59, %v995_v53  ;;  %v1652_v21 = vpop.f32.mrf.mxu3 }
 0x225   : > { %v997_v35 = vpop.f32.mrf.mxu1 }
 0x226   : > { %v1710_v39 = vadd.f32 %v1652_v21, %v1308_v27  ;;  %v2348_v27 = vsel %vm1052_vm1, %v2345_v41, %v2347_v19  ;;  %v3220_v35 = vsel %vm464_vm0, %v3215_v33, %v3219_v8 }
 0x227   : > { %v2257_v12 = vpop.f32.mrf.mxu0 }
 0x228   : > { %2473 = vmatmul.bf16.vlgmr.msra.gmra.mxu1 %v2346_v15  ;;  %2875 = vmatmul.bf16.vlgmr.msra.gmra.mxu2 %v5223_v60  ;;  %v6234_v5 = vadd.f32 %v2254_v26, %v1710_v39 }
 0x229   : > { %3477 = vmatmul.bf16.vlgmr.msra.gmra.mxu3 %v3212_v29 }
 0x22a   : > { %3764 = vmatmul.bf16.vlgmr.msra.gmra.mxu0 %v3637_v22 }
 0x22b   : > { %v1253_v18 = vpop.f32.mrf.mxu2 }
 0x22c   : > { %v1655_v20 = vpop.f32.mrf.mxu3 }
 0x22d   : > { %v998_v51 = vpop.f32.mrf.mxu1  ;;  %v3221_v20 = vshrl.u32 %v5256_v23, 16 }
 0x22e   : > { %v999_v62 = vadd.f32 %v998_v51, %v6105_v1  ;;  %v3225_v51 = vshll.u32 %v5257_v9, 16 }
 0x22f   : > { %v2258_v11 = vpop.f32.mrf.mxu0  ;;  %v3223_v58 = vor.u32 %v3221_v20, %v3219_v8  ;;  %v5258_v8 = vld [vmem:[#allocation2 + $0x38] sm:$0xff] }
 0x233   : > { %v1254_v43 = vpop.f32.mrf.mxu2 }
 0x234   : > { %v1309_v53 = vadd.f32 %v1254_v43, %v999_v62  ;;  %v1656_v26 = vpop.f32.mrf.mxu3  ;;  %v3640_v62 = vrot.slane %v5257_v9, 1 }
 0x235   : > { %v1001_v59 = vpop.f32.mrf.mxu1 }
 0x236   : > { %v1711_v21 = vadd.f32 %v1656_v26, %v1309_v53  ;;  %v1002_v1 = vadd.f32 %v1001_v59, %v6116_v45  ;;  %v5225_v53 = vld [vmem:[#allocation2 + $0x28] sm:$0xff]  ;;  %v2350_v26 = vsel %vm1052_vm1, %v2347_v19, %v2349_v61  ;;  %v3233_v19 = vshll.u32 %v5258_v8, 16 }
 0x237   : > { %v2261_v60 = vpop.f32.mrf.mxu0 }
 0x238   : > { %2478 = vmatmul.bf16.gmra.mxu1 %v2348_v27  ;;  %2880 = vmatmul.bf16.gmra.mxu2 %v5224_v36  ;;  %v6240_v15 = vadd.f32 %v2258_v11, %v1711_v21  ;;  %v3227_v11 = vrot.slane %v3225_v51, 1  ;;  %v3641_v27 = vsel %vm1052_vm1, %v3638_v52, %v3640_v62  ;;  %v3235_v20 = vrot.slane %v3233_v19, 1 }
 0x239   : > { %3482 = vmatmul.bf16.gmra.mxu3 %v3220_v35  ;;  %v3642_v51 = vrot.slane %v5258_v8, 1 }
 0x23a   : > { %3769 = vmatmul.bf16.gmra.mxu0 %v3639_v34  ;;  %v3228_v59 = vsel %vm464_vm0, %v3223_v58, %v3227_v11 }
 0x23b   : > { %v1257_v39 = vpop.f32.mrf.mxu2 }
 0x23c   : > { %v1310_v12 = vadd.f32 %v1257_v39, %v1002_v1  ;;  %v1659_v29 = vpop.f32.mrf.mxu3 }
 0x23d   : > { %v1003_v22 = vpop.f32.mrf.mxu1 }
 0x23e   : > { %v1712_v41 = vadd.f32 %v1659_v29, %v1310_v12  ;;  %v3229_v12 = vshrl.u32 %v5257_v9, 16  ;;  %v5644_v22 = vld [vmem:[#allocation2 + $0x2c] sm:$0xff] }
 0x23f   : > { %v2263_v18 = vpop.f32.mrf.mxu0 }
 0x240   : > { %v6243_v37 = vadd.f32 %v2261_v60, %v1712_v41  ;;  %v2351_v41 = vrot.slane %v5644_v22, 1  ;;  %v3231_v18 = vor.u32 %v3229_v12, %v3227_v11 }
 0x242   : > { %v3236_v9 = vsel %vm464_vm0, %v3231_v18, %v3235_v20  ;;  %v5227_v18 = vld [vmem:[#allocation2 + $0x38] sm:$0xff] }
 0x243   : > { %v1259_v33 = vpop.f32.mrf.mxu2 }
 0x244   : > { %v1661_v43 = vpop.f32.mrf.mxu3  ;;  %v5226_v33 = vld [vmem:[#allocation2 + $0x30] sm:$0xff] }
 0x245   : > { %v1005_v45 = vpop.f32.mrf.mxu1 }
 0x246   : > { %v1006_v23 = vadd.f32 %v1005_v45, %v6042_v25 }
 0x247   : > { %v2265_v36 = vpop.f32.mrf.mxu0 }
 0x248   : > { %2482 = vmatmul.bf16.gmra.mxu1 %v2350_v26  ;;  %2884 = vmatmul.bf16.gmra.mxu2 %v5225_v53  ;;  %v2352_v53 = vsel %vm1052_vm1, %v2349_v61, %v2351_v41  ;;  %v5645_v61 = vld [vmem:[#allocation2 + $0x34] sm:$0xff] }
 0x249   : > { %3486 = vmatmul.bf16.gmra.mxu3 %v3228_v59 }
 0x24a   : > { %3773 = vmatmul.bf16.gmra.mxu0 %v3641_v27 }
 0x24b   : > { %v1261_v21 = vpop.f32.mrf.mxu2 }
 0x24c   : > { %v1311_v60 = vadd.f32 %v1261_v21, %v1006_v23  ;;  %v1663_v35 = vpop.f32.mrf.mxu3 }
 0x24d   : > { %v1007_v34 = vpop.f32.mrf.mxu1 }
 0x24e   : > { %v1713_v1 = vadd.f32 %v1663_v35, %v1311_v60  ;;  %v1008_v52 = vadd.f32 %v1007_v34, %v6051_v54  ;;  %v5259_v54 = vld [vmem:[#allocation2 + $0x40] sm:$0xff]  ;;  %v3237_v60 = vshrl.u32 %v5258_v8, 16  ;;  %v2353_v34 = vrot.slane %v5645_v61, 1 }
 0x24f   : > { %v2267_v39 = vpop.f32.mrf.mxu0  ;;  %v3241_v35 = vshll.u32 %v5259_v54, 16 }
 0x250   : > { %v6249_v29 = vadd.f32 %v2265_v36, %v1713_v1  ;;  %v3643_v36 = vsel %vm1052_vm1, %v3640_v62, %v3642_v51  ;;  %v3239_v12 = vor.u32 %v3237_v60, %v3235_v20  ;;  %v3644_v62 = vrot.slane %v5259_v54, 1  ;;  %v5260_v20 = vld [vmem:[#allocation2 + $0x48] sm:$0xff] }
 0x251   : > { %v3243_v19 = vrot.slane %v3241_v35, 1 }
 0x252   : > { %v3645_v8 = vsel %vm1052_vm1, %v3642_v51, %v3644_v62  ;;  %v5646_v51 = vld [vmem:[#allocation2 + $0x3c] sm:$0xff] }
 0x253   : > { %v1263_v3 = vpop.f32.mrf.mxu2  ;;  %v2355_v35 = vrot.slane %v5646_v51, 1 }
 0x254   : > { %v1312_v25 = vadd.f32 %v1263_v3, %v1008_v52  ;;  %v1665_v58 = vpop.f32.mrf.mxu3 }
 0x255   : > { %v1010_v43 = vpop.f32.mrf.mxu1 }
 0x256   : > { %v1714_v45 = vadd.f32 %v1665_v58, %v1312_v25  ;;  %v2354_v25 = vsel %vm1052_vm1, %v2351_v41, %v2353_v34  ;;  %v3244_v43 = vsel %vm464_vm0, %v3239_v12, %v3243_v19 }
 0x257   : > { %v2270_v26 = vpop.f32.mrf.mxu0 }
 0x258   : > { %2486 = vmatmul.bf16.gmra.mxu1 %v2352_v53  ;;  %2888 = vmatmul.bf16.gmra.mxu2 %v5226_v33  ;;  %v6255_v59 = vadd.f32 %v2267_v39, %v1714_v45 }
 0x259   : > { %3490 = vmatmul.bf16.gmra.mxu3 %v3236_v9 }
 0x25a   : > { %3777 = vmatmul.bf16.gmra.mxu0 %v3643_v36 }
 0x25b   : > { %v1266_v11 = vpop.f32.mrf.mxu2 }
 0x25c   : > { %v1668_v27 = vpop.f32.mrf.mxu3 }
 0x25d   : > { %v1011_v23 = vpop.f32.mrf.mxu1  ;;  %v3245_v27 = vshrl.u32 %v5259_v54, 16 }
 0x25e   : > { %v1012_v1 = vadd.f32 %v1011_v23, %v6063_v57  ;;  %v3249_v23 = vshll.u32 %v5260_v20, 16 }
 0x25f   : > { %v2271_v21 = vpop.f32.mrf.mxu0  ;;  %v3247_v61 = vor.u32 %v3245_v27, %v3243_v19  ;;  %v5261_v19 = vld [vmem:[#allocation2 + $0x50] sm:$0xff] }
 0x263   : > { %v1267_v22 = vpop.f32.mrf.mxu2 }
 0x264   : > { %v1313_v52 = vadd.f32 %v1267_v22, %v1012_v1  ;;  %v1669_v39 = vpop.f32.mrf.mxu3  ;;  %v3646_v1 = vrot.slane %v5260_v20, 1 }
 0x265   : > { %v1014_v3 = vpop.f32.mrf.mxu1 }
 0x266   : > { %v1715_v58 = vadd.f32 %v1669_v39, %v1313_v52  ;;  %v1015_v57 = vadd.f32 %v1014_v3, %v6074_v0  ;;  %v5228_v52 = vld [vmem:[#allocation2 + $0x40] sm:$0xff]  ;;  %v2356_v39 = vsel %vm1052_vm1, %v2353_v34, %v2355_v35  ;;  %v3257_v34 = vshll.u32 %v5261_v19, 16 }
 0x267   : > { %v2274_v33 = vpop.f32.mrf.mxu0 }
 0x268   : > { %2491 = vmatmul.bf16.gmra.mxu1 %v2354_v25  ;;  %2893 = vmatmul.bf16.gmra.mxu2 %v5227_v18  ;;  %v6261_v53 = vadd.f32 %v2271_v21, %v1715_v58  ;;  %v3251_v21 = vrot.slane %v3249_v23, 1  ;;  %v3647_v25 = vsel %vm1052_vm1, %v3644_v62, %v3646_v1  ;;  %v3259_v27 = vrot.slane %v3257_v34, 1 }
 0x269   : > { %3495 = vmatmul.bf16.gmra.mxu3 %v3244_v43  ;;  %v3648_v23 = vrot.slane %v5261_v19, 1 }
 0x26a   : > { %3782 = vmatmul.bf16.gmra.mxu0 %v3645_v8  ;;  %v3252_v3 = vsel %vm464_vm0, %v3247_v61, %v3251_v21 }
 0x26b   : > { %v1270_v45 = vpop.f32.mrf.mxu2 }
 0x26c   : > { %v1314_v26 = vadd.f32 %v1270_v45, %v1015_v57  ;;  %v1672_v9 = vpop.f32.mrf.mxu3 }
 0x26d   : > { %v1016_v36 = vpop.f32.mrf.mxu1 }
 0x26e   : > { %v1716_v41 = vadd.f32 %v1672_v9, %v1314_v26  ;;  %v3253_v26 = vshrl.u32 %v5260_v20, 16  ;;  %v5647_v36 = vld [vmem:[#allocation2 + $0x44] sm:$0xff] }
 0x26f   : > { %v2276_v11 = vpop.f32.mrf.mxu0 }
 0x270   : > { %v6264_v60 = vadd.f32 %v2274_v33, %v1716_v41  ;;  %v2357_v41 = vrot.slane %v5647_v36, 1  ;;  %v3255_v11 = vor.u32 %v3253_v26, %v3251_v21 }
 0x272   : > { %v3260_v20 = vsel %vm464_vm0, %v3255_v11, %v3259_v27  ;;  %v5230_v11 = vld [vmem:[#allocation2 + $0x50] sm:$0xff] }
 0x273   : > { %v1272_v12 = vpop.f32.mrf.mxu2 }
 0x274   : > { %v1674_v22 = vpop.f32.mrf.mxu3  ;;  %v5229_v12 = vld [vmem:[#allocation2 + $0x48] sm:$0xff] }
 0x275   : > { %v1018_v0 = vpop.f32.mrf.mxu1 }
 0x276   : > { %v1019_v54 = vadd.f32 %v1018_v0, %v6086_v42 }
 0x277   : > { %v2278_v18 = vpop.f32.mrf.mxu0 }
 0x278   : > { %2495 = vmatmul.bf16.gmra.mxu1 %v2356_v39  ;;  %2897 = vmatmul.bf16.gmra.mxu2 %v5228_v52  ;;  %v2358_v52 = vsel %vm1052_vm1, %v2355_v35, %v2357_v41  ;;  %v5648_v35 = vld [vmem:[#allocation2 + $0x4c] sm:$0xff] }
 0x279   : > { %3499 = vmatmul.bf16.gmra.mxu3 %v3252_v3 }
 0x27a   : > { %3786 = vmatmul.bf16.gmra.mxu0 %v3647_v25 }
 0x27b   : > { %v1274_v58 = vpop.f32.mrf.mxu2 }
 0x27c   : > { %v1315_v33 = vadd.f32 %v1274_v58, %v1019_v54  ;;  %v1676_v43 = vpop.f32.mrf.mxu3 }
 0x27d   : > { %v1020_v8 = vpop.f32.mrf.mxu1 }
 0x27e   : > { %v1717_v57 = vadd.f32 %v1676_v43, %v1315_v33  ;;  %v1021_v62 = vadd.f32 %v1020_v8, %v6095_v40  ;;  %v5262_v40 = vld [vmem:[#allocation2 + $0x58] sm:$0xff]  ;;  %v3261_v33 = vshrl.u32 %v5261_v19, 16  ;;  %v2359_v8 = vrot.slane %v5648_v35, 1 }
 0x27f   : > { %v2280_v45 = vpop.f32.mrf.mxu0  ;;  %v3265_v43 = vshll.u32 %v5262_v40, 16 }
 0x280   : > { %v6270_v9 = vadd.f32 %v2278_v18, %v1717_v57  ;;  %v3649_v18 = vsel %vm1052_vm1, %v3646_v1, %v3648_v23  ;;  %v3263_v26 = vor.u32 %v3261_v33, %v3259_v27  ;;  %v3650_v1 = vrot.slane %v5262_v40, 1  ;;  %v5263_v27 = vld [vmem:[#allocation2 + $0x60] sm:$0xff] }
 0x281   : > { %v3267_v34 = vrot.slane %v3265_v43, 1 }
 0x282   : > { %v3651_v19 = vsel %vm1052_vm1, %v3648_v23, %v3650_v1  ;;  %v5649_v23 = vld [vmem:[#allocation2 + $0x54] sm:$0xff] }
 0x283   : > { %v1276_v51 = vpop.f32.mrf.mxu2  ;;  %v2361_v43 = vrot.slane %v5649_v23, 1 }
 0x284   : > { %v1316_v42 = vadd.f32 %v1276_v51, %v1021_v62  ;;  %v1678_v61 = vpop.f32.mrf.mxu3 }
 0x285   : > { %v1023_v22 = vpop.f32.mrf.mxu1 }
 0x286   : > { %v1718_v0 = vadd.f32 %v1678_v61, %v1316_v42  ;;  %v2360_v42 = vsel %vm1052_vm1, %v2357_v41, %v2359_v8  ;;  %v3268_v22 = vsel %vm464_vm0, %v3263_v26, %v3267_v34 }
 0x287   : > { %v2283_v39 = vpop.f32.mrf.mxu0 }
 0x288   : > { %2499 = vmatmul.bf16.gmra.mxu1 %v2358_v52  ;;  %2901 = vmatmul.bf16.gmra.mxu2 %v5229_v12  ;;  %v6276_v3 = vadd.f32 %v2280_v45, %v1718_v0 }
 0x289   : > { %3503 = vmatmul.bf16.gmra.mxu3 %v3260_v20 }
 0x28a   : > { %3790 = vmatmul.bf16.gmra.mxu0 %v3649_v18 }
 0x28b   : > { %v1279_v21 = vpop.f32.mrf.mxu2 }
 0x28c   : > { %v1681_v25 = vpop.f32.mrf.mxu3 }
 0x28d   : > { %v1024_v54 = vpop.f32.mrf.mxu1  ;;  %v3269_v25 = vshrl.u32 %v5262_v40, 16 }
 0x28e   : > { %v1025_v57 = vadd.f32 %v1024_v54, %v6107_v14  ;;  %v3273_v54 = vshll.u32 %v5263_v27, 16 }
 0x28f   : > { %v2284_v58 = vpop.f32.mrf.mxu0  ;;  %v3271_v35 = vor.u32 %v3269_v25, %v3267_v34  ;;  %v6291_v34 = vld [vmem:[#allocation2 + $0x68] sm:$0xff] }
 0x293   : > { %v1280_v36 = vpop.f32.mrf.mxu2 }
 0x294   : > { %v1317_v62 = vadd.f32 %v1280_v36, %v1025_v57  ;;  %v1682_v45 = vpop.f32.mrf.mxu3  ;;  %v3652_v57 = vrot.slane %v5263_v27, 1 }
 0x295   : > { %v1027_v51 = vpop.f32.mrf.mxu1 }
 0x296   : > { %v1719_v61 = vadd.f32 %v1682_v45, %v1317_v62  ;;  %v1028_v14 = vadd.f32 %v1027_v51, %v6118_v46  ;;  %v5231_v62 = vld [vmem:[#allocation2 + $0x58] sm:$0xff]  ;;  %v2362_v45 = vsel %vm1052_vm1, %v2359_v8, %v2361_v43  ;;  %v6296_v8 = vld [vmem:[%s6577_s2] ss:$0 sm:$0xff] }
 0x297   : > { %v2287_v12 = vpop.f32.mrf.mxu0 }
 0x298   : > { %2504 = vmatmul.bf16.gmra.mxu1 %v2360_v42  ;;  %2906 = vmatmul.bf16.gmra.mxu2 %v5230_v11  ;;  %v6282_v52 = vadd.f32 %v2284_v58, %v1719_v61  ;;  %v3275_v58 = vrot.slane %v3273_v54, 1  ;;  %v3653_v42 = vsel %vm1052_vm1, %v3650_v1, %v3652_v57 }
 0x299   : > { %3508 = vmatmul.bf16.gmra.mxu3 %v3268_v22 }
 0x29a   : > { %3795 = vmatmul.bf16.gmra.mxu0 %v3651_v19  ;;  %v3276_v51 = vsel %vm464_vm0, %v3271_v35, %v3275_v58 }
 0x29b   : > { %v1283_v0 = vpop.f32.mrf.mxu2 }
 0x29c   : > { %v1318_v39 = vadd.f32 %v1283_v0, %v1028_v14  ;;  %v1685_v20 = vpop.f32.mrf.mxu3  ;;  %v3277_v14 = vshrl.u32 %v5263_v27, 16  ;;  %v3654_v27 = vrot.slane %v6291_v34, 1 }
 0x29d   : > { %v1029_v18 = vpop.f32.mrf.mxu1 }
 0x29e   : > { %v1720_v41 = vadd.f32 %v1685_v20, %v1318_v39  ;;  %v3281_v39 = vshll.u32 %v6291_v34, 16  ;;  %v5650_v18 = vld [vmem:[#allocation2 + $0x5c] sm:$0xff] }
 0x29f   : > { %v2289_v21 = vpop.f32.mrf.mxu0 }
 0x2a0   : > { %v6285_v33 = vadd.f32 %v2287_v12, %v1720_v41  ;;  %v2363_v41 = vrot.slane %v5650_v18, 1  ;;  %v3283_v54 = vrot.slane %v3281_v39, 1  ;;  %v5651_v18 = vld [vmem:[#allocation2 + $0x64] sm:$0xff] }
 0x2a3   : > { %v1285_v26 = vpop.f32.mrf.mxu2 }
 0x2a4   : > { %v1687_v36 = vpop.f32.mrf.mxu3 }
 0x2a5   : > { %v2474_v46 = vpop.f32.mrf.mxu1 }
 0x2a6   : > { %v2578_v40 = vadd.f32 %v2474_v46, %v6125_v55  ;;  %v3279_v55 = vor.u32 %v3277_v14, %v3275_v58 }
 0x2a7   : > { %v3765_v11 = vpop.f32.mrf.mxu0 }
 0x2a8   : > { %2508 = vmatmul.bf16.gmra.mxu1 %v2362_v45  ;;  %2910 = vmatmul.bf16.gmra.mxu2 %v5231_v62  ;;  %v5232_v62 = vld [vmem:[#allocation2 + $0x60] sm:$0xff]  ;;  %v2364_v45 = vsel %vm1052_vm1, %v2361_v43, %v2363_v41 }
 0x2a9   : > { %3512 = vmatmul.bf16.gmra.mxu3 %v3276_v51 }
 0x2aa   : > { %3799 = vmatmul.bf16.gmra.mxu0 %v3653_v42  ;;  %v3284_v42 = vsel %vm464_vm0, %v3279_v55, %v3283_v54  ;;  %v2365_v55 = vrot.slane %v5651_v18, 1 }
 0x2ab   : > { %v2876_v61 = vpop.f32.mrf.mxu2 }
 0x2ac   : > { %v2980_v12 = vadd.f32 %v2876_v61, %v2578_v40  ;;  %v3478_v22 = vpop.f32.mrf.mxu3  ;;  %v3655_v40 = vsel %vm1052_vm1, %v3652_v57, %v3654_v27 }
 0x2ad   : > { %v2476_v19 = vpop.f32.mrf.mxu1 }
 0x2ae   : > { %v3582_v0 = vadd.f32 %v3478_v22, %v2980_v12  ;;  %v2579_v25 = vadd.f32 %v2476_v19, %v6132_v16  ;;  %v6309_v12 = vld [vmem:[#allocation2 + $0x70] sm:$0xff] }
 0x2af   : > { %v3767_v1 = vpop.f32.mrf.mxu0  ;;  %v3289_v57 = vshll.u32 %v6309_v12, 16 }
 0x2b0   : > { %v3869_v20 = vadd.f32 %v3765_v11, %v3582_v0 }
 0x2b2   : > { %v6300_v21 = vadd.f32 %v6296_v8, %v3869_v20  ;;  %v3285_v20 = vshrl.u32 %v6291_v34, 16  ;;  %v2366_v34 = vsel %vm1052_vm1, %v2363_v41, %v2365_v55 }
 0x2b3   : > { %v2878_v23 = vpop.f32.mrf.mxu2 }
 0x2b4   : > { %v3937_v35 = vsub.f32 0.0, %v6300_v21  ;;  %v2981_v26 = vadd.f32 %v2878_v23, %v2579_v25  ;;  %v3480_v36 = vpop.f32.mrf.mxu3  ;;  %v3287_v23 = vor.u32 %v3285_v20, %v3283_v54 }
 0x2b5   : > { %v2479_v46 = vpop.f32.mrf.mxu1 }
 0x2b6   : > { %v3969_v11 = vmul.f32 1.442695, %v3937_v35  ;;  %v3583_v51 = vadd.f32 %v3480_v36, %v2981_v26  ;;  %v3291_v35 = vrot.slane %v3289_v57, 1  ;;  %v3656_v26 = vrot.slane %v6309_v12, 1 }
 0x2b7   : > { %v3770_v58 = vpop.f32.mrf.mxu0 }
 0x2b8   : > { %v3870_v16 = vadd.f32 %v3767_v1, %v3583_v51  ;;  %2512 = vmatmul.bf16.gmra.mxu1 %v2364_v45  ;;  %2914 = vmatmul.bf16.gmra.mxu2 %v5232_v62  ;;  %5501 = vpow2.f32 %v3969_v11  ;;  %v5233_v11 = vld [vmem:[#allocation2 + $0x68] sm:$0xff] }
 0x2b9   : > { %3516 = vmatmul.bf16.gmra.mxu3 %v3284_v42 }
 0x2ba   : > { %3803 = vmatmul.bf16.gmra.mxu0 %v3655_v40  ;;  %v3906_v61 = vadd.f32 %v6296_v8, %v3870_v16  ;;  %v3292_v16 = vsel %vm464_vm0, %v3287_v23, %v3291_v35 }
 0x2bb   : > { %v2881_v22 = vpop.f32.mrf.mxu2 }
 0x2bc   : > { %v3938_v19 = vsub.f32 0.0, %v3906_v61  ;;  %v3483_v43 = vpop.f32.mrf.mxu3  ;;  %v3657_v22 = vsel %vm1052_vm1, %v3654_v27, %v3656_v26 }
 0x2bd   : > { %v2480_v14 = vpop.f32.mrf.mxu1 }
 0x2be   : > { %v3971_v0 = vmul.f32 1.442695, %v3938_v19  ;;  %v5502_v1 = vpop.eup %5501  ;;  %v2580_v25 = vadd.f32 %v2480_v14, %v6139_v31  ;;  %v6318_v19 = vld [vmem:[#allocation2 + $0x78] sm:$0xff] }
 0x2bf   : > { %v3771_v39 = vpop.f32.mrf.mxu0  ;;  %v4033_v36 = vadd.f32 1.0, %v5502_v1  ;;  %v3297_v18 = vshll.u32 %v6318_v19, 16 }
 0x2c0   : > { %5503 = vpow2.f32 %v3971_v0 }
 0x2c1   : > { %5505 = vrcp.f32 %v4033_v36 }
 0x2c3   : > { %v2882_v62 = vpop.f32.mrf.mxu2 }
 0x2c4   : > { %v2982_v46 = vadd.f32 %v2882_v62, %v2580_v25  ;;  %v3484_v45 = vpop.f32.mrf.mxu3 }
 0x2c5   : > { %v2483_v51 = vpop.f32.mrf.mxu1 }
 0x2c6   : > { %v5504_v58 = vpop.eup %5503  ;;  %v3584_v42 = vadd.f32 %v3484_v45, %v2982_v46  ;;  %v2581_v41 = vadd.f32 %v2483_v51, %v6142_v2 }
 0x2c7   : > { %v3774_v40 = vpop.f32.mrf.mxu0  ;;  %v4034_v31 = vadd.f32 1.0, %v5504_v58  ;;  %v5506_v57 = vpop.eup %5505  ;;  %v3299_v58 = vrot.slane %v3297_v18, 1 }
 0x2c8   : > { %v3871_v54 = vadd.f32 %v3771_v39, %v3584_v42  ;;  %2517 = vmatmul.bf16.gmra.mxu1 %v2366_v34  ;;  %2919 = vmatmul.bf16.gmra.mxu2 %v5233_v11  ;;  %v3293_v39 = vshrl.u32 %v6309_v12, 16  ;;  %v4097_v46 = vmul.f32 %v5506_v57, %v6300_v21  ;;  %v5652_v11 = vld [vmem:[#allocation2 + $0x6c] sm:$0xff]  ;;  %v3658_v12 = vrot.slane %v6318_v19, 1  ;;  %v6335_v57 = vld [vmem:[#allocation2 + $0x80] sm:$0xff] }
 0x2c9   : > { %5507 = vrcp.f32 %v4034_v31  ;;  %3521 = vmatmul.bf16.gmra.mxu3 %v3292_v16  ;;  %v2367_v51 = vrot.slane %v5652_v11, 1  ;;  %v5653_v11 = vld [vmem:[#allocation2 + $0x74] sm:$0xff] }
 0x2ca   : > { %3808 = vmatmul.bf16.gmra.mxu0 %v3657_v22  ;;  %v6321_v43 = vadd.f32 %v6296_v8, %v3871_v54  ;;  %v3295_v34 = vor.u32 %v3293_v39, %v3291_v35  ;;  %v3659_v35 = vsel %vm1052_vm1, %v3656_v26, %v3658_v12 }
 0x2cb   : > { %v2885_v14 = vpop.f32.mrf.mxu2  ;;  %v2368_v21 = vsel %vm1052_vm1, %v2365_v55, %v2367_v51 }
 0x2cc   : > { %v3939_v0 = vsub.f32 0.0, %v6321_v43  ;;  %v2983_v20 = vadd.f32 %v2885_v14, %v2581_v41  ;;  %v3487_v27 = vpop.f32.mrf.mxu3  ;;  %v5234_v41 = vld [vmem:[#allocation2 + $0x70] sm:$0xff] }
 0x2cd   : > { %v2485_v1 = vpop.f32.mrf.mxu1 }
 0x2ce   : > { %v3973_v25 = vmul.f32 1.442695, %v3939_v0  ;;  %v3585_v23 = vadd.f32 %v3487_v27, %v2983_v20  ;;  %v3300_v0 = vsel %vm464_vm0, %v3295_v34, %v3299_v58 }
 0x2cf   : > { %v3776_v36 = vpop.f32.mrf.mxu0  ;;  %v5508_v62 = vpop.eup %5507 }
 0x2d0   : > { %v4098_v45 = vmul.f32 %v5508_v62, %v3906_v61  ;;  %v3872_v2 = vadd.f32 %v3774_v40, %v3585_v23  ;;  %5509 = vpow2.f32 %v3973_v25  ;;  %v3301_v23 = vshrl.u32 %v6318_v19, 16 }
 0x2d1   : > { %v3660_v19 = vrot.slane %v6335_v57, 1 }
 0x2d2   : > { %v5306_v42 = vpack.c.bf16 %v4098_v45, %v4097_v46  ;;  %v3908_v16 = vadd.f32 %v6296_v8, %v3872_v2  ;;  %v3305_v46 = vshll.u32 %v6335_v57, 16  ;;  %v3303_v34 = vor.u32 %v3301_v23, %v3299_v58 }
 0x2d3   : > { %v2887_v22 = vpop.f32.mrf.mxu2 }
 0x2d4   : > { %5307 = vst [vmem:[%s5905_s5] sm:$0xff] %v5306_v42   ;;  %v3940_v31 = vsub.f32 0.0, %v3908_v16  ;;  %v3489_v54 = vpop.f32.mrf.mxu3 }
 0x2d5   : > { %v2487_v14 = vpop.f32.mrf.mxu1 }
 0x2d6   : > { %v3975_v61 = vmul.f32 1.442695, %v3940_v31  ;;  %v5510_v20 = vpop.eup %5509  ;;  %v2582_v27 = vadd.f32 %v2487_v14, %v6148_v10  ;;  %v2369_v10 = vrot.slane %v5653_v11, 1  ;;  %v3307_v31 = vrot.slane %v3305_v46, 1 }
 0x2d7   : > { %v3778_v40 = vpop.f32.mrf.mxu0  ;;  %v4035_v1 = vadd.f32 1.0, %v5510_v20 }
 0x2d8   : > { %5511 = vpow2.f32 %v3975_v61  ;;  %2521 = vmatmul.bf16.gmra.mxu1 %v2368_v21  ;;  %2923 = vmatmul.bf16.gmra.mxu2 %v5234_v41  ;;  %v5235_v61 = vld [vmem:[#allocation2 + $0x78] sm:$0xff] }
 0x2d9   : > { %3525 = vmatmul.bf16.gmra.mxu3 %v3300_v0  ;;  %5513 = vrcp.f32 %v4035_v1  ;;  %v3308_v1 = vsel %vm464_vm0, %v3303_v34, %v3307_v31  ;;  %v5654_v34 = vld [vmem:[#allocation2 + $0x7c] sm:$0xff] }
 0x2da   : > { %3812 = vmatmul.bf16.gmra.mxu0 %v3659_v35  ;;  %v2370_v35 = vsel %vm1052_vm1, %v2367_v51, %v2369_v10 }
 0x2db   : > { %v2889_v39 = vpop.f32.mrf.mxu2 }
 0x2dc   : > { %v2984_v18 = vadd.f32 %v2889_v39, %v2582_v27  ;;  %v3491_v55 = vpop.f32.mrf.mxu3 }
 0x2dd   : > { %v2489_v25 = vpop.f32.mrf.mxu1 }
 0x2de   : > { %v5512_v36 = vpop.eup %5511  ;;  %v3586_v62 = vadd.f32 %v3491_v55, %v2984_v18  ;;  %v2583_v22 = vadd.f32 %v2489_v25, %v6153_v63  ;;  %v3661_v63 = vsel %vm1052_vm1, %v3658_v12, %v3660_v19 }
 0x2df   : > { %v3780_v26 = vpop.f32.mrf.mxu0  ;;  %v4036_v45 = vadd.f32 1.0, %v5512_v36  ;;  %v5514_v0 = vpop.eup %5513  ;;  %v6350_v36 = vld [vmem:[#allocation2 + $0x88] sm:$0xff] }
 0x2e0   : > { %v3873_v2 = vadd.f32 %v3778_v40, %v3586_v62  ;;  %v4099_v18 = vmul.f32 %v5514_v0, %v6321_v43  ;;  %v3309_v43 = vshrl.u32 %v6335_v57, 16 }
 0x2e1   : > { %5515 = vrcp.f32 %v4036_v45 }
 0x2e2   : > { %v6340_v42 = vadd.f32 %v6296_v8, %v3873_v2 }
 0x2e3   : > { %v2891_v54 = vpop.f32.mrf.mxu2 }
 0x2e4   : > { %v3941_v41 = vsub.f32 0.0, %v6340_v42  ;;  %v2985_v14 = vadd.f32 %v2891_v54, %v2583_v22  ;;  %v3493_v21 = vpop.f32.mrf.mxu3  ;;  %v2371_v22 = vrot.slane %v5654_v34, 1 }
 0x2e5   : > { %v2492_v40 = vpop.f32.mrf.mxu1 }
 0x2e6   : > { %v3977_v20 = vmul.f32 1.442695, %v3941_v41  ;;  %v3587_v58 = vadd.f32 %v3493_v21, %v2985_v14  ;;  %v3311_v41 = vor.u32 %v3309_v43, %v3307_v31  ;;  %v3662_v21 = vrot.slane %v6350_v36, 1 }
 0x2e7   : > { %v3783_v27 = vpop.f32.mrf.mxu0  ;;  %v5516_v39 = vpop.eup %5515  ;;  %v2372_v57 = vsel %vm1052_vm1, %v2369_v10, %v2371_v22 }
 0x2e8   : > { %v4100_v55 = vmul.f32 %v5516_v39, %v3908_v16  ;;  %v3874_v25 = vadd.f32 %v3780_v26, %v3587_v58  ;;  %2525 = vmatmul.bf16.gmra.mxu1 %v2370_v35  ;;  %2927 = vmatmul.bf16.gmra.mxu2 %v5235_v61  ;;  %5517 = vpow2.f32 %v3977_v20  ;;  %v3313_v16 = vshll.u32 %v6350_v36, 16  ;;  %v5236_v20 = vld [vmem:[#allocation2 + $0x80] sm:$0xff] }
 0x2e9   : > { %3529 = vmatmul.bf16.gmra.mxu3 %v3308_v1 }
 0x2ea   : > { %3816 = vmatmul.bf16.gmra.mxu0 %v3661_v63  ;;  %v5311_v23 = vpack.c.bf16 %v4100_v55, %v4099_v18  ;;  %v3910_v51 = vadd.f32 %v6296_v8, %v3874_v25  ;;  %v3315_v14 = vrot.slane %v3313_v16, 1  ;;  %v3663_v18 = vsel %vm1052_vm1, %v3660_v19, %v3662_v21  ;;  %v6360_v55 = vld [vmem:[#allocation2 + $0x90] sm:$0xff] }
 0x2eb   : > { %v2894_v62 = vpop.f32.mrf.mxu2 }
 0x2ec   : > { %5390 = vst [vmem:[%s5905_s5 + $0x8] sm:$0xff] %v5311_v23   ;;  %v3942_v46 = vsub.f32 0.0, %v3910_v51  ;;  %v3496_v45 = vpop.f32.mrf.mxu3  ;;  %v3316_v39 = vsel %vm464_vm0, %v3311_v41, %v3315_v14 }
 0x2ed   : > { %v2493_v12 = vpop.f32.mrf.mxu1 }
 0x2ee   : > { %v3979_v2 = vmul.f32 1.442695, %v3942_v46  ;;  %v5518_v26 = vpop.eup %5517  ;;  %v2584_v54 = vadd.f32 %v2493_v12, %v6158_v17 }
 0x2ef   : > { %v3784_v11 = vpop.f32.mrf.mxu0  ;;  %v4037_v61 = vadd.f32 1.0, %v5518_v26 }
 0x2f0   : > { %5519 = vpow2.f32 %v3979_v2  ;;  %v3317_v2 = vshrl.u32 %v6350_v36, 16  ;;  %v3664_v36 = vrot.slane %v6360_v55, 1 }
 0x2f1   : > { %5521 = vrcp.f32 %v4037_v61  ;;  %v5655_v61 = vld [vmem:[#allocation2 + $0x84] sm:$0xff] }
 0x2f3   : > { %v2895_v0 = vpop.f32.mrf.mxu2 }
 0x2f4   : > { %v2986_v40 = vadd.f32 %v2895_v0, %v2584_v54  ;;  %v3497_v35 = vpop.f32.mrf.mxu3  ;;  %v2373_v0 = vrot.slane %v5655_v61, 1 }
 0x2f5   : > { %v2496_v58 = vpop.f32.mrf.mxu1 }
 0x2f6   : > { %v5520_v27 = vpop.eup %5519  ;;  %v3588_v1 = vadd.f32 %v3497_v35, %v2986_v40  ;;  %v2585_v10 = vadd.f32 %v2496_v58, %v6161_v24  ;;  %v3319_v40 = vor.u32 %v3317_v2, %v3315_v14  ;;  %v3665_v14 = vsel %vm1052_vm1, %v3662_v21, %v3664_v36 }
 0x2f7   : > { %v3787_v63 = vpop.f32.mrf.mxu0  ;;  %v4038_v17 = vadd.f32 1.0, %v5520_v27  ;;  %v5522_v45 = vpop.eup %5521 }
 0x2f8   : > { %v3875_v31 = vadd.f32 %v3784_v11, %v3588_v1  ;;  %2530 = vmatmul.bf16.gmra.mxu1 %v2372_v57  ;;  %2932 = vmatmul.bf16.gmra.mxu2 %v5236_v20  ;;  %v3321_v11 = vshll.u32 %v6360_v55, 16  ;;  %v4101_v54 = vmul.f32 %v5522_v45, %v6340_v42  ;;  %v2374_v42 = vsel %vm1052_vm1, %v2371_v22, %v2373_v0 }
 0x2f9   : > { %5523 = vrcp.f32 %v4038_v17  ;;  %3534 = vmatmul.bf16.gmra.mxu3 %v3316_v39  ;;  %v5237_v39 = vld [vmem:[#allocation2 + $0x88] sm:$0xff] }
 0x2fa   : > { %3821 = vmatmul.bf16.gmra.mxu0 %v3663_v18  ;;  %v6363_v25 = vadd.f32 %v6296_v8, %v3875_v31  ;;  %v3323_v35 = vrot.slane %v3321_v11, 1 }
 0x2fb   : > { %v2898_v23 = vpop.f32.mrf.mxu2 }
 0x2fc   : > { %v3943_v62 = vsub.f32 0.0, %v6363_v25  ;;  %v2987_v46 = vadd.f32 %v2898_v23, %v2585_v10  ;;  %v3500_v19 = vpop.f32.mrf.mxu3  ;;  %v3324_v17 = vsel %vm464_vm0, %v3319_v40, %v3323_v35  ;;  %v6377_v23 = vld [vmem:[#allocation2 + $0x98] sm:$0xff] }
 0x2fd   : > { %v2498_v12 = vpop.f32.mrf.mxu1 }
 0x2fe   : > { %v3981_v43 = vmul.f32 1.442695, %v3943_v62  ;;  %v3589_v16 = vadd.f32 %v3500_v19, %v2987_v46  ;;  %v3325_v12 = vshrl.u32 %v6360_v55, 16  ;;  %v3666_v55 = vrot.slane %v6377_v23, 1 }
 0x2ff   : > { %v3789_v26 = vpop.f32.mrf.mxu0  ;;  %v5524_v34 = vpop.eup %5523 }
 0x300   : > { %v4102_v41 = vmul.f32 %v5524_v34, %v3910_v51  ;;  %v3876_v24 = vadd.f32 %v3787_v63, %v3589_v16  ;;  %5525 = vpow2.f32 %v3981_v43  ;;  %v3329_v43 = vshll.u32 %v6377_v23, 16  ;;  %v5656_v34 = vld [vmem:[#allocation2 + $0x8c] sm:$0xff] }
 0x302   : > { %v5316_v20 = vpack.c.bf16 %v4102_v41, %v4101_v54  ;;  %v3912_v58 = vadd.f32 %v6296_v8, %v3876_v24  ;;  %v3327_v54 = vor.u32 %v3325_v12, %v3323_v35  ;;  %v3331_v61 = vrot.slane %v3329_v43, 1  ;;  %v5657_v43 = vld [vmem:[#allocation2 + $0x94] sm:$0xff] }
 0x303   : > { %v2900_v57 = vpop.f32.mrf.mxu2 }
 0x304   : > { %5391 = vst [vmem:[%s5905_s5 + $0x10] sm:$0xff] %v5316_v20   ;;  %v3944_v27 = vsub.f32 0.0, %v3912_v58  ;;  %v3502_v1 = vpop.f32.mrf.mxu3 }
 0x305   : > { %v2500_v18 = vpop.f32.mrf.mxu1  ;;  %v5238_v1 = vld [vmem:[#allocation2 + $0x90] sm:$0xff] }
 0x306   : > { %v3983_v51 = vmul.f32 1.442695, %v3944_v27  ;;  %v5526_v31 = vpop.eup %5525  ;;  %v2586_v10 = vadd.f32 %v2500_v18, %v6167_v7  ;;  %v2375_v7 = vrot.slane %v5656_v34, 1 }
 0x307   : > { %v3791_v63 = vpop.f32.mrf.mxu0  ;;  %v4039_v62 = vadd.f32 1.0, %v5526_v31 }
 0x308   : > { %5527 = vpow2.f32 %v3983_v51  ;;  %2534 = vmatmul.bf16.gmra.mxu1 %v2374_v42  ;;  %2936 = vmatmul.bf16.gmra.mxu2 %v5237_v39  ;;  %v2376_v42 = vsel %vm1052_vm1, %v2373_v0, %v2375_v7 }
 0x309   : > { %3538 = vmatmul.bf16.gmra.mxu3 %v3324_v17  ;;  %5529 = vrcp.f32 %v4039_v62  ;;  %v3332_v17 = vsel %vm464_vm0, %v3327_v54, %v3331_v61 }
 0x30a   : > { %3825 = vmatmul.bf16.gmra.mxu0 %v3665_v14 }
 0x30b   : > { %v2902_v46 = vpop.f32.mrf.mxu2 }
 0x30c   : > { %v2988_v19 = vadd.f32 %v2902_v46, %v2586_v10  ;;  %v3504_v22 = vpop.f32.mrf.mxu3 }
 0x30d   : > { %v2502_v45 = vpop.f32.mrf.mxu1 }
 0x30e   : > { %v5528_v2 = vpop.eup %5527  ;;  %v3590_v11 = vadd.f32 %v3504_v22, %v2988_v19  ;;  %v2587_v24 = vadd.f32 %v2502_v45, %v6173_v4  ;;  %v3667_v4 = vsel %vm1052_vm1, %v3664_v36, %v3666_v55  ;;  %v6392_v19 = vld [vmem:[#allocation2 + $0xa0] sm:$0xff] }
 0x30f   : > { %v3793_v21 = vpop.f32.mrf.mxu0  ;;  %v4040_v16 = vadd.f32 1.0, %v5528_v2  ;;  %v5530_v39 = vpop.eup %5529 }
 0x310   : > { %v3877_v26 = vadd.f32 %v3791_v63, %v3590_v11  ;;  %v4103_v31 = vmul.f32 %v5530_v39, %v6363_v25  ;;  %v3333_v25 = vshrl.u32 %v6377_v23, 16 }
 0x311   : > { %5531 = vrcp.f32 %v4040_v16  ;;  %v2377_v16 = vrot.slane %v5657_v43, 1 }
 0x312   : > { %v6382_v41 = vadd.f32 %v6296_v8, %v3877_v26  ;;  %v3335_v34 = vor.u32 %v3333_v25, %v3331_v61 }
 0x313   : > { %v2904_v40 = vpop.f32.mrf.mxu2  ;;  %v2378_v23 = vsel %vm1052_vm1, %v2375_v7, %v2377_v16 }
 0x314   : > { %v3945_v20 = vsub.f32 0.0, %v6382_v41  ;;  %v2989_v57 = vadd.f32 %v2904_v40, %v2587_v24  ;;  %v3506_v27 = vpop.f32.mrf.mxu3  ;;  %v3668_v24 = vrot.slane %v6392_v19, 1 }
 0x315   : > { %v2505_v18 = vpop.f32.mrf.mxu1 }
 0x316   : > { %v3985_v51 = vmul.f32 1.442695, %v3945_v20  ;;  %v3591_v35 = vadd.f32 %v3506_v27, %v2989_v57 }
 0x317   : > { %v3796_v63 = vpop.f32.mrf.mxu0  ;;  %v5532_v14 = vpop.eup %5531 }
 0x318   : > { %v4104_v10 = vmul.f32 %v5532_v14, %v3912_v58  ;;  %v3878_v62 = vadd.f32 %v3793_v21, %v3591_v35  ;;  %2538 = vmatmul.bf16.gmra.mxu1 %v2376_v42  ;;  %2940 = vmatmul.bf16.gmra.mxu2 %v5238_v1  ;;  %5533 = vpow2.f32 %v3985_v51  ;;  %v3337_v58 = vshll.u32 %v6392_v19, 16  ;;  %v5239_v1 = vld [vmem:[#allocation2 + $0x98] sm:$0xff] }
 0x319   : > { %3542 = vmatmul.bf16.gmra.mxu3 %v3332_v17  ;;  %v3669_v63 = vsel %vm1052_vm1, %v3666_v55, %v3668_v24  ;;  %v6402_v17 = vld [vmem:[#allocation2 + $0xa8] sm:$0xff] }
 0x31a   : > { %3829 = vmatmul.bf16.gmra.mxu0 %v3667_v4  ;;  %v5321_v46 = vpack.c.bf16 %v4104_v10, %v4103_v31  ;;  %v3914_v0 = vadd.f32 %v6296_v8, %v3878_v62  ;;  %v3339_v54 = vrot.slane %v3337_v58, 1 }
 0x31b   : > { %v2907_v22 = vpop.f32.mrf.mxu2 }
 0x31c   : > { %5392 = vst [vmem:[%s5905_s5 + $0x18] sm:$0xff] %v5321_v46   ;;  %v3946_v45 = vsub.f32 0.0, %v3914_v0  ;;  %v3509_v12 = vpop.f32.mrf.mxu3  ;;  %v3340_v35 = vsel %vm464_vm0, %v3335_v34, %v3339_v54  ;;  %v3341_v22 = vshrl.u32 %v6392_v19, 16  ;;  %v3670_v19 = vrot.slane %v6402_v17, 1 }
 0x31d   : > { %v2506_v36 = vpop.f32.mrf.mxu1 }
 0x31e   : > { %v3987_v2 = vmul.f32 1.442695, %v3946_v45  ;;  %v5534_v21 = vpop.eup %5533  ;;  %v2588_v26 = vadd.f32 %v2506_v36, %v6179_v48  ;;  %v3345_v45 = vshll.u32 %v6402_v17, 16 }
 0x31f   : > { %v3797_v11 = vpop.f32.mrf.mxu0  ;;  %v4041_v40 = vadd.f32 1.0, %v5534_v21  ;;  %v5658_v21 = vld [vmem:[#allocation2 + $0x9c] sm:$0xff] }
 0x320   : > { %5535 = vpow2.f32 %v3987_v2  ;;  %v2379_v43 = vrot.slane %v5658_v21, 1  ;;  %v3347_v34 = vrot.slane %v3345_v45, 1  ;;  %v5659_v45 = vld [vmem:[#allocation2 + $0xa4] sm:$0xff] }
 0x321   : > { %5537 = vrcp.f32 %v4041_v40 }
 0x323   : > { %v2908_v20 = vpop.f32.mrf.mxu2 }
 0x324   : > { %v2990_v57 = vadd.f32 %v2908_v20, %v2588_v26  ;;  %v3510_v27 = vpop.f32.mrf.mxu3  ;;  %v3343_v26 = vor.u32 %v3341_v22, %v3339_v54  ;;  %v3671_v54 = vsel %vm1052_vm1, %v3668_v24, %v3670_v19 }
 0x325   : > { %v2509_v39 = vpop.f32.mrf.mxu1 }
 0x326   : > { %v5536_v18 = vpop.eup %5535  ;;  %v3592_v42 = vadd.f32 %v3510_v27, %v2990_v57  ;;  %v2589_v7 = vadd.f32 %v2509_v39, %v6182_v28  ;;  %v5240_v39 = vld [vmem:[#allocation2 + $0xa0] sm:$0xff] }
 0x327   : > { %v3800_v51 = vpop.f32.mrf.mxu0  ;;  %v4042_v48 = vadd.f32 1.0, %v5536_v18  ;;  %v5538_v62 = vpop.eup %5537 }
 0x328   : > { %v3879_v61 = vadd.f32 %v3797_v11, %v3592_v42  ;;  %2543 = vmatmul.bf16.gmra.mxu1 %v2378_v23  ;;  %2945 = vmatmul.bf16.gmra.mxu2 %v5239_v1  ;;  %v4105_v25 = vmul.f32 %v5538_v62, %v6382_v41  ;;  %v2380_v41 = vsel %vm1052_vm1, %v2377_v16, %v2379_v43 }
 0x329   : > { %5539 = vrcp.f32 %v4042_v48  ;;  %3547 = vmatmul.bf16.gmra.mxu3 %v3340_v35  ;;  %v3348_v42 = vsel %vm464_vm0, %v3343_v26, %v3347_v34  ;;  %v5241_v26 = vld [vmem:[#allocation2 + $0xa8] sm:$0xff] }
 0x32a   : > { %3834 = vmatmul.bf16.gmra.mxu0 %v3669_v63  ;;  %v6405_v4 = vadd.f32 %v6296_v8, %v3879_v61  ;;  %v6419_v63 = vld [vmem:[#allocation2 + $0xb0] sm:$0xff] }
 0x32b   : > { %v2911_v14 = vpop.f32.mrf.mxu2  ;;  %v3353_v62 = vshll.u32 %v6419_v63, 16 }
 0x32c   : > { %v3947_v31 = vsub.f32 0.0, %v6405_v4  ;;  %v2991_v10 = vadd.f32 %v2911_v14, %v2589_v7  ;;  %v3513_v55 = vpop.f32.mrf.mxu3 }
 0x32d   : > { %v2511_v46 = vpop.f32.mrf.mxu1 }
 0x32e   : > { %v3989_v12 = vmul.f32 1.442695, %v3947_v31  ;;  %v3593_v36 = vadd.f32 %v3513_v55, %v2991_v10  ;;  %v3349_v31 = vshrl.u32 %v6402_v17, 16  ;;  %v3672_v17 = vrot.slane %v6419_v63, 1 }
 0x32f   : > { %v3802_v2 = vpop.f32.mrf.mxu0  ;;  %v5540_v11 = vpop.eup %5539 }
 0x330   : > { %v4106_v58 = vmul.f32 %v5540_v11, %v3914_v0  ;;  %v3880_v28 = vadd.f32 %v3800_v51, %v3593_v36  ;;  %5541 = vpow2.f32 %v3989_v12  ;;  %v3351_v12 = vor.u32 %v3349_v31, %v3347_v34  ;;  %v5660_v31 = vld [vmem:[#allocation2 + $0xac] sm:$0xff] }
 0x331   : > { %v3355_v11 = vrot.slane %v3353_v62, 1 }
 0x332   : > { %v5326_v40 = vpack.c.bf16 %v4106_v58, %v4105_v25  ;;  %v3916_v20 = vadd.f32 %v6296_v8, %v3880_v28 }
 0x333   : > { %v2913_v57 = vpop.f32.mrf.mxu2 }
 0x334   : > { %5393 = vst [vmem:[%s5905_s5 + $0x20] sm:$0xff] %v5326_v40   ;;  %v3948_v27 = vsub.f32 0.0, %v3916_v20  ;;  %v3515_v1 = vpop.f32.mrf.mxu3 }
 0x335   : > { %v2513_v23 = vpop.f32.mrf.mxu1 }
 0x336   : > { %v3991_v0 = vmul.f32 1.442695, %v3948_v27  ;;  %v5542_v51 = vpop.eup %5541  ;;  %v2590_v35 = vadd.f32 %v2513_v23, %v6187_v38  ;;  %v2381_v38 = vrot.slane %v5659_v45, 1  ;;  %v3356_v23 = vsel %vm464_vm0, %v3351_v12, %v3355_v11 }
 0x337   : > { %v3804_v18 = vpop.f32.mrf.mxu0  ;;  %v4043_v48 = vadd.f32 1.0, %v5542_v51  ;;  %v6434_v51 = vld [vmem:[#allocation2 + $0xb8] sm:$0xff] }
 0x338   : > { %5543 = vpow2.f32 %v3991_v0  ;;  %2547 = vmatmul.bf16.gmra.mxu1 %v2380_v41  ;;  %2949 = vmatmul.bf16.gmra.mxu2 %v5240_v39  ;;  %v2382_v27 = vsel %vm1052_vm1, %v2379_v43, %v2381_v38 }
 0x339   : > { %3551 = vmatmul.bf16.gmra.mxu3 %v3348_v42  ;;  %5545 = vrcp.f32 %v4043_v48 }
 0x33a   : > { %3838 = vmatmul.bf16.gmra.mxu0 %v3671_v54 }
 0x33b   : > { %v2915_v61 = vpop.f32.mrf.mxu2 }
 0x33c   : > { %v2992_v7 = vadd.f32 %v2915_v61, %v2590_v35  ;;  %v3517_v16 = vpop.f32.mrf.mxu3 }
 0x33d   : > { %v2515_v14 = vpop.f32.mrf.mxu1 }
 0x33e   : > { %v5544_v10 = vpop.eup %5543  ;;  %v3594_v55 = vadd.f32 %v3517_v16, %v2992_v7  ;;  %v2591_v2 = vadd.f32 %v2515_v14, %v6192_v56  ;;  %v3673_v56 = vsel %vm1052_vm1, %v3670_v19, %v3672_v17 }
 0x33f   : > { %v3806_v24 = vpop.f32.mrf.mxu0  ;;  %v4044_v46 = vadd.f32 1.0, %v5544_v10  ;;  %v5546_v40 = vpop.eup %5545  ;;  %v2383_v10 = vrot.slane %v5660_v31, 1 }
 0x340   : > { %v3881_v22 = vadd.f32 %v3804_v18, %v3594_v55  ;;  %v4107_v0 = vmul.f32 %v5546_v40, %v6405_v4  ;;  %v3357_v4 = vshrl.u32 %v6419_v63, 16 }
 0x341   : > { %5547 = vrcp.f32 %v4044_v46  ;;  %v3674_v46 = vrot.slane %v6434_v51, 1  ;;  %v2384_v63 = vsel %vm1052_vm1, %v2381_v38, %v2383_v10 }
 0x342   : > { %v6424_v36 = vadd.f32 %v6296_v8, %v3881_v22 }
 0x343   : > { %v2917_v25 = vpop.f32.mrf.mxu2 }
 0x344   : > { %v3949_v58 = vsub.f32 0.0, %v6424_v36  ;;  %v2993_v28 = vadd.f32 %v2917_v25, %v2591_v2  ;;  %v3519_v21 = vpop.f32.mrf.mxu3  ;;  %v5242_v25 = vld [vmem:[#allocation2 + $0xb0] sm:$0xff] }
 0x345   : > { %v2518_v57 = vpop.f32.mrf.mxu1 }
 0x346   : > { %v3993_v1 = vmul.f32 1.442695, %v3949_v58  ;;  %v3595_v34 = vadd.f32 %v3519_v21, %v2993_v28  ;;  %v3675_v57 = vsel %vm1052_vm1, %v3672_v17, %v3674_v46 }
 0x347   : > { %v3809_v39 = vpop.f32.mrf.mxu0  ;;  %v5548_v41 = vpop.eup %5547 }
 0x348   : > { %v4108_v18 = vmul.f32 %v5548_v41, %v3916_v20  ;;  %v3882_v42 = vadd.f32 %v3806_v24, %v3595_v34  ;;  %2551 = vmatmul.bf16.gmra.mxu1 %v2382_v27  ;;  %2953 = vmatmul.bf16.gmra.mxu2 %v5241_v26  ;;  %5549 = vpow2.f32 %v3993_v1  ;;  %v3361_v20 = vshll.u32 %v6434_v51, 16  ;;  %v6444_v27 = vld [vmem:[#allocation2 + $0xc0] sm:$0xff] }
 0x349   : > { %3555 = vmatmul.bf16.gmra.mxu3 %v3356_v23  ;;  %v3359_v24 = vor.u32 %v3357_v4, %v3355_v11 }
 0x34a   : > { %3842 = vmatmul.bf16.gmra.mxu0 %v3673_v56  ;;  %v5331_v54 = vpack.c.bf16 %v4108_v18, %v4107_v0  ;;  %v3918_v43 = vadd.f32 %v6296_v8, %v3882_v42  ;;  %v3363_v62 = vrot.slane %v3361_v20, 1  ;;  %v3365_v0 = vshrl.u32 %v6434_v51, 16 }
 0x34b   : > { %v2920_v35 = vpop.f32.mrf.mxu2  ;;  %v3369_v18 = vshll.u32 %v6444_v27, 16  ;;  %v3676_v51 = vrot.slane %v6444_v27, 1 }
 0x34c   : > { %5394 = vst [vmem:[%s5905_s5 + $0x28] sm:$0xff] %v5331_v54   ;;  %v3950_v48 = vsub.f32 0.0, %v3918_v43  ;;  %v3522_v61 = vpop.f32.mrf.mxu3  ;;  %v3364_v40 = vsel %vm464_vm0, %v3359_v24, %v3363_v62  ;;  %v3367_v4 = vor.u32 %v3365_v0, %v3363_v62 }
 0x34d   : > { %v2519_v19 = vpop.f32.mrf.mxu1  ;;  %v3371_v20 = vrot.slane %v3369_v18, 1  ;;  %v3677_v62 = vsel %vm1052_vm1, %v3674_v46, %v3676_v51 }
 0x34e   : > { %v3995_v7 = vmul.f32 1.442695, %v3950_v48  ;;  %v5550_v14 = vpop.eup %5549  ;;  %v2592_v55 = vadd.f32 %v2519_v19, %v6197_v47 }
 0x34f   : > { %v3810_v16 = vpop.f32.mrf.mxu0  ;;  %v4045_v22 = vadd.f32 1.0, %v5550_v14 }
 0x350   : > { %5551 = vpow2.f32 %v3995_v7  ;;  %v5661_v7 = vld [vmem:[#allocation2 + $0xb4] sm:$0xff] }
 0x351   : > { %5553 = vrcp.f32 %v4045_v22 }
 0x353   : > { %v2921_v45 = vpop.f32.mrf.mxu2 }
 0x354   : > { %v2994_v12 = vadd.f32 %v2921_v45, %v2592_v55  ;;  %v3523_v2 = vpop.f32.mrf.mxu3  ;;  %v5243_v45 = vld [vmem:[#allocation2 + $0xb8] sm:$0xff] }
 0x355   : > { %v2522_v58 = vpop.f32.mrf.mxu1 }
 0x356   : > { %v5552_v28 = vpop.eup %5551  ;;  %v3596_v21 = vadd.f32 %v3523_v2, %v2994_v12  ;;  %v2593_v38 = vadd.f32 %v2522_v58, %v6200_v50 }
 0x357   : > { %v3813_v26 = vpop.f32.mrf.mxu0  ;;  %v4046_v47 = vadd.f32 1.0, %v5552_v28  ;;  %v5554_v56 = vpop.eup %5553  ;;  %v6461_v28 = vld [vmem:[#allocation2 + $0xc8] sm:$0xff] }
 0x358   : > { %v3883_v11 = vadd.f32 %v3810_v16, %v3596_v21  ;;  %2556 = vmatmul.bf16.gmra.mxu1 %v2384_v63  ;;  %2958 = vmatmul.bf16.gmra.mxu2 %v5242_v25  ;;  %v4109_v61 = vmul.f32 %v5554_v56, %v6424_v36  ;;  %v2385_v16 = vrot.slane %v5661_v7, 1  ;;  %v3372_v25 = vsel %vm464_vm0, %v3367_v4, %v3371_v20 }
 0x359   : > { %5555 = vrcp.f32 %v4046_v47  ;;  %3560 = vmatmul.bf16.gmra.mxu3 %v3364_v40  ;;  %v3373_v47 = vshrl.u32 %v6444_v27, 16  ;;  %v3678_v27 = vrot.slane %v6461_v28, 1 }
 0x35a   : > { %3847 = vmatmul.bf16.gmra.mxu0 %v3675_v57  ;;  %v6447_v1 = vadd.f32 %v6296_v8, %v3883_v11  ;;  %v2386_v36 = vsel %vm1052_vm1, %v2383_v10, %v2385_v16 }
 0x35b   : > { %v2924_v34 = vpop.f32.mrf.mxu2  ;;  %v3375_v56 = vor.u32 %v3373_v47, %v3371_v20 }
 0x35c   : > { %v3951_v39 = vsub.f32 0.0, %v6447_v1  ;;  %v2995_v23 = vadd.f32 %v2924_v34, %v2593_v38  ;;  %v3526_v17 = vpop.f32.mrf.mxu3  ;;  %v3377_v34 = vshll.u32 %v6461_v28, 16 }
 0x35d   : > { %v2524_v41 = vpop.f32.mrf.mxu1 }
 0x35e   : > { %v3997_v42 = vmul.f32 1.442695, %v3951_v39  ;;  %v3597_v54 = vadd.f32 %v3526_v17, %v2995_v23  ;;  %v5662_v17 = vld [vmem:[#allocation2 + $0xbc] sm:$0xff]  ;;  %v3379_v18 = vrot.slane %v3377_v34, 1 }
 0x35f   : > { %v3815_v35 = vpop.f32.mrf.mxu0  ;;  %v5556_v48 = vpop.eup %5555 }
 0x360   : > { %v4110_v19 = vmul.f32 %v5556_v48, %v3918_v43  ;;  %v3884_v50 = vadd.f32 %v3813_v26, %v3597_v54  ;;  %5557 = vpow2.f32 %v3997_v42 }
 0x362   : > { %v5336_v14 = vpack.c.bf16 %v4110_v19, %v4109_v61  ;;  %v3920_v31 = vadd.f32 %v6296_v8, %v3884_v50  ;;  %v5244_v61 = vld [vmem:[#allocation2 + $0xc0] sm:$0xff] }
 0x363   : > { %v2926_v55 = vpop.f32.mrf.mxu2 }
 0x364   : > { %5395 = vst [vmem:[%s5905_s5 + $0x30] sm:$0xff] %v5336_v14   ;;  %v3952_v24 = vsub.f32 0.0, %v3920_v31  ;;  %v3528_v22 = vpop.f32.mrf.mxu3 }
 0x365   : > { %v2526_v12 = vpop.f32.mrf.mxu1 }
 0x366   : > { %v3999_v43 = vmul.f32 1.442695, %v3952_v24  ;;  %v5558_v58 = vpop.eup %5557  ;;  %v2594_v63 = vadd.f32 %v2526_v12, %v6205_v49  ;;  %v2387_v49 = vrot.slane %v5662_v17, 1  ;;  %v5245_v17 = vld [vmem:[#allocation2 + $0xc8] sm:$0xff] }
 0x367   : > { %v3817_v2 = vpop.f32.mrf.mxu0  ;;  %v4047_v21 = vadd.f32 1.0, %v5558_v58  ;;  %v3381_v58 = vshrl.u32 %v6461_v28, 16 }
 0x368   : > { %5559 = vpow2.f32 %v3999_v43  ;;  %2560 = vmatmul.bf16.gmra.mxu1 %v2386_v36  ;;  %2962 = vmatmul.bf16.gmra.mxu2 %v5243_v45  ;;  %v2388_v7 = vsel %vm1052_vm1, %v2385_v16, %v2387_v49  ;;  %v6478_v16 = vld [vmem:[%s6577_s2] ss:$0 sm:$0xff]  ;;  %v6481_v43 = vld [vmem:[#allocation2 + $0xd0] sm:$0xff] }
 0x369   : > { %3564 = vmatmul.bf16.gmra.mxu3 %v3372_v25  ;;  %5561 = vrcp.f32 %v4047_v21 }
 0x36a   : > { %3851 = vmatmul.bf16.gmra.mxu0 %v3677_v62 }
 0x36b   : > { %v2928_v26 = vpop.f32.mrf.mxu2 }
 0x36c   : > { %v2996_v40 = vadd.f32 %v2928_v26, %v2594_v63  ;;  %v3530_v10 = vpop.f32.mrf.mxu3  ;;  %v3385_v63 = vshll.u32 %v6481_v43, 16  ;;  %v5664_v26 = vld [vmem:[#allocation2 + $0xc4] sm:$0xff] }
 0x36d   : > { %v2528_v57 = vpop.f32.mrf.mxu1 }
 0x36e   : > { %v5560_v11 = vpop.eup %5559  ;;  %v3598_v38 = vadd.f32 %v3530_v10, %v2996_v40  ;;  %v2595_v0 = vadd.f32 %v2528_v57, %v6210_v44  ;;  %v3679_v44 = vsel %vm1052_vm1, %v3676_v51, %v3678_v27  ;;  %v2389_v40 = vrot.slane %v5664_v26, 1 }
 0x36f   : > { %v3819_v46 = vpop.f32.mrf.mxu0  ;;  %v4048_v39 = vadd.f32 1.0, %v5560_v11  ;;  %v5562_v19 = vpop.eup %5561  ;;  %v3383_v57 = vor.u32 %v3381_v58, %v3379_v18  ;;  %v3387_v47 = vrot.slane %v3385_v63, 1  ;;  %v3680_v11 = vrot.slane %v6481_v43, 1 }
 0x370   : > { %v3885_v23 = vadd.f32 %v3817_v2, %v3598_v38  ;;  %v4111_v24 = vmul.f32 %v5562_v19, %v6447_v1  ;;  %v3060_v38 = vld [vmem:[#allocation2 + $0xd8] sm:$0x1]  ;;  %v2390_v28 = vsel %vm1052_vm1, %v2387_v49, %v2389_v40 }
 0x371   : > { %5563 = vrcp.f32 %v4048_v39 }
 0x372   : > { %v6466_v41 = vadd.f32 %v6296_v8, %v3885_v23  ;;  %v3380_v8 = vsel %vm464_vm0, %v3375_v56, %v3379_v18 }
 0x373   : > { %v2930_v42 = vpop.f32.mrf.mxu2 }
 0x374   : > { %v3953_v54 = vsub.f32 0.0, %v6466_v41  ;;  %v2997_v35 = vadd.f32 %v2930_v42, %v2595_v0  ;;  %v3532_v48 = vpop.f32.mrf.mxu3  ;;  %v3175_v0 = vunpack.c.l.b16 %v3060_v38 }
 0x375   : > { %v2531_v50 = vpop.f32.mrf.mxu1 }
 0x376   : > { %v4001_v4 = vmul.f32 1.442695, %v3953_v54  ;;  %v3599_v20 = vadd.f32 %v3532_v48, %v2997_v35  ;;  %v3388_v48 = vsel %vm464_vm0, %v3383_v57, %v3387_v47  ;;  %v3200_v19 = vpack.c.b16 %v3175_v0, %v3175_v0 }
 0x377   : > { %v3822_v14 = vpop.f32.mrf.mxu0  ;;  %v5564_v55 = vpop.eup %5563 }
 0x378   : > { %v4112_v22 = vmul.f32 %v5564_v55, %v3920_v31  ;;  %v3886_v45 = vadd.f32 %v3819_v46, %v3599_v20  ;;  %2564 = vmatmul.bf16.gmra.mxu1 %v2388_v7  ;;  %2966 = vmatmul.bf16.gmra.mxu2 %v5244_v61  ;;  %5565 = vpow2.f32 %v4001_v4  ;;  %v3393_v55 = vshll.u32 %v3200_v19, 16 }
 0x379   : > { %3568 = vmatmul.bf16.gmra.mxu3 %v3380_v8  ;;  %v3682_v63 = vrot.slane %v3200_v19, 1 }
 0x37a   : > { %3855 = vmatmul.bf16.gmra.mxu0 %v3679_v44  ;;  %v5341_v12 = vpack.c.bf16 %v4112_v22, %v4111_v24  ;;  %v3922_v36 = vadd.f32 %v6478_v16, %v3886_v45  ;;  %v3389_v44 = vshrl.u32 %v6481_v43, 16 }
 0x37b   : > { %v2933_v51 = vpop.f32.mrf.mxu2 }
 0x37c   : > { %5396 = vst [vmem:[%s5905_s5 + $0x38] sm:$0xff] %v5341_v12   ;;  %v3954_v1 = vsub.f32 0.0, %v3922_v36  ;;  %v3535_v31 = vpop.f32.mrf.mxu3 }
 0x37d   : > { %v2532_v2 = vpop.f32.mrf.mxu1 }
 0x37e   : > { %v4003_v25 = vmul.f32 1.442695, %v3954_v1  ;;  %v5566_v21 = vpop.eup %5565  ;;  %v2596_v10 = vadd.f32 %v2532_v2, %v6215_v6  ;;  %v3681_v6 = vsel %vm1052_vm1, %v3678_v27, %v3680_v11  ;;  %v3391_v2 = vor.u32 %v3389_v44, %v3387_v47 }
 0x37f   : > { %v3823_v62 = vpop.f32.mrf.mxu0  ;;  %v4049_v46 = vadd.f32 1.0, %v5566_v21 }
 0x380   : > { %5567 = vpow2.f32 %v4003_v25  ;;  %v3395_v25 = vrot.slane %v3393_v55, 1 }
 0x381   : > { %5569 = vrcp.f32 %v4049_v46 }
 0x382   : > { %v3396_v46 = vsel %vm464_vm0, %v3391_v2, %v3395_v25 }
 0x383   : > { %v2934_v34 = vpop.f32.mrf.mxu2 }
 0x384   : > { %v2998_v39 = vadd.f32 %v2934_v34, %v2596_v10  ;;  %v3536_v23 = vpop.f32.mrf.mxu3  ;;  %v5246_v10 = vld [vmem:[#allocation2 + $0xd0] sm:$0xff] }
 0x385   : > { %v2535_v56 = vpop.f32.mrf.mxu1 }
 0x386   : > { %v5568_v42 = vpop.eup %5567  ;;  %v3600_v54 = vadd.f32 %v3536_v23, %v2998_v39  ;;  %v2597_v49 = vadd.f32 %v2535_v56, %v6221_v30  ;;  %v2391_v30 = vrot.slane %v6218_v32, 1  ;;  %v3683_v32 = vsel %vm1052_vm1, %v3680_v11, %v3682_v63 }
 0x387   : > { %v3826_v35 = vpop.f32.mrf.mxu0  ;;  %v4050_v18 = vadd.f32 1.0, %v5568_v42  ;;  %v5570_v27 = vpop.eup %5569 }
 0x388   : > { %v3887_v61 = vadd.f32 %v3823_v62, %v3600_v54  ;;  %2569 = vmatmul.bf16.gmra.mxu1 %v2390_v28  ;;  %2971 = vmatmul.bf16.gmra.mxu2 %v5245_v17  ;;  %v4113_v51 = vmul.f32 %v5570_v27, %v6466_v41  ;;  %v2392_v38 = vsel %vm1052_vm1, %v2389_v40, %v2391_v30 }
 0x389   : > { %5571 = vrcp.f32 %v4050_v18  ;;  %3573 = vmatmul.bf16.gmra.mxu3 %v3388_v48 }
 0x38a   : > { %3860 = vmatmul.bf16.gmra.mxu0 %v3681_v6  ;;  %v6492_v50 = vadd.f32 %v6478_v16, %v3887_v61 }
 0x38b   : > { %v2937_v7 = vpop.f32.mrf.mxu2 }
 0x38c   : > { %v3955_v4 = vsub.f32 0.0, %v6492_v50  ;;  %v2999_v20 = vadd.f32 %v2937_v7, %v2597_v49  ;;  %v3539_v14 = vpop.f32.mrf.mxu3 }
 0x38d   : > { %v2537_v8 = vpop.f32.mrf.mxu1 }
 0x38e   : > { %v4005_v24 = vmul.f32 1.442695, %v3955_v4  ;;  %v3601_v22 = vadd.f32 %v3539_v14, %v2999_v20 }
 0x38f   : > { %v3828_v45 = vpop.f32.mrf.mxu0  ;;  %v5572_v12 = vpop.eup %5571 }
 0x390   : > { %v4114_v1 = vmul.f32 %v5572_v12, %v3922_v36  ;;  %v3888_v31 = vadd.f32 %v3826_v35, %v3601_v22  ;;  %5573 = vpow2.f32 %v4005_v24 }
 0x392   : > { %v5346_v62 = vpack.c.bf16 %v4114_v1, %v4113_v51  ;;  %v3924_v58 = vadd.f32 %v6478_v16, %v3888_v31 }
 0x393   : > { %v2939_v43 = vpop.f32.mrf.mxu2 }
 0x394   : > { %5397 = vst [vmem:[%s5905_s5 + $0x40] sm:$0xff] %v5346_v62   ;;  %v3956_v21 = vsub.f32 0.0, %v3924_v58  ;;  %v3541_v26 = vpop.f32.mrf.mxu3 }
 0x395   : > { %v2539_v57 = vpop.f32.mrf.mxu1 }
 0x396   : > { %v4007_v41 = vmul.f32 1.442695, %v3956_v21  ;;  %v5574_v47 = vpop.eup %5573  ;;  %v2598_v34 = vadd.f32 %v2539_v57, %v6228_v13 }
 0x397   : > { %v3830_v36 = vpop.f32.mrf.mxu0  ;;  %v4051_v39 = vadd.f32 1.0, %v5574_v47 }
 0x398   : > { %5575 = vpow2.f32 %v4007_v41  ;;  %2573 = vmatmul.bf16.gmra.mxu1 %v2392_v38  ;;  %2975 = vmatmul.bf16.gmra.mxu2 %v5246_v10 }
 0x399   : > { %3577 = vmatmul.bf16.gmra.mxu3 %v3396_v46  ;;  %5577 = vrcp.f32 %v4051_v39 }
 0x39a   : > { %3864 = vmatmul.bf16.gmra.mxu0 %v3683_v32 }
 0x39b   : > { %v2941_v23 = vpop.f32.mrf.mxu2 }
 0x39c   : > { %v3000_v17 = vadd.f32 %v2941_v23, %v2598_v34  ;;  %v3543_v56 = vpop.f32.mrf.mxu3 }
 0x39d   : > { %v2541_v28 = vpop.f32.mrf.mxu1 }
 0x39e   : > { %v5576_v40 = vpop.eup %5575  ;;  %v3602_v0 = vadd.f32 %v3543_v56, %v3000_v17  ;;  %v2599_v48 = vadd.f32 %v2541_v28, %v6234_v5 }
 0x39f   : > { %v3832_v42 = vpop.f32.mrf.mxu0  ;;  %v4052_v54 = vadd.f32 1.0, %v5576_v40  ;;  %v5578_v19 = vpop.eup %5577 }
 0x3a0   : > { %v3889_v35 = vadd.f32 %v3830_v36, %v3602_v0  ;;  %v4115_v27 = vmul.f32 %v5578_v19, %v6492_v50 }
 0x3a1   : > { %5579 = vrcp.f32 %v4052_v54 }
 0x3a2   : > { %v3925_v11 = vadd.f32 %v6478_v16, %v3889_v35 }
 0x3a3   : > { %v2943_v6 = vpop.f32.mrf.mxu2 }
 0x3a4   : > { %v3957_v18 = vsub.f32 0.0, %v3925_v11  ;;  %v3001_v13 = vadd.f32 %v2943_v6, %v2599_v48  ;;  %v3545_v61 = vpop.f32.mrf.mxu3 }
 0x3a5   : > { %v2544_v49 = vpop.f32.mrf.mxu1 }
 0x3a6   : > { %v4009_v7 = vmul.f32 1.442695, %v3957_v18  ;;  %v3603_v4 = vadd.f32 %v3545_v61, %v3001_v13 }
 0x3a7   : > { %v3835_v20 = vpop.f32.mrf.mxu0  ;;  %v5580_v14 = vpop.eup %5579 }
 0x3a8   : > { %v4116_v8 = vmul.f32 %v5580_v14, %v3924_v58  ;;  %v3890_v44 = vadd.f32 %v3832_v42, %v3603_v4  ;;  %5581 = vpow2.f32 %v4009_v7 }
 0x3aa   : > { %v5351_v55 = vpack.c.bf16 %v4116_v8, %v4115_v27  ;;  %v3926_v24 = vadd.f32 %v6478_v16, %v3890_v44 }
 0x3ab   : > { %v2946_v5 = vpop.f32.mrf.mxu2 }
 0x3ac   : > { %5398 = vst [vmem:[%s5905_s5 + $0x48] sm:$0xff] %v5351_v55   ;;  %v3958_v22 = vsub.f32 0.0, %v3926_v24  ;;  %v3548_v45 = vpop.f32.mrf.mxu3 }
 0x3ad   : > { %v2545_v12 = vpop.f32.mrf.mxu1 }
 0x3ae   : > { %v4011_v51 = vmul.f32 1.442695, %v3958_v22  ;;  %v5582_v31 = vpop.eup %5581  ;;  %v2600_v30 = vadd.f32 %v2545_v12, %v6240_v15 }
 0x3af   : > { %v3836_v1 = vpop.f32.mrf.mxu0  ;;  %v4053_v2 = vadd.f32 1.0, %v5582_v31 }
 0x3b0   : > { %5583 = vpow2.f32 %v4011_v51 }
 0x3b1   : > { %5585 = vrcp.f32 %v4053_v2 }
 0x3b3   : > { %v2947_v25 = vpop.f32.mrf.mxu2 }
 0x3b4   : > { %v3002_v50 = vadd.f32 %v2947_v25, %v2600_v30  ;;  %v3549_v62 = vpop.f32.mrf.mxu3 }
 0x3b5   : > { %v2548_v58 = vpop.f32.mrf.mxu1 }
 0x3b6   : > { %v5584_v63 = vpop.eup %5583  ;;  %v3604_v43 = vadd.f32 %v3549_v62, %v3002_v50  ;;  %v2601_v38 = vadd.f32 %v2548_v58, %v6243_v37 }
 0x3b7   : > { %v3839_v21 = vpop.f32.mrf.mxu0  ;;  %v4054_v26 = vadd.f32 1.0, %v5584_v63  ;;  %v5586_v32 = vpop.eup %5585 }
 0x3b8   : > { %v3891_v10 = vadd.f32 %v3836_v1, %v3604_v43  ;;  %v4117_v56 = vmul.f32 %v5586_v32, %v3925_v11 }
 0x3b9   : > { %5587 = vrcp.f32 %v4054_v26 }
 0x3ba   : > { %v3927_v57 = vadd.f32 %v6478_v16, %v3891_v10 }
 0x3bb   : > { %v2950_v41 = vpop.f32.mrf.mxu2 }
 0x3bc   : > { %v3959_v36 = vsub.f32 0.0, %v3927_v57  ;;  %v3003_v15 = vadd.f32 %v2950_v41, %v2601_v38  ;;  %v3552_v46 = vpop.f32.mrf.mxu3 }
 0x3bd   : > { %v2550_v47 = vpop.f32.mrf.mxu1 }
 0x3be   : > { %v4013_v34 = vmul.f32 1.442695, %v3959_v36  ;;  %v3605_v39 = vadd.f32 %v3552_v46, %v3003_v15 }
 0x3bf   : > { %v3841_v23 = vpop.f32.mrf.mxu0  ;;  %v5588_v17 = vpop.eup %5587 }
 0x3c0   : > { %v4118_v28 = vmul.f32 %v5588_v17, %v3926_v24  ;;  %v3892_v40 = vadd.f32 %v3839_v21, %v3605_v39  ;;  %5589 = vpow2.f32 %v4013_v34 }
 0x3c2   : > { %v5356_v0 = vpack.c.bf16 %v4118_v28, %v4117_v56  ;;  %v3928_v42 = vadd.f32 %v6478_v16, %v3892_v40 }
 0x3c3   : > { %v2952_v54 = vpop.f32.mrf.mxu2 }
 0x3c4   : > { %5399 = vst [vmem:[%s5905_s5 + $0x50] sm:$0xff] %v5356_v0   ;;  %v3960_v37 = vsub.f32 0.0, %v3928_v42  ;;  %v3554_v35 = vpop.f32.mrf.mxu3 }
 0x3c5   : > { %v2552_v48 = vpop.f32.mrf.mxu1 }
 0x3c6   : > { %v4015_v6 = vmul.f32 1.442695, %v3960_v37  ;;  %v5590_v13 = vpop.eup %5589  ;;  %v2602_v61 = vadd.f32 %v2552_v48, %v6249_v29 }
 0x3c7   : > { %v3843_v18 = vpop.f32.mrf.mxu0  ;;  %v4055_v19 = vadd.f32 1.0, %v5590_v13 }
 0x3c8   : > { %5591 = vpow2.f32 %v4015_v6 }
 0x3c9   : > { %5593 = vrcp.f32 %v4055_v19 }
 0x3cb   : > { %v2954_v49 = vpop.f32.mrf.mxu2 }
 0x3cc   : > { %v3004_v11 = vadd.f32 %v2954_v49, %v2602_v61  ;;  %v3556_v7 = vpop.f32.mrf.mxu3 }
 0x3cd   : > { %v2554_v4 = vpop.f32.mrf.mxu1 }
 0x3ce   : > { %v5592_v20 = vpop.eup %5591  ;;  %v3606_v14 = vadd.f32 %v3556_v7, %v3004_v11  ;;  %v2603_v24 = vadd.f32 %v2554_v4, %v6255_v59 }
 0x3cf   : > { %v3845_v27 = vpop.f32.mrf.mxu0  ;;  %v4056_v8 = vadd.f32 1.0, %v5592_v20  ;;  %v5594_v12 = vpop.eup %5593 }
 0x3d0   : > { %v3893_v44 = vadd.f32 %v3843_v18, %v3606_v14  ;;  %v4119_v25 = vmul.f32 %v5594_v12, %v3927_v57 }
 0x3d1   : > { %5595 = vrcp.f32 %v4056_v8 }
 0x3d2   : > { %v3929_v55 = vadd.f32 %v6478_v16, %v3893_v44 }
 0x3d3   : > { %v2956_v5 = vpop.f32.mrf.mxu2 }
 0x3d4   : > { %v3961_v22 = vsub.f32 0.0, %v3929_v55  ;;  %v3005_v29 = vadd.f32 %v2956_v5, %v2603_v24  ;;  %v3558_v45 = vpop.f32.mrf.mxu3 }
 0x3d5   : > { %v2557_v51 = vpop.f32.mrf.mxu1 }
 0x3d6   : > { %v4017_v1 = vmul.f32 1.442695, %v3961_v22  ;;  %v3607_v31 = vadd.f32 %v3558_v45, %v3005_v29 }
 0x3d7   : > { %v3848_v30 = vpop.f32.mrf.mxu0  ;;  %v5596_v2 = vpop.eup %5595 }
 0x3d8   : > { %v4120_v50 = vmul.f32 %v5596_v2, %v3928_v42  ;;  %v3894_v62 = vadd.f32 %v3845_v27, %v3607_v31  ;;  %5597 = vpow2.f32 %v4017_v1 }
 0x3da   : > { %v5361_v58 = vpack.c.bf16 %v4120_v50, %v4119_v25  ;;  %v3930_v63 = vadd.f32 %v6478_v16, %v3894_v62 }
 0x3db   : > { %v2959_v43 = vpop.f32.mrf.mxu2 }
 0x3dc   : > { %5400 = vst [vmem:[%s5905_s5 + $0x58] sm:$0xff] %v5361_v58   ;;  %v3962_v59 = vsub.f32 0.0, %v3930_v63  ;;  %v3561_v21 = vpop.f32.mrf.mxu3 }
 0x3dd   : > { %v2558_v26 = vpop.f32.mrf.mxu1 }
 0x3de   : > { %v4019_v10 = vmul.f32 1.442695, %v3962_v59  ;;  %v5598_v41 = vpop.eup %5597  ;;  %v2604_v36 = vadd.f32 %v2558_v26, %v6261_v53 }
 0x3df   : > { %v3849_v38 = vpop.f32.mrf.mxu0  ;;  %v4057_v15 = vadd.f32 1.0, %v5598_v41 }
 0x3e0   : > { %5599 = vpow2.f32 %v4019_v10 }
 0x3e1   : > { %5601 = vrcp.f32 %v4057_v15 }
 0x3e3   : > { %v2960_v46 = vpop.f32.mrf.mxu2 }
 0x3e4   : > { %v3006_v57 = vadd.f32 %v2960_v46, %v2604_v36  ;;  %v3562_v32 = vpop.f32.mrf.mxu3 }
 0x3e5   : > { %v2561_v47 = vpop.f32.mrf.mxu1 }
 0x3e6   : > { %v5600_v34 = vpop.eup %5599  ;;  %v3608_v39 = vadd.f32 %v3562_v32, %v3006_v57  ;;  %v2605_v40 = vadd.f32 %v2561_v47, %v6264_v60 }
 0x3e7   : > { %v3852_v23 = vpop.f32.mrf.mxu0  ;;  %v4058_v17 = vadd.f32 1.0, %v5600_v34  ;;  %v5602_v37 = vpop.eup %5601 }
 0x3e8   : > { %v3895_v56 = vadd.f32 %v3849_v38, %v3608_v39  ;;  %v4121_v61 = vmul.f32 %v5602_v37, %v3929_v55 }
 0x3e9   : > { %5603 = vrcp.f32 %v4058_v17 }
 0x3ea   : > { %v3931_v28 = vadd.f32 %v6478_v16, %v3895_v56 }
 0x3eb   : > { %v2963_v0 = vpop.f32.mrf.mxu2 }
 0x3ec   : > { %v3963_v42 = vsub.f32 0.0, %v3931_v28  ;;  %v3007_v53 = vadd.f32 %v2963_v0, %v2605_v40  ;;  %v3565_v54 = vpop.f32.mrf.mxu3 }
 0x3ed   : > { %v2563_v35 = vpop.f32.mrf.mxu1 }
 0x3ee   : > { %v4021_v48 = vmul.f32 1.442695, %v3963_v42  ;;  %v3609_v6 = vadd.f32 %v3565_v54, %v3007_v53 }
 0x3ef   : > { %v3854_v18 = vpop.f32.mrf.mxu0  ;;  %v5604_v13 = vpop.eup %5603 }
 0x3f0   : > { %v4122_v19 = vmul.f32 %v5604_v13, %v3930_v63  ;;  %v3896_v49 = vadd.f32 %v3852_v23, %v3609_v6  ;;  %5605 = vpow2.f32 %v4021_v48 }
 0x3f2   : > { %v5366_v11 = vpack.c.bf16 %v4122_v19, %v4121_v61  ;;  %v3932_v7 = vadd.f32 %v6478_v16, %v3896_v49 }
 0x3f3   : > { %v2965_v4 = vpop.f32.mrf.mxu2 }
 0x3f4   : > { %5401 = vst [vmem:[%s5905_s5 + $0x60] sm:$0xff] %v5366_v11   ;;  %v3964_v60 = vsub.f32 0.0, %v3932_v7  ;;  %v3567_v20 = vpop.f32.mrf.mxu3 }
 0x3f5   : > { %v2565_v14 = vpop.f32.mrf.mxu1 }
 0x3f6   : > { %v4023_v27 = vmul.f32 1.442695, %v3964_v60  ;;  %v5606_v44 = vpop.eup %5605  ;;  %v2606_v24 = vadd.f32 %v2565_v14, %v6270_v9 }
 0x3f7   : > { %v3856_v8 = vpop.f32.mrf.mxu0  ;;  %v4059_v5 = vadd.f32 1.0, %v5606_v44 }
 0x3f8   : > { %5607 = vpow2.f32 %v4023_v27 }
 0x3f9   : > { %5609 = vrcp.f32 %v4059_v5 }
 0x3fb   : > { %v2967_v22 = vpop.f32.mrf.mxu2 }
 0x3fc   : > { %v3008_v55 = vadd.f32 %v2967_v22, %v2606_v24  ;;  %v3569_v29 = vpop.f32.mrf.mxu3 }
 0x3fd   : > { %v2567_v45 = vpop.f32.mrf.mxu1 }
 0x3fe   : > { %v5608_v12 = vpop.eup %5607  ;;  %v3610_v51 = vadd.f32 %v3569_v29, %v3008_v55  ;;  %v2607_v25 = vadd.f32 %v2567_v45, %v6276_v3 }
 0x3ff   : > { %v3858_v1 = vpop.f32.mrf.mxu0  ;;  %v4060_v31 = vadd.f32 1.0, %v5608_v12  ;;  %v5610_v63 = vpop.eup %5609 }
 0x400   : > { %v3897_v30 = vadd.f32 %v3856_v8, %v3610_v51  ;;  %v4123_v38 = vmul.f32 %v5610_v63, %v3931_v28 }
 0x401   : > { %5611 = vrcp.f32 %v4060_v31 }
 0x402   : > { %v3933_v2 = vadd.f32 %v6478_v16, %v3897_v30 }
 0x403   : > { %v2969_v50 = vpop.f32.mrf.mxu2 }
 0x404   : > { %v3965_v62 = vsub.f32 0.0, %v3933_v2  ;;  %v3009_v9 = vadd.f32 %v2969_v50, %v2607_v25  ;;  %v3571_v58 = vpop.f32.mrf.mxu3 }
 0x405   : > { %v2570_v43 = vpop.f32.mrf.mxu1 }
 0x406   : > { %v4025_v59 = vmul.f32 1.442695, %v3965_v62  ;;  %v3611_v21 = vadd.f32 %v3571_v58, %v3009_v9 }
 0x407   : > { %v3861_v26 = vpop.f32.mrf.mxu0  ;;  %v5612_v10 = vpop.eup %5611 }
 0x408   : > { %v4124_v41 = vmul.f32 %v5612_v10, %v3932_v7  ;;  %v3898_v36 = vadd.f32 %v3858_v1, %v3611_v21  ;;  %5613 = vpow2.f32 %v4025_v59 }
 0x40a   : > { %v5371_v15 = vpack.c.bf16 %v4124_v41, %v4123_v38  ;;  %v3934_v46 = vadd.f32 %v6478_v16, %v3898_v36 }
 0x40b   : > { %v2972_v57 = vpop.f32.mrf.mxu2 }
 0x40c   : > { %5402 = vst [vmem:[%s5905_s5 + $0x68] sm:$0xff] %v5371_v15   ;;  %v3966_v3 = vsub.f32 0.0, %v3934_v46  ;;  %v3574_v32 = vpop.f32.mrf.mxu3 }
 0x40d   : > { %v2571_v47 = vpop.f32.mrf.mxu1 }
 0x40e   : > { %v4027_v34 = vmul.f32 1.442695, %v3966_v3  ;;  %v5614_v23 = vpop.eup %5613  ;;  %v2608_v17 = vadd.f32 %v2571_v47, %v6282_v52 }
 0x40f   : > { %v3862_v39 = vpop.f32.mrf.mxu0  ;;  %v4061_v56 = vadd.f32 1.0, %v5614_v23 }
 0x410   : > { %5615 = vpow2.f32 %v4027_v34 }
 0x411   : > { %5617 = vrcp.f32 %v4061_v56 }
 0x413   : > { %v2973_v40 = vpop.f32.mrf.mxu2 }
 0x414   : > { %v3010_v28 = vadd.f32 %v2973_v40, %v2608_v17  ;;  %v3575_v0 = vpop.f32.mrf.mxu3 }
 0x415   : > { %v2574_v42 = vpop.f32.mrf.mxu1 }
 0x416   : > { %v5616_v53 = vpop.eup %5615  ;;  %v3612_v54 = vadd.f32 %v3575_v0, %v3010_v28  ;;  %v2609_v18 = vadd.f32 %v2574_v42, %v6285_v33 }
 0x417   : > { %v3865_v37 = vpop.f32.mrf.mxu0  ;;  %v4062_v35 = vadd.f32 1.0, %v5616_v53  ;;  %v5618_v49 = vpop.eup %5617 }
 0x418   : > { %v3899_v48 = vadd.f32 %v3862_v39, %v3612_v54  ;;  %v4125_v14 = vmul.f32 %v5618_v49, %v3933_v2 }
 0x419   : > { %5619 = vrcp.f32 %v4062_v35 }
 0x41a   : > { %v3935_v6 = vadd.f32 %v6478_v16, %v3899_v48 }
 0x41b   : > { %v2976_v13 = vpop.f32.mrf.mxu2 }
 0x41c   : > { %v3967_v61 = vsub.f32 0.0, %v3935_v6  ;;  %v3011_v52 = vadd.f32 %v2976_v13, %v2609_v18  ;;  %v3578_v19 = vpop.f32.mrf.mxu3 }
 0x41d   : > { %v2576_v11 = vpop.f32.mrf.mxu1 }
 0x41e   : > { %v4029_v7 = vmul.f32 1.442695, %v3967_v61  ;;  %v3613_v4 = vadd.f32 %v3578_v19, %v3011_v52 }
 0x41f   : > { %v3867_v60 = vpop.f32.mrf.mxu0  ;;  %v5620_v20 = vpop.eup %5619 }
 0x420   : > { %v4126_v27 = vmul.f32 %v5620_v20, %v3934_v46  ;;  %v3900_v8 = vadd.f32 %v3865_v37, %v3613_v4  ;;  %5621 = vpow2.f32 %v4029_v7 }
 0x422   : > { %v5376_v44 = vpack.c.bf16 %v4126_v27, %v4125_v14  ;;  %v3936_v24 = vadd.f32 %v6478_v16, %v3900_v8 }
 0x423   : > { %v2978_v33 = vpop.f32.mrf.mxu2 }
 0x424   : > { %5403 = vst [vmem:[%s5905_s5 + $0x70] sm:$0xff] %v5376_v44   ;;  %v3968_v5 = vsub.f32 0.0, %v3936_v24  ;;  %v3580_v22 = vpop.f32.mrf.mxu3 }
 0x426   : > { %v4031_v55 = vmul.f32 1.442695, %v3968_v5  ;;  %v5622_v29 = vpop.eup %5621 }
 0x427   : > { %v4063_v45 = vadd.f32 1.0, %v5622_v29 }
 0x428   : > { %5623 = vpow2.f32 %v4031_v55 }
 0x429   : > { %5625 = vrcp.f32 %v4063_v45 }
 0x42e   : > { %v5624_v12 = vpop.eup %5623 }
 0x42f   : > { %v4064_v51 = vadd.f32 1.0, %v5624_v12  ;;  %v5626_v16 = vpop.eup %5625 }
 0x430   : > { %v4127_v31 = vmul.f32 %v5626_v16, %v3935_v6 }
 0x431   : > { %5627 = vrcp.f32 %v4064_v51 }
 0x437   : > { %v5628_v1 = vpop.eup %5627 }
 0x438   : > { %v4128_v30 = vmul.f32 %v5628_v1, %v3936_v24 }
 0x43a   : > { %v5381_v2 = vpack.c.bf16 %v4128_v30, %v4127_v31 }
 0x43c   : > { %5404 = vst [vmem:[%s5905_s5 + $0x78] sm:$0xff] %v5381_v2  }
 0x43d   : > { %5749 = shalt.err (!%p5746_p13)
}
 0x43e   : > { %s5812_s6 = smov 64   ;;  %s5813_s5 = smov 4  }
 0x43f   : > { %5433 = dma.vmem_to_hbm [thread:$0]  (%p5874_p4), %s4211_s23, 2048, %s4213_s26, %s4194_s27, %s5812_s6, %s5812_s6, %s5813_s5  }
 0x440 PF: > { %p5445_p0 = scmp.ge.s32.totalorder %s5806_s17, 2  ;;  %s4227_s9 = sand.u32 1, %s5786_s12  }
 0x441   : > { %s4228_s10 = scalar_lea.sflag [#allocation6], %s4227_s9 }
 0x442   : > { %p5440_p1 = pnand %p5445_p0, %p5881_p8 }
 0x444   : > { %p5441_p2 = pneg %p5440_p1 }
 0x446   : > { %5781 = dma.done.wait (%p5441_p2), %s4228_s10, 2048  }
 0x447   : > { %5783 = vsyncadd (%p5441_p2), %s4228_s10, 4294965248  ;;  %s17_s17 = sadd.s32 1, %s5806_s17   ;;  %s6581_s12 = smov %s5790_s13 }
 0x448   : > { %p14_p3 = scmp.ge.s32.totalorder %s17_s17, 4   ;;  %s6582_s13 = smov %s5794_s14 }
 0x449   : > { %s6583_s14 = smov %s5887_s25  ;;  %s6584_s15 = smov %s5802_s16 }
 0x44a   : > { %s6585_s16 = smov %s6587_s20  ;;  %16 = sbr.rel (!%p14_p3) target bundleno = 5 (0x5), region = 104 }
 0x44f   :  { %4234 = vsyncpa [#allocation5], 1 }
 0x450   :  { %4236 = vsyncpa [#allocation5 + $0x1], 1 }
 0x451   :  { %4237 = vsyncpa [#allocation6], 1 }
 0x452   :  { %4239 = vsyncpa [#allocation6 + $0x1], 1 }
 0x453   :  { %4240 = vsyncmov [#allocation3] }
 0x456   :  { %s4241_s22 = vpop.sfrf %4240 }
 0x457   :  { %p5100_p4 = scmp.ne.s32.totalorder %s4241_s22, 0 }
 0x459   :  { %4245 = shalt.err (%p5100_p4)  }
 0x45a   :  { %4247 = vsyncmov [#allocation3 + $0x1] }
 0x45d   :  { %s4248_s24 = vpop.sfrf %4247 }
 0x45e   :  { %p5101_p8 = scmp.ne.s32.totalorder %s4248_s24, 0 }
 0x460   :  { %4252 = shalt.err (%p5101_p8)  }

</bundles_post_ra>
